<compile_context>
chip_gen: v7x
topology: tpu7x:2x2x1
jax: 0.10.0
libtpu: 0.0.40
codegen_flags: <defaults>
</compile_context>

<pallas_src>
import jax
import jax.numpy as jnp
import numpy as np
from jax.experimental import pallas as pl
from jax.experimental.pallas import tpu as pltpu

EPS = 1e-5   # PyTorch InstanceNorm2d default (affine=False, biased variance)
_PAD = 8     # sublane-aligned left margin for the in-VMEM padded stage-1 activation


# ---------------------------------------------------------------------------
# Fused kernel
# ---------------------------------------------------------------------------
def _fused_residual_block_kernel(xp_ref, w1_ref, w2_ref, fc1_ref, fc2_ref,
                                 out_ref, ypad_ref):
    # xp_ref : (Bt, H+2, W+2, C)  zero-padded input tile (f32)
    # w1_ref : (9*C, C)           conv1 weight, (dy, dx, cin) stacked along K (bf16)
    # w2_ref : (9*C, C)           conv2 weight (bf16)
    # fc1_ref: (C, Cr)  fc2_ref: (Cr, C)   SE weights (f32, pre-transposed)
    # out_ref: (Bt, H*W, C)
    # ypad_ref: (Bt, H+2, W+2*_PAD, C) f32 VMEM scratch for the padded stage-1 activation
    Bt, Hp, Wp, C = xp_ref.shape
    H, W = Hp - 2, Wp - 2
    HW = H * W
    M = Bt * HW

    def tap_matrix(padded, off):
        # Conceptual padded column j lives at physical column off + j.
        # Returns the im2col matrix (M, 9*C) matching the weight row order (dy, dx, cin).
        taps = [padded[:, dy:dy + H, off + dx:off + dx + W, :]
                for dy in range(3) for dx in range(3)]
        cat = jnp.concatenate(taps, axis=-1)              # (Bt, H, W, 9C)
        return cat.reshape(M, 9 * C)

    def instance_norm(y):
        # y: (Bt, HW, C); one-pass biased stats per (image, channel), f32.
        inv_n = 1.0 / HW
        mu = jnp.sum(y, axis=1, keepdims=True) * inv_n
        ex2 = jnp.sum(y * y, axis=1, keepdims=True) * inv_n
        var = jnp.maximum(ex2 - mu * mu, 0.0)
        return (y - mu) * jax.lax.rsqrt(var + EPS)

    xp = xp_ref[...].astype(jnp.float32)                  # (Bt, H+2, W+2, C)
    x_res = xp[:, 1:H + 1, 1:W + 1, :].reshape(Bt, HW, C)  # residual = center tap, exact f32

    # ---- stage 1: conv1 as one (M, 9C) @ (9C, C) bf16 matmul, f32 accumulation ----
    t1 = tap_matrix(xp, 0).astype(jnp.bfloat16)
    y1 = jnp.dot(t1, w1_ref[...], preferred_element_type=jnp.float32)   # (M, C) f32
    y1 = jnp.maximum(instance_norm(y1.reshape(Bt, HW, C)), 0.0)         # IN + ReLU

    # ---- stage 2 taps: zero-pad y1 inside VMEM (no HBM round trip) ----
    ypad_ref[...] = jnp.zeros(ypad_ref.shape, ypad_ref.dtype)
    ypad_ref[:, 1:H + 1, _PAD:_PAD + W, :] = y1.reshape(Bt, H, W, C)    # tile-aligned store
    ypad = ypad_ref[...]

    t2 = tap_matrix(ypad, _PAD - 1).astype(jnp.bfloat16)
    y2 = jnp.dot(t2, w2_ref[...], preferred_element_type=jnp.float32)   # (M, C) f32
    y2 = instance_norm(y2.reshape(Bt, HW, C))

    # ---- squeeze-and-excitation (tiny matmuls, all f32) ----
    pooled = jnp.mean(y2, axis=1)                                        # (Bt, C)
    s = jnp.maximum(jnp.dot(pooled, fc1_ref[...],
                            preferred_element_type=jnp.float32), 0.0)    # (Bt, Cr)
    s = jax.nn.sigmoid(jnp.dot(s, fc2_ref[...],
                               preferred_element_type=jnp.float32))      # (Bt, C)

    out_ref[...] = (y2 * s[:, None, :] + x_res).astype(out_ref.dtype)


# ---------------------------------------------------------------------------
# Wrapper
# ---------------------------------------------------------------------------
def _conv_w_to_mat(w):
    # PyTorch Conv2d weight (Cout, Cin, 3, 3) -> (9*Cin, Cout); row order (dy, dx, cin)
    # matches tap_matrix's concatenation order.
    cout, cin = w.shape[0], w.shape[1]
    return jnp.transpose(w, (2, 3, 1, 0)).reshape(9 * cin, cout)


def _pick_batch_tile(B, HW, C):
    # Process enough images per grid step that matmul M = Bt*HW reaches the 128-row MXU
    # tile, while keeping the per-step working set comfortably inside VMEM.
    want = max(1, (128 + HW - 1) // HW)
    vmem_cap = max(1, (24 << 20) // max(1, HW * C * 4 * 30))  # rough in-kernel footprint
    want = min(want, vmem_cap)
    bt = 1
    for d in range(1, B + 1):
        if B % d == 0 and d <= want:
            bt = d
    return bt


@jax.jit
def residual_block_forward(x_nchw, conv1_w, conv2_w, fc1_w, fc2_w):
    B, C, H, W = x_nchw.shape
    HW = H * W
    Cr = fc1_w.shape[0]

    x_nhwc = jnp.transpose(x_nchw, (0, 2, 3, 1)).astype(jnp.float32)
    xp = jnp.pad(x_nhwc, ((0, 0), (1, 1), (1, 1), (0, 0)))        # (B, H+2, W+2, C)

    w1m = _conv_w_to_mat(conv1_w).astype(jnp.bfloat16)             # (9C, C)
    w2m = _conv_w_to_mat(conv2_w).astype(jnp.bfloat16)
    fc1m = fc1_w.T.astype(jnp.float32)                             # (C, Cr)
    fc2m = fc2_w.T.astype(jnp.float32)                             # (Cr, C)

    Bt = _pick_batch_tile(B, HW, C)
    grid = (B // Bt,)
    # NOTE: for large images a halo-tiled spatial grid axis (and lane-dense output slab)
    # would further help v7x (64 MiB VMEM, 2 TCs); not needed at these shapes.

    out = pl.pallas_call(
        _fused_residual_block_kernel,
        out_shape=jax.ShapeDtypeStruct((B, HW, C), x_nchw.dtype),
        grid=grid,
        in_specs=[
            pl.BlockSpec((Bt, H + 2, W + 2, C), lambda b: (b, 0, 0, 0)),
            pl.BlockSpec((9 * C, C), lambda b: (0, 0)),   # weights: constant index map,
            pl.BlockSpec((9 * C, C), lambda b: (0, 0)),   # not re-DMA'd across steps
            pl.BlockSpec((C, Cr), lambda b: (0, 0)),
            pl.BlockSpec((Cr, C), lambda b: (0, 0)),
        ],
        out_specs=pl.BlockSpec((Bt, HW, C), lambda b: (b, 0, 0)),
        scratch_shapes=[pltpu.VMEM((Bt, H + 2, W + 2 * _PAD, C), jnp.float32)],
        compiler_params=pltpu.CompilerParams(dimension_semantics=("parallel",)),
    )(xp, w1m, w2m, fc1m, fc2m)

    return jnp.transpose(out.reshape(B, H, W, C), (0, 3, 1, 2))    # back to NCHW


# ---------------------------------------------------------------------------
# Pure-JAX reference (sanity check only)
# ---------------------------------------------------------------------------
def reference_forward(x, conv1_w, conv2_w, fc1_w, fc2_w):
    def conv3x3(t, w):
        return jax.lax.conv_general_dilated(
            t, w, (1, 1), ((1, 1), (1, 1)),
            dimension_numbers=("NCHW", "OIHW", "NCHW"))

    def inorm(t):
        mu = jnp.mean(t, axis=(2, 3), keepdims=True)
        var = jnp.mean((t - mu) ** 2, axis=(2, 3), keepdims=True)
        return (t - mu) * jax.lax.rsqrt(var + EPS)

    y = jax.nn.relu(inorm(conv3x3(x, conv1_w)))
    y = inorm(conv3x3(y, conv2_w))
    p = jnp.mean(y, axis=(2, 3))                                   # (B, C)
    s = jax.nn.relu(p @ fc1_w.T)
    s = jax.nn.sigmoid(s @ fc2_w.T)
    return y * s[:, :, None, None] + x


# ---------------------------------------------------------------------------
if __name__ == "__main__":
    B, C, H, W = 2, 32, 8, 8          # channels=32, SE reduction=16 -> bottleneck Cr=2
    Cr = max(1, C // 16)

    key = jax.random.PRNGKey(0)
    kx, k1, k2, k3, k4 = jax.random.split(key, 5)

    x = jax.random.normal(kx, (B, C, H, W), jnp.float32)
    conv1_w = 0.1 * jax.random.normal(k1, (C, C, 3, 3), jnp.float32)   # Conv2d(C,C,3,pad=1,bias=False)
    conv2_w = 0.1 * jax.random.normal(k2, (C, C, 3, 3), jnp.float32)
    fc1_w = 0.3 * jax.random.normal(k3, (Cr, C), jnp.float32)          # Linear(C, C//16, bias=False)
    fc2_w = 0.3 * jax.random.normal(k4, (C, Cr), jnp.float32)          # Linear(C//16, C, bias=False)

    out = jax.block_until_ready(residual_block_forward(x, conv1_w, conv2_w, fc1_w, fc2_w))
    ref = jax.block_until_ready(reference_forward(x, conv1_w, conv2_w, fc1_w, fc2_w))

    assert out.shape == (B, C, H, W) and out.dtype == jnp.float32
    assert bool(jnp.all(jnp.isfinite(out)))
    np.testing.assert_allclose(np.asarray(out), np.asarray(ref), atol=5e-2, rtol=5e-2)

    print("KERNEL_OK")
</pallas_src>

<mosaic_0001>
module attributes {stable_mosaic.version = 11 : i64} {
  func.func @_fused_residual_block_kernel(%arg0: i32, %arg1: memref<2x10x10x32xf32, #tpu.memory_space<vmem>>, %arg2: memref<288x32xbf16, #tpu.memory_space<vmem>>, %arg3: memref<288x32xbf16, #tpu.memory_space<vmem>>, %arg4: memref<32x2xf32, #tpu.memory_space<vmem>>, %arg5: memref<2x32xf32, #tpu.memory_space<vmem>>, %arg6: memref<2x64x32xf32, #tpu.memory_space<vmem>>, %arg7: memref<2x10x24x32xf32, #tpu.memory_space<vmem>>) attributes {dimension_semantics = [#tpu.dimension_semantics<parallel>], iteration_bounds = array<i64: 1>, scalar_prefetch = 0 : i64, scratch_operands = 1 : i64, tpu.core_type = #tpu.core_type<tc>, window_params = [{transform_indices = @transform_0, window_bounds = array<i64: 2, 10, 10, 32>}, {pipeline_mode = #tpu.pipeline_mode<synchronous>, transform_indices = @transform_1, window_bounds = array<i64: 288, 32>}, {pipeline_mode = #tpu.pipeline_mode<synchronous>, transform_indices = @transform_2, window_bounds = array<i64: 288, 32>}, {pipeline_mode = #tpu.pipeline_mode<synchronous>, transform_indices = @transform_3, window_bounds = array<i64: 32, 2>}, {pipeline_mode = #tpu.pipeline_mode<synchronous>, transform_indices = @transform_4, window_bounds = array<i64: 2, 32>}, {transform_indices = @transform_5, window_bounds = array<i64: 2, 64, 32>}]} {
    %c0 = arith.constant 0 : index
    %c0_0 = arith.constant 0 : index
    %c0_1 = arith.constant 0 : index
    %c0_2 = arith.constant 0 : index
    %0 = vector.load %arg1[%c0, %c0_0, %c0_1, %c0_2] : memref<2x10x10x32xf32, #tpu.memory_space<vmem>>, vector<2x10x10x32xf32>
    %1 = vector.extract_strided_slice %0 {offsets = [0, 1, 1, 0], sizes = [2, 8, 8, 32], strides = [1, 1, 1, 1]} : vector<2x10x10x32xf32> to vector<2x8x8x32xf32>
    %2 = vector.shape_cast %1 : vector<2x8x8x32xf32> to vector<2x64x32xf32>
    %3 = vector.extract_strided_slice %0 {offsets = [0, 0, 0, 0], sizes = [2, 8, 8, 32], strides = [1, 1, 1, 1]} : vector<2x10x10x32xf32> to vector<2x8x8x32xf32>
    %4 = vector.extract_strided_slice %0 {offsets = [0, 0, 1, 0], sizes = [2, 8, 8, 32], strides = [1, 1, 1, 1]} : vector<2x10x10x32xf32> to vector<2x8x8x32xf32>
    %5 = vector.extract_strided_slice %0 {offsets = [0, 0, 2, 0], sizes = [2, 8, 8, 32], strides = [1, 1, 1, 1]} : vector<2x10x10x32xf32> to vector<2x8x8x32xf32>
    %6 = vector.extract_strided_slice %0 {offsets = [0, 1, 0, 0], sizes = [2, 8, 8, 32], strides = [1, 1, 1, 1]} : vector<2x10x10x32xf32> to vector<2x8x8x32xf32>
    %7 = vector.extract_strided_slice %0 {offsets = [0, 1, 1, 0], sizes = [2, 8, 8, 32], strides = [1, 1, 1, 1]} : vector<2x10x10x32xf32> to vector<2x8x8x32xf32>
    %8 = vector.extract_strided_slice %0 {offsets = [0, 1, 2, 0], sizes = [2, 8, 8, 32], strides = [1, 1, 1, 1]} : vector<2x10x10x32xf32> to vector<2x8x8x32xf32>
    %9 = vector.extract_strided_slice %0 {offsets = [0, 2, 0, 0], sizes = [2, 8, 8, 32], strides = [1, 1, 1, 1]} : vector<2x10x10x32xf32> to vector<2x8x8x32xf32>
    %10 = vector.extract_strided_slice %0 {offsets = [0, 2, 1, 0], sizes = [2, 8, 8, 32], strides = [1, 1, 1, 1]} : vector<2x10x10x32xf32> to vector<2x8x8x32xf32>
    %11 = vector.extract_strided_slice %0 {offsets = [0, 2, 2, 0], sizes = [2, 8, 8, 32], strides = [1, 1, 1, 1]} : vector<2x10x10x32xf32> to vector<2x8x8x32xf32>
    %12 = tpu.concatenate %3, %4, %5, %6, %7, %8, %9, %10, %11 in 3 : vector<2x8x8x32xf32>, vector<2x8x8x32xf32>, vector<2x8x8x32xf32>, vector<2x8x8x32xf32>, vector<2x8x8x32xf32>, vector<2x8x8x32xf32>, vector<2x8x8x32xf32>, vector<2x8x8x32xf32>, vector<2x8x8x32xf32> -> vector<2x8x8x288xf32>
    %13 = vector.shape_cast %12 : vector<2x8x8x288xf32> to vector<128x288xf32>
    %14 = arith.truncf %13 : vector<128x288xf32> to vector<128x288xbf16>
    %c0_3 = arith.constant 0 : index
    %c0_4 = arith.constant 0 : index
    %15 = vector.load %arg2[%c0_3, %c0_4] : memref<288x32xbf16, #tpu.memory_space<vmem>>, vector<288x32xbf16>
    %cst = arith.constant dense<0.000000e+00> : vector<128x32xf32>
    %16 = tpu.matmul %14, %15, %cst {dimension_numbers = #tpu.dot_dimension_numbers<[1], [0], [0], [1], [0, 0, 1, 1], [], []>} : vector<128x288xbf16>, vector<288x32xbf16>, vector<128x32xf32> -> vector<128x32xf32>
    %17 = vector.shape_cast %16 : vector<128x32xf32> to vector<2x64x32xf32>
    %cst_5 = arith.constant dense<0.000000e+00> : vector<2x32xf32>
    %18 = vector.multi_reduction <add>, %17, %cst_5 [1] : vector<2x64x32xf32> to vector<2x32xf32>
    %19 = vector.shape_cast %18 : vector<2x32xf32> to vector<2x1x32xf32>
    %cst_6 = arith.constant 1.562500e-02 : f32
    %20 = vector.broadcast %cst_6 : f32 to vector<2x1x32xf32>
    %21 = arith.mulf %19, %20 : vector<2x1x32xf32>
    %22 = arith.mulf %17, %17 : vector<2x64x32xf32>
    %cst_7 = arith.constant dense<0.000000e+00> : vector<2x32xf32>
    %23 = vector.multi_reduction <add>, %22, %cst_7 [1] : vector<2x64x32xf32> to vector<2x32xf32>
    %24 = vector.shape_cast %23 : vector<2x32xf32> to vector<2x1x32xf32>
    %cst_8 = arith.constant 1.562500e-02 : f32
    %25 = vector.broadcast %cst_8 : f32 to vector<2x1x32xf32>
    %26 = arith.mulf %24, %25 : vector<2x1x32xf32>
    %27 = arith.mulf %21, %21 : vector<2x1x32xf32>
    %28 = arith.subf %26, %27 : vector<2x1x32xf32>
    %cst_9 = arith.constant 0.000000e+00 : f32
    %29 = vector.broadcast %cst_9 : f32 to vector<2x1x32xf32>
    %30 = arith.maximumf %28, %29 : vector<2x1x32xf32>
    %31 = vector.broadcast %21 : vector<2x1x32xf32> to vector<2x64x32xf32>
    %32 = arith.subf %17, %31 : vector<2x64x32xf32>
    %cst_10 = arith.constant 9.99999974E-6 : f32
    %33 = vector.broadcast %cst_10 : f32 to vector<2x1x32xf32>
    %34 = arith.addf %30, %33 : vector<2x1x32xf32>
    %35 = math.rsqrt %34 : vector<2x1x32xf32>
    %36 = vector.broadcast %35 : vector<2x1x32xf32> to vector<2x64x32xf32>
    %37 = arith.mulf %32, %36 : vector<2x64x32xf32>
    %cst_11 = arith.constant 0.000000e+00 : f32
    %38 = vector.broadcast %cst_11 : f32 to vector<2x64x32xf32>
    %39 = arith.maximumf %37, %38 : vector<2x64x32xf32>
    %cst_12 = arith.constant 0.000000e+00 : f32
    %40 = vector.broadcast %cst_12 : f32 to vector<2x10x24x32xf32>
    %c0_13 = arith.constant 0 : index
    %c0_14 = arith.constant 0 : index
    %c0_15 = arith.constant 0 : index
    %c0_16 = arith.constant 0 : index
    %41 = vector.load %arg7[%c0_13, %c0_14, %c0_15, %c0_16] : memref<2x10x24x32xf32, #tpu.memory_space<vmem>>, vector<2x10x24x32xf32>
    tpu.vector_store %arg7[%c0_13, %c0_14, %c0_15, %c0_16], %40 {strides = array<i32>} : memref<2x10x24x32xf32, #tpu.memory_space<vmem>>, vector<2x10x24x32xf32>,
    %42 = vector.shape_cast %39 : vector<2x64x32xf32> to vector<2x8x8x32xf32>
    %c0_17 = arith.constant 0 : index
    %c1 = arith.constant 1 : index
    %c8 = arith.constant 8 : index
    %c0_18 = arith.constant 0 : index
    %43 = vector.load %arg7[%c0_17, %c1, %c8, %c0_18] : memref<2x10x24x32xf32, #tpu.memory_space<vmem>>, vector<2x8x8x32xf32>
    tpu.vector_store %arg7[%c0_17, %c1, %c8, %c0_18], %42 {strides = array<i32>} : memref<2x10x24x32xf32, #tpu.memory_space<vmem>>, vector<2x8x8x32xf32>,
    %c0_19 = arith.constant 0 : index
    %c0_20 = arith.constant 0 : index
    %c0_21 = arith.constant 0 : index
    %c0_22 = arith.constant 0 : index
    %44 = vector.load %arg7[%c0_19, %c0_20, %c0_21, %c0_22] : memref<2x10x24x32xf32, #tpu.memory_space<vmem>>, vector<2x10x24x32xf32>
    %45 = vector.extract_strided_slice %44 {offsets = [0, 0, 7, 0], sizes = [2, 8, 8, 32], strides = [1, 1, 1, 1]} : vector<2x10x24x32xf32> to vector<2x8x8x32xf32>
    %46 = vector.extract_strided_slice %44 {offsets = [0, 0, 8, 0], sizes = [2, 8, 8, 32], strides = [1, 1, 1, 1]} : vector<2x10x24x32xf32> to vector<2x8x8x32xf32>
    %47 = vector.extract_strided_slice %44 {offsets = [0, 0, 9, 0], sizes = [2, 8, 8, 32], strides = [1, 1, 1, 1]} : vector<2x10x24x32xf32> to vector<2x8x8x32xf32>
    %48 = vector.extract_strided_slice %44 {offsets = [0, 1, 7, 0], sizes = [2, 8, 8, 32], strides = [1, 1, 1, 1]} : vector<2x10x24x32xf32> to vector<2x8x8x32xf32>
    %49 = vector.extract_strided_slice %44 {offsets = [0, 1, 8, 0], sizes = [2, 8, 8, 32], strides = [1, 1, 1, 1]} : vector<2x10x24x32xf32> to vector<2x8x8x32xf32>
    %50 = vector.extract_strided_slice %44 {offsets = [0, 1, 9, 0], sizes = [2, 8, 8, 32], strides = [1, 1, 1, 1]} : vector<2x10x24x32xf32> to vector<2x8x8x32xf32>
    %51 = vector.extract_strided_slice %44 {offsets = [0, 2, 7, 0], sizes = [2, 8, 8, 32], strides = [1, 1, 1, 1]} : vector<2x10x24x32xf32> to vector<2x8x8x32xf32>
    %52 = vector.extract_strided_slice %44 {offsets = [0, 2, 8, 0], sizes = [2, 8, 8, 32], strides = [1, 1, 1, 1]} : vector<2x10x24x32xf32> to vector<2x8x8x32xf32>
    %53 = vector.extract_strided_slice %44 {offsets = [0, 2, 9, 0], sizes = [2, 8, 8, 32], strides = [1, 1, 1, 1]} : vector<2x10x24x32xf32> to vector<2x8x8x32xf32>
    %54 = tpu.concatenate %45, %46, %47, %48, %49, %50, %51, %52, %53 in 3 : vector<2x8x8x32xf32>, vector<2x8x8x32xf32>, vector<2x8x8x32xf32>, vector<2x8x8x32xf32>, vector<2x8x8x32xf32>, vector<2x8x8x32xf32>, vector<2x8x8x32xf32>, vector<2x8x8x32xf32>, vector<2x8x8x32xf32> -> vector<2x8x8x288xf32>
    %55 = vector.shape_cast %54 : vector<2x8x8x288xf32> to vector<128x288xf32>
    %56 = arith.truncf %55 : vector<128x288xf32> to vector<128x288xbf16>
    %c0_23 = arith.constant 0 : index
    %c0_24 = arith.constant 0 : index
    %57 = vector.load %arg3[%c0_23, %c0_24] : memref<288x32xbf16, #tpu.memory_space<vmem>>, vector<288x32xbf16>
    %cst_25 = arith.constant dense<0.000000e+00> : vector<128x32xf32>
    %58 = tpu.matmul %56, %57, %cst_25 {dimension_numbers = #tpu.dot_dimension_numbers<[1], [0], [0], [1], [0, 0, 1, 1], [], []>} : vector<128x288xbf16>, vector<288x32xbf16>, vector<128x32xf32> -> vector<128x32xf32>
    %59 = vector.shape_cast %58 : vector<128x32xf32> to vector<2x64x32xf32>
    %cst_26 = arith.constant dense<0.000000e+00> : vector<2x32xf32>
    %60 = vector.multi_reduction <add>, %59, %cst_26 [1] : vector<2x64x32xf32> to vector<2x32xf32>
    %61 = vector.shape_cast %60 : vector<2x32xf32> to vector<2x1x32xf32>
    %cst_27 = arith.constant 1.562500e-02 : f32
    %62 = vector.broadcast %cst_27 : f32 to vector<2x1x32xf32>
    %63 = arith.mulf %61, %62 : vector<2x1x32xf32>
    %64 = arith.mulf %59, %59 : vector<2x64x32xf32>
    %cst_28 = arith.constant dense<0.000000e+00> : vector<2x32xf32>
    %65 = vector.multi_reduction <add>, %64, %cst_28 [1] : vector<2x64x32xf32> to vector<2x32xf32>
    %66 = vector.shape_cast %65 : vector<2x32xf32> to vector<2x1x32xf32>
    %cst_29 = arith.constant 1.562500e-02 : f32
    %67 = vector.broadcast %cst_29 : f32 to vector<2x1x32xf32>
    %68 = arith.mulf %66, %67 : vector<2x1x32xf32>
    %69 = arith.mulf %63, %63 : vector<2x1x32xf32>
    %70 = arith.subf %68, %69 : vector<2x1x32xf32>
    %cst_30 = arith.constant 0.000000e+00 : f32
    %71 = vector.broadcast %cst_30 : f32 to vector<2x1x32xf32>
    %72 = arith.maximumf %70, %71 : vector<2x1x32xf32>
    %73 = vector.broadcast %63 : vector<2x1x32xf32> to vector<2x64x32xf32>
    %74 = arith.subf %59, %73 : vector<2x64x32xf32>
    %cst_31 = arith.constant 9.99999974E-6 : f32
    %75 = vector.broadcast %cst_31 : f32 to vector<2x1x32xf32>
    %76 = arith.addf %72, %75 : vector<2x1x32xf32>
    %77 = math.rsqrt %76 : vector<2x1x32xf32>
    %78 = vector.broadcast %77 : vector<2x1x32xf32> to vector<2x64x32xf32>
    %79 = arith.mulf %74, %78 : vector<2x64x32xf32>
    %cst_32 = arith.constant dense<0.000000e+00> : vector<2x32xf32>
    %80 = vector.multi_reduction <add>, %79, %cst_32 [1] : vector<2x64x32xf32> to vector<2x32xf32>
    %cst_33 = arith.constant 6.400000e+01 : f32
    %81 = vector.broadcast %cst_33 : f32 to vector<2x32xf32>
    %82 = arith.divf %80, %81 : vector<2x32xf32>
    %c0_34 = arith.constant 0 : index
    %c0_35 = arith.constant 0 : index
    %83 = vector.load %arg4[%c0_34, %c0_35] : memref<32x2xf32, #tpu.memory_space<vmem>>, vector<32x2xf32>
    %cst_36 = arith.constant dense<0.000000e+00> : vector<2x2xf32>
    %84 = tpu.matmul %82, %83, %cst_36 {dimension_numbers = #tpu.dot_dimension_numbers<[1], [0], [0], [1], [0, 0, 1, 1], [], []>} : vector<2x32xf32>, vector<32x2xf32>, vector<2x2xf32> -> vector<2x2xf32>
    %cst_37 = arith.constant 0.000000e+00 : f32
    %85 = vector.broadcast %cst_37 : f32 to vector<2x2xf32>
    %86 = arith.maximumf %84, %85 : vector<2x2xf32>
    %c0_38 = arith.constant 0 : index
    %c0_39 = arith.constant 0 : index
    %87 = vector.load %arg5[%c0_38, %c0_39] : memref<2x32xf32, #tpu.memory_space<vmem>>, vector<2x32xf32>
    %cst_40 = arith.constant dense<0.000000e+00> : vector<2x32xf32>
    %88 = tpu.matmul %86, %87, %cst_40 {dimension_numbers = #tpu.dot_dimension_numbers<[1], [0], [0], [1], [0, 0, 1, 1], [], []>} : vector<2x2xf32>, vector<2x32xf32>, vector<2x32xf32> -> vector<2x32xf32>
    %89 = arith.negf %88 : vector<2x32xf32>
    %90 = math.exp %89 : vector<2x32xf32>
    %cst_41 = arith.constant 1.000000e+00 : f32
    %91 = vector.broadcast %cst_41 : f32 to vector<2x32xf32>
    %92 = arith.addf %91, %90 : vector<2x32xf32>
    %93 = arith.divf %91, %92 : vector<2x32xf32>
    %94 = vector.shape_cast %93 : vector<2x32xf32> to vector<2x1x32xf32>
    %95 = vector.broadcast %94 : vector<2x1x32xf32> to vector<2x64x32xf32>
    %96 = arith.mulf %79, %95 : vector<2x64x32xf32>
    %97 = arith.addf %96, %2 : vector<2x64x32xf32>
    %c0_42 = arith.constant 0 : index
    %c0_43 = arith.constant 0 : index
    %c0_44 = arith.constant 0 : index
    %98 = vector.load %arg6[%c0_42, %c0_43, %c0_44] : memref<2x64x32xf32, #tpu.memory_space<vmem>>, vector<2x64x32xf32>
    tpu.vector_store %arg6[%c0_42, %c0_43, %c0_44], %97 {strides = array<i32>} : memref<2x64x32xf32, #tpu.memory_space<vmem>>, vector<2x64x32xf32>,
    return
  }
  func.func @transform_0(%arg0: i32) -> (i32, i32, i32, i32) {
    %c0_i32 = arith.constant 0 : i32
    %c0_i32_0 = arith.constant 0 : i32
    %c0_i32_1 = arith.constant 0 : i32
    %c0_i32_2 = arith.constant 0 : i32
    return %arg0, %c0_i32, %c0_i32_0, %c0_i32_1 : i32, i32, i32, i32
  }
  func.func @transform_1(%arg0: i32) -> (i32, i32) {
    %c0_i32 = arith.constant 0 : i32
    %c0_i32_0 = arith.constant 0 : i32
    %c0_i32_1 = arith.constant 0 : i32
    return %c0_i32, %c0_i32_0 : i32, i32
  }
  func.func @transform_2(%arg0: i32) -> (i32, i32) {
    %c0_i32 = arith.constant 0 : i32
    %c0_i32_0 = arith.constant 0 : i32
    %c0_i32_1 = arith.constant 0 : i32
    return %c0_i32, %c0_i32_0 : i32, i32
  }
  func.func @transform_3(%arg0: i32) -> (i32, i32) {
    %c0_i32 = arith.constant 0 : i32
    %c0_i32_0 = arith.constant 0 : i32
    %c0_i32_1 = arith.constant 0 : i32
    return %c0_i32, %c0_i32_0 : i32, i32
  }
  func.func @transform_4(%arg0: i32) -> (i32, i32) {
    %c0_i32 = arith.constant 0 : i32
    %c0_i32_0 = arith.constant 0 : i32
    %c0_i32_1 = arith.constant 0 : i32
    return %c0_i32, %c0_i32_0 : i32, i32
  }
  func.func @transform_5(%arg0: i32) -> (i32, i32, i32) {
    %c0_i32 = arith.constant 0 : i32
    %c0_i32_0 = arith.constant 0 : i32
    %c0_i32_1 = arith.constant 0 : i32
    return %arg0, %c0_i32, %c0_i32_0 : i32, i32, i32
  }
}

</mosaic_0001>

<bundles_post_ra>
// kernel: residual_block_forward.1
= control target key start
LH: loop header
LB: loop body
LE: loop exit
PB: predicated region body
PF: predicated region fallthrough
CT: control target
= control target key end

     0   :  { %vm217_vm0 = vcmask 1045504   ;;  %s4262_s30 = smov 64   ;;  %vm94_vm1 = vcmask 1046528   ;;  %s4263_s14 = smov 32   ;;  %vm544_vm2 = vcmask 261120   ;;  %s6805_s0 = inlined_call_operand.vmem [shape: f32[2,10,10,32], index: 0, kind: input, shape index: {}]   ;;  %s6806_s1 = inlined_call_operand.vmem [shape: bf16[288,32], index: 1, kind: input, shape index: {}]   ;;  %s6807_s2 = inlined_call_operand.vmem [shape: bf16[288,32], index: 2, kind: input, shape index: {}]   ;;  %s6808_s3 = inlined_call_operand.vmem [shape: f32[32,2], index: 3, kind: input, shape index: {}]   ;;  %s6809_s4 = inlined_call_operand.vmem [shape: f32[2,32], index: 4, kind: input, shape index: {}]   ;;  %s6810_s5 = inlined_call_operand.hbm [shape: f32[2,64,32], index: 5, kind: output, shape index: {}]  }
   0x1   :  { %v4305_v0 = vld [vmem:[%s6805_s0 + $0x20] sm:$0xff]  ;;  %v4310_v1 = vld [vmem:[%s6805_s0 + $0x30] sm:$0xff]  ;;  %v25_v4 = vld [vmem:[%s6805_s0 + $0x18] sm:$0x3]  ;;  %s4264_s15 = smov 96  }
   0x2   :  { %v4315_v2 = vld [vmem:[%s6805_s0 + $0x10] sm:$0xff]  ;;  %v3538_v3 = vpack.i.bf16 %v4310_v1, %v4305_v0  ;;  %v27_v5 = vld [vmem:[%s6805_s0 + $0x28] sm:$0x3]  ;;  %v224_v7 = vrot.slane %v4305_v0, 2  ;;  %v96_v8 = vrot.slane %v25_v4, 1  ;;  %v222_v10 = vrot.slane %v25_v4, 2 }
   0x3   :  { %v221_v6 = vrot.slane %v4315_v2, 2  ;;  %v99_v9 = vrot.slane %v27_v5, 1  ;;  %v225_v11 = vrot.slane %v27_v5, 2  ;;  %v4330_v12 = vld [vmem:[%s6805_s0] sm:$0xff]  ;;  %v23_v13 = vld [vmem:[%s6805_s0 + $0x8] sm:$0x3]  ;;  %v3563_v39 = vpack.i.bf16 %v4305_v0, %v4315_v2 }
   0x4   :  { %3539 = vrot.lane.b32.xlu1 %v3538_v3, %s4262_s30  ;;  %v218_v14 = vrot.slane %v4330_v12, 2  ;;  %v95_v15 = vrot.slane %v4315_v2, 1  ;;  %v163_v16 = vrot.slane %v4330_v12, 1  ;;  %v219_v19 = vrot.slane %v23_v13, 2  ;;  %v29_v21 = vld [vmem:[%s6805_s0 + $0x38] sm:$0x3] }
   0x5   :  { %v223_v17 = vsel %vm217_vm0, %v221_v6, %v222_v10  ;;  %v4341_v18 = vsel %vm217_vm0, %v224_v7, %v225_v11  ;;  %v164_v20 = vrot.slane %v23_v13, 1  ;;  %v98_v24 = vrot.slane %v4305_v0, 1  ;;  %v4355_v26 = vld [vmem:[%s6805_s0 + $0x40] sm:$0xff]  ;;  %v31_v27 = vld [vmem:[%s6805_s0 + $0x48] sm:$0x3]  ;;  %v4388_v43 = vld [vmem:[%s6805_s0 + $0x50] sm:$0xff] }
   0x6   :  { %v3543_v22 = vpack.i.bf16 %v4341_v18, %v223_v17  ;;  %v4348_v23 = vsel %vm94_vm1, %v95_v15, %v96_v8  ;;  %v101_v25 = vrot.slane %v4310_v1, 1  ;;  %v220_v28 = vsel %vm217_vm0, %v218_v14, %v219_v19  ;;  %v33_v44 = vld [vmem:[%s6805_s0 + $0x58] sm:$0x3]  ;;  %v4399_v46 = vld [vmem:[%s6805_s0 + $0x60] sm:$0xff]  ;;  %v35_v52 = vld [vmem:[%s6805_s0 + $0x68] sm:$0x3] }
   0x7   :  { %6857 = vst [vmem:[#allocation6_spill] sm:$0xff] %v4348_v23  ;;  %v165_v29 = vsel %vm94_vm1, %v163_v16, %v164_v20  ;;  %v102_v30 = vrot.slane %v29_v21, 1  ;;  %v3553_v31 = vpack.i.bf16 %v223_v17, %v220_v28  ;;  %v4365_v33 = vsel %vm94_vm1, %v98_v24, %v99_v9  ;;  %v4178_v47 = vld [vmem:[%s6806_s1 + $0x40] sm:$0xff]   ;;  %v4180_v59 = vld [vmem:[%s6806_s1 + $0x48] sm:$0xff]   ;;  %v4438_v4 = vld [vmem:[%s6805_s0 + $0x70] sm:$0xff] }
   0x8   :  { %3544 = vrot.lane.b32.xlu0 %v3543_v22, %s4263_s14  ;;  %v3548_v32 = vpack.i.bf16 %v4348_v23, %v165_v29  ;;  %6858 = vst [vmem:[#allocation7_spill] sm:$0xff] %v4365_v33  ;;  %v227_v34 = vrot.slane %v4310_v1, 2  ;;  %v228_v36 = vrot.slane %v29_v21, 2  ;;  %v230_v37 = vrot.slane %v4355_v26, 2  ;;  %3307 = vmatprep.subr.bf16.mxu0 %v4178_v47  ;;  %v4179_v56 = vld [vmem:[%s6806_s1] sm:$0xff]   ;;  %v4181_v63 = vld [vmem:[%s6806_s1 + $0x8] sm:$0xff]  }
   0x9   :  { %v4369_v35 = vsel %vm94_vm1, %v101_v25, %v102_v30  ;;  %v231_v38 = vrot.slane %v31_v27, 2  ;;  %3554 = vrot.lane.b32.xlu1 %v3553_v31, %s4262_s30  ;;  %v104_v48 = vrot.slane %v4355_v26, 1  ;;  %v105_v49 = vrot.slane %v31_v27, 1  ;;  %3308 = vmatpush3.bf16.msra.mxu0 %v4179_v56  ;;  %v37_v6 = vld [vmem:[%s6805_s0 + $0x78] sm:$0x3]  ;;  %v4182_v7 = vld [vmem:[%s6806_s1 + $0x50] sm:$0xff]  }
   0xa   :  { %6859 = vst [vmem:[#allocation8_spill] sm:$0xff] %v4369_v35  ;;  %v3558_v40 = vpack.i.bf16 %v4369_v35, %v4365_v33  ;;  %v4379_v41 = vsel %vm217_vm0, %v227_v34, %v228_v36  ;;  %v107_v50 = vrot.slane %v4388_v43, 1  ;;  %v108_v51 = vrot.slane %v33_v44, 1  ;;  %3309 = vmatprep.subr.bf16.mxu0 %v4180_v59  ;;  %v4183_v10 = vld [vmem:[%s6806_s1 + $0x10] sm:$0xff]   ;;  %v4184_v11 = vld [vmem:[%s6806_s1 + $0x58] sm:$0xff]   ;;  %v4466_v14 = vld [vmem:[%s6805_s0 + $0x80] sm:$0xff] }
   0xb   :  { %v4382_v42 = vsel %vm217_vm0, %v230_v37, %v231_v38  ;;  %v3583_v53 = vpack.i.bf16 %v4379_v41, %v4341_v18  ;;  %v233_v54 = vrot.slane %v4388_v43, 2  ;;  %v234_v55 = vrot.slane %v33_v44, 2  ;;  %v4185_v20 = vld [vmem:[%s6806_s1 + $0x18] sm:$0xff]   ;;  %v4481_v22 = vld [vmem:[%s6805_s0 + $0x88] sm:$0x3]  ;;  %v4186_v24 = vld [vmem:[%s6806_s1 + $0x60] sm:$0xff]  }
   0xc   :  { %3549 = vrot.lane.b32.xlu0 %v3548_v32, %s4263_s14  ;;  %v3568_v45 = vpack.i.bf16 %v4382_v42, %v4379_v41  ;;  %v3578_v57 = vpack.i.bf16 %v4388_v43, %v4355_v26  ;;  %v236_v58 = vrot.slane %v4399_v46, 2  ;;  %v4424_v60 = vsel %vm94_vm1, %v104_v48, %v105_v49  ;;  %v4489_v25 = vld [vmem:[%s6805_s0 + $0x90] sm:$0xff]  ;;  %v4494_v27 = vld [vmem:[%s6805_s0 + $0x98] sm:$0x3]  ;;  %v4529_v47 = vld [vmem:[%s6805_s0 + $0xc0] sm:$0xff] }
   0xd   :  { %3564 = vrot.lane.b32.xlu1 %v3563_v39, %s4264_s15  ;;  %6860 = vst [vmem:[#allocation9_spill] sm:$0xff] %v4424_v60  ;;  %v4427_v61 = vsel %vm94_vm1, %v107_v50, %v108_v51  ;;  %v237_v62 = vrot.slane %v35_v52, 2  ;;  %v3593_v3 = vpack.i.bf16 %v4355_v26, %v4310_v1  ;;  %v4450_v8 = vsel %vm217_vm0, %v233_v54, %v234_v55  ;;  %v4504_v32 = vld [vmem:[%s6805_s0 + $0xb0] sm:$0xff]  ;;  %v4516_v38 = vld [vmem:[%s6805_s0 + $0xb8] sm:$0x3]  ;;  %v4187_v39 = vld [vmem:[%s6806_s1 + $0x20] sm:$0xff]  }
   0xe   :  { %6861 = vst [vmem:[#allocation10_spill] sm:$0xff] %v4427_v61  ;;  %v3588_v5 = vpack.i.bf16 %v4427_v61, %v4424_v60  ;;  %3310 = vmatpush3.bf16.msra.mxu0 %v4181_v63  ;;  %v110_v13 = vrot.slane %v4399_v46, 1  ;;  %v111_v16 = vrot.slane %v35_v52, 1  ;;  %v113_v17 = vrot.slane %v4438_v4, 1  ;;  %v4534_v48 = vld [vmem:[%s6805_s0 + $0xc8] sm:$0x3] }
   0xf   :  { %v4453_v9 = vsel %vm217_vm0, %v236_v58, %v237_v62  ;;  %3311 = vmatprep.subr.bf16.mxu0 %v4182_v7  ;;  %v114_v19 = vrot.slane %v37_v6, 1  ;;  %v3613_v21 = vpack.i.bf16 %v4450_v8, %v4382_v42  ;;  %v3608_v28 = vpack.i.bf16 %v4438_v4, %v4399_v46  ;;  %v4188_v49 = vld [vmem:[%s6806_s1 + $0x68] sm:$0xff]   ;;  %v4544_v52 = vld [vmem:[%s6805_s0 + $0xa0] sm:$0xff] }
  0x10   :  { %3559 = vrot.lane.b32.xlu0 %v3558_v40, %s4264_s15  ;;  %v3598_v15 = vpack.i.bf16 %v4453_v9, %v4450_v8  ;;  %v239_v29 = vrot.slane %v4438_v4, 2  ;;  %v240_v30 = vrot.slane %v37_v6, 2  ;;  %v362_v31 = vrot.slane %v4466_v14, 2  ;;  %v4192_v56 = vld [vmem:[%s6806_s1 + $0x80] sm:$0xff]   ;;  %v4189_v63 = vld [vmem:[%s6806_s1 + $0x28] sm:$0xff]  }
  0x11   :  { %3574 = vrot.lane.b32.xlu1 %v3558_v40, %s4263_s14  ;;  %v4507_v34 = vsel %vm94_vm1, %v110_v13, %v111_v16  ;;  %v4510_v36 = vsel %vm94_vm1, %v113_v17, %v114_v19  ;;  %v363_v37 = vrot.slane %v4481_v22, 2  ;;  %v3623_v40 = vpack.i.bf16 %v4399_v46, %v4388_v43  ;;  %v4195_v6 = vld [vmem:[%s6806_s1 + $0x88] sm:$0xff]   ;;  %v4587_v16 = vld [vmem:[%s6805_s0 + $0xd8] sm:$0x3]  ;;  %3462 = vmatprep.subr.bf16.mxu1 %v4192_v56 }
  0x12   :  { %3312 = vmatpush3.bf16.msra.mxu0 %v4183_v10  ;;  %6862 = vst [vmem:[#allocation11_spill] sm:$0xff] %v4507_v34  ;;  %6863 = vst [vmem:[#allocation12_spill] sm:$0xff] %v4510_v36  ;;  %v522_v44 = vrot.slane %v4489_v25, 2  ;;  %v116_v50 = vrot.slane %v4466_v14, 1  ;;  %v117_v51 = vrot.slane %v4481_v22, 1  ;;  %v3618_v54 = vpack.i.bf16 %v4510_v36, %v4507_v34  ;;  %3463 = vmatpush3.bf16.msra.mxu1 %v4192_v56  ;;  %v4191_v22 = vld [vmem:[%s6806_s1 + $0x30] sm:$0xff]  }
  0x13   :  { %3313 = vmatprep.subr.bf16.mxu0 %v4184_v11  ;;  %v468_v55 = vrot.slane %v4489_v25, 1  ;;  %v4560_v58 = vsel %vm217_vm0, %v362_v31, %v363_v37  ;;  %v469_v59 = vrot.slane %v4494_v27, 1  ;;  %v245_v62 = vrot.slane %v4504_v32, 2  ;;  %3464 = vmatprep.subr.bf16.mxu1 %v4195_v6 }
  0x14   :  { %3569 = vrot.lane.b32.xlu0 %v3568_v45, %s4263_s14  ;;  %v523_v45 = vrot.slane %v4494_v27, 2  ;;  %v248_v7 = vrot.slane %v4529_v47, 2  ;;  %v249_v10 = vrot.slane %v4534_v48, 2  ;;  %v119_v11 = vrot.slane %v4504_v32, 1 }
  0x15   :  { %3584 = vrot.lane.b32.xlu1 %v3583_v53, %s4262_s30  ;;  %v4549_v53 = vld [vmem:[%s6805_s0 + $0xa8] sm:$0x3]  ;;  %v120_v13 = vrot.slane %v4516_v38, 1  ;;  %v166_v19 = vrot.slane %v4544_v52, 1  ;;  %v122_v31 = vrot.slane %v4529_v47, 1  ;;  %v123_v37 = vrot.slane %v4534_v48, 1 }
  0x16   :  { %3314 = vmatpush3.bf16.msra.mxu0 %v4185_v20  ;;  %v167_v20 = vrot.slane %v4549_v53, 1  ;;  %3465 = vmatpush3.bf16.msra.mxu1 %v4195_v6  ;;  %v645_v48 = vpack.c.bf16 %v4379_v41, %v4341_v18  ;;  %v524_v41 = vsel %vm217_vm0, %v522_v44, %v523_v45  ;;  %v4653_v45 = vld [vmem:[%s6805_s0 + $0xe0] sm:$0xff] }
  0x17   :  { %3315 = vmatprep.subr.bf16.mxu0 %v4186_v24  ;;  %v4626_v56 = vsel %vm94_vm1, %v119_v11, %v120_v13  ;;  %v654_v27 = vpack.c.bf16 %v524_v41, %v4560_v58 }
  0x18   :  { %3579 = vrot.lane.b32.xlu0 %v3578_v57, %s4262_s30  ;;  %v241_v57 = vsel %vm217_vm0, %v239_v29, %v240_v30  ;;  %v4193_v29 = vld [vmem:[%s6806_s1 + $0x78] sm:$0xff]   ;;  %v3638_v30 = vpack.i.bf16 %v4489_v25, %v4466_v14  ;;  %6865 = vst [vmem:[#allocation14_spill] sm:$0xff] %v4626_v56  ;;  %3466 = vmatprep.mubr.msk.bf16.mxu1 %vm544_vm2, %v645_v48 }
  0x19   :  { %3594 = vrot.lane.b32.xlu1 %v3593_v3, %s4264_s15  ;;  %v4190_v3 = vld [vmem:[%s6806_s1 + $0x70] sm:$0xff]   ;;  %v3628_v17 = vpack.i.bf16 %v4560_v58, %v241_v57  ;;  %v3643_v24 = vpack.i.bf16 %v241_v57, %v4453_v9 }
  0x1a   :  { %3316 = vmatpush3.bf16.msra.mxu0 %v4187_v39 }
  0x1b   :  { %3317 = vmatprep.subr.bf16.mxu0 %v4188_v49  ;;  %v4194_v49 = vld [vmem:[%s6806_s1 + $0x38] sm:$0xff]  }
  0x1c   :  { %3589 = vrot.lane.b32.xlu0 %v3588_v5, %s4264_s15 }
  0x1d   :  { %3604 = vrot.lane.b32.xlu1 %v3588_v5, %s4263_s14  ;;  %v246_v5 = vrot.slane %v4516_v38, 2  ;;  %v4609_v38 = vsel %vm94_vm1, %v116_v50, %v117_v51  ;;  %v648_v50 = vpack.c.bf16 %v4450_v8, %v4382_v42  ;;  %v651_v51 = vpack.c.bf16 %v241_v57, %v4453_v9  ;;  %v51_v57 = vld [vmem:[%s6805_s0 + $0xe8] sm:$0x3] }
  0x1e   :  { %3318 = vmatpush3.bf16.msra.mxu0 %v4189_v63  ;;  %6864 = vst [vmem:[#allocation13_spill] sm:$0xff] %v4609_v38  ;;  %v4640_v8 = vsel %vm217_vm0, %v248_v7, %v249_v10 }
  0x1f   :  { %3319 = vmatprep.subr.bf16.mxu0 %v4190_v3  ;;  %3467 = vmatmul.mubr.msk.bf16.vlgmr.msra.gmra.mrb[0].mxu1 %vm544_vm2, %v648_v50  ;;  %v247_v42 = vsel %vm217_vm0, %v245_v62, %v246_v5 }
  0x20   :  { %3599 = vrot.lane.b32.xlu0 %v3598_v15, %s4263_s14  ;;  %v4582_v15 = vld [vmem:[%s6805_s0 + $0xd0] sm:$0xff]  ;;  %3470 = vmatprep.mubr.msk.bf16.mxu1 %vm544_vm2, %v651_v51  ;;  %v3658_v25 = vpack.i.bf16 %v4640_v8, %v247_v42 }
  0x21   :  { %3614 = vrot.lane.b32.xlu1 %v3613_v21, %s4262_s30  ;;  %v242_v21 = vrot.slane %v4544_v52, 2  ;;  %v125_v39 = vrot.slane %v4582_v15, 1 }
  0x22   :  { %3320 = vmatpush3.bf16.msra.mxu0 %v4191_v22 }
  0x23   :  { %3321 = vmatprep.subr.bf16.mxu0 %v4193_v29 }
  0x24   :  { %3609 = vrot.lane.b32.xlu0 %v3608_v28, %s4262_s30  ;;  %v243_v28 = vrot.slane %v4549_v53, 2  ;;  %v470_v53 = vsel %vm94_vm1, %v468_v55, %v469_v59  ;;  %v168_v55 = vsel %vm94_vm1, %v166_v19, %v167_v20 }
  0x25   :  { %3624 = vrot.lane.b32.xlu1 %v3623_v40, %s4264_s15  ;;  %v126_v40 = vrot.slane %v4587_v16, 1  ;;  %v3648_v18 = vpack.i.bf16 %v470_v53, %v4609_v38  ;;  %v3663_v9 = vpack.i.bf16 %v4626_v56, %v168_v55 }
  0x26   :  { %3322 = vmatpush3.bf16.msra.mxu0 %v4194_v49 }
  0x28   :  { %3619 = vrot.lane.b32.xlu0 %v3618_v54, %s4264_s15 }
  0x29   :  { %3634 = vrot.lane.b32.xlu1 %v3618_v54, %s4263_s14  ;;  %v3653_v54 = vpack.i.bf16 %v4466_v14, %v4438_v4  ;;  %v244_v14 = vsel %vm217_vm0, %v242_v21, %v243_v28 }
  0x2a   :  { %v3673_v44 = vpack.i.bf16 %v247_v42, %v244_v14 }
  0x2c   :  { %3629 = vrot.lane.b32.xlu0 %v3628_v17, %s4263_s14 }
  0x2d   :  { %3644 = vrot.lane.b32.xlu1 %v3643_v24, %s4262_s30 }
  0x30   :  { %3639 = vrot.lane.b32.xlu0 %v3638_v30, %s4262_s30 }
  0x31   :  { %3654 = vrot.lane.b32.xlu1 %v3653_v54, %s4264_s15 }
  0x34   :  { %3649 = vrot.lane.b32.xlu0 %v3648_v18, %s4264_s15 }
  0x35   :  { %3664 = vrot.lane.b32.xlu1 %v3663_v9, %s4263_s14 }
  0x36   :  { %10 = vsyncpa [#allocation4], 0  ;;  %v3668_v58 = vpack.i.bf16 %v4582_v15, %v4529_v47  ;;  %v4662_v59 = vsel %vm94_vm1, %v122_v31, %v123_v37  ;;  %v251_v62 = vrot.slane %v4582_v15, 2  ;;  %3471 = vmatmul.mubr.msk.bf16.gmra.mrb[4].mxu1 %vm544_vm2, %v654_v27  ;;  %v4667_v63 = vsel %vm94_vm1, %v125_v39, %v126_v40  ;;  %v53_v17 = vld [vmem:[%s6805_s0 + $0xf8] sm:$0x3]  ;;  %v4696_v29 = vld [vmem:[%s6805_s0 + $0x100] sm:$0xff] }
  0x37   :  { %6866 = vst [vmem:[#allocation15_spill] sm:$0xff] %v4662_v59  ;;  %6867 = vst [vmem:[#allocation16_spill] sm:$0xff] %v4667_v63  ;;  %v252_v3 = vrot.slane %v4587_v16, 2  ;;  %v254_v5 = vrot.slane %v4653_v45, 2  ;;  %v255_v6 = vrot.slane %v51_v57, 2  ;;  %v3683_v7 = vpack.i.bf16 %v4529_v47, %v4504_v32  ;;  %v4683_v16 = vld [vmem:[%s6805_s0 + $0xf0] sm:$0xff] }
  0x38   :  { %3659 = vrot.lane.b32.xlu0 %v3658_v25, %s4263_s14  ;;  %v3678_v10 = vpack.i.bf16 %v4667_v63, %v4662_v59  ;;  %v128_v20 = vrot.slane %v4653_v45, 1  ;;  %v129_v21 = vrot.slane %v51_v57, 1  ;;  %v131_v22 = vrot.slane %v4683_v16, 1  ;;  %v55_v30 = vld [vmem:[%s6805_s0 + $0x108] sm:$0x3]  ;;  %v4724_v18 = vld [vmem:[%s6805_s0 + $0x110] sm:$0xff] }
  0x39   :  { %3674 = vrot.lane.b32.xlu1 %v3673_v44, %s4262_s30  ;;  %v253_v11 = vsel %vm217_vm0, %v251_v62, %v252_v3  ;;  %v256_v13 = vsel %vm217_vm0, %v254_v5, %v255_v6  ;;  %v132_v24 = vrot.slane %v53_v17, 1  ;;  %v3698_v31 = vpack.i.bf16 %v4683_v16, %v4653_v45  ;;  %v57_v41 = vld [vmem:[%s6805_s0 + $0x118] sm:$0x3]  ;;  %v58_v42 = vld [vmem:[%s6805_s0 + $0x120] sm:$0xff]  ;;  %v59_v9 = vld [vmem:[%s6805_s0 + $0x128] sm:$0x3] }
  0x3a   :  { %v3688_v19 = vpack.i.bf16 %v256_v13, %v253_v11  ;;  %v3703_v28 = vpack.i.bf16 %v253_v11, %v4640_v8  ;;  %v4705_v37 = vsel %vm94_vm1, %v128_v20, %v129_v21  ;;  %v257_v39 = vrot.slane %v4683_v16, 2  ;;  %v60_v14 = vld [vmem:[%s6805_s0 + $0x130] sm:$0xff]  ;;  %v61_v27 = vld [vmem:[%s6805_s0 + $0x138] sm:$0x3] }
  0x3b   :  { %6868 = vst [vmem:[#allocation17_spill] sm:$0xff] %v4705_v37  ;;  %v4709_v40 = vsel %vm94_vm1, %v131_v22, %v132_v24  ;;  %v258_v49 = vrot.slane %v53_v17, 2  ;;  %v260_v53 = vrot.slane %v4696_v29, 2  ;;  %v261_v48 = vrot.slane %v55_v30, 2 }
  0x3c   :  { %3669 = vrot.lane.b32.xlu0 %v3668_v58, %s4262_s30  ;;  %6869 = vst [vmem:[#allocation18_spill] sm:$0xff] %v4709_v40  ;;  %v3713_v50 = vpack.i.bf16 %v4653_v45, %v4582_v15  ;;  %v3708_v51 = vpack.i.bf16 %v4709_v40, %v4705_v37  ;;  %v657_v25 = vpack.c.bf16 %v253_v11, %v4640_v8  ;;  %v525_v58 = vrot.slane %v60_v14, 2 }
  0x3d   :  { %3684 = vrot.lane.b32.xlu1 %v3683_v7, %s4264_s15  ;;  %v259_v54 = vsel %vm217_vm0, %v257_v39, %v258_v49  ;;  %v262_v55 = vsel %vm217_vm0, %v260_v53, %v261_v48  ;;  %v526_v62 = vrot.slane %v61_v27, 2  ;;  %v134_v3 = vrot.slane %v4696_v29, 1 }
  0x3e   :  { %v660_v44 = vpack.c.bf16 %v259_v54, %v256_v13  ;;  %v3718_v57 = vpack.i.bf16 %v262_v55, %v259_v54  ;;  %v135_v5 = vrot.slane %v55_v30, 1  ;;  %v137_v6 = vrot.slane %v4724_v18, 1  ;;  %3474 = vmatprep.mubr.msk.bf16.mxu1 %vm544_vm2, %v657_v25 }
  0x3f   :  { %v138_v7 = vrot.slane %v57_v41, 1  ;;  %v365_v17 = vrot.slane %v58_v42, 2  ;;  %v263_v8 = vrot.slane %v4724_v18, 2  ;;  %v264_v11 = vrot.slane %v57_v41, 2 }
  0x40   :  { %3679 = vrot.lane.b32.xlu0 %v3678_v10, %s4264_s15  ;;  %3475 = vmatmul.mubr.msk.bf16.gmra.mrb[8].mxu1 %vm544_vm2, %v660_v44  ;;  %v3728_v20 = vpack.i.bf16 %v4724_v18, %v4696_v29  ;;  %v527_v21 = vsel %vm217_vm0, %v525_v58, %v526_v62  ;;  %v4754_v22 = vsel %vm94_vm1, %v134_v3, %v135_v5  ;;  %v140_v48 = vrot.slane %v58_v42, 1 }
  0x41   :  { %3694 = vrot.lane.b32.xlu1 %v3678_v10, %s4263_s14  ;;  %v3733_v10 = vpack.i.bf16 %v259_v54, %v256_v13  ;;  %6870 = vst [vmem:[#allocation19_spill] sm:$0xff] %v4754_v22  ;;  %v4757_v24 = vsel %vm94_vm1, %v137_v6, %v138_v7  ;;  %v3743_v13 = vpack.i.bf16 %v4696_v29, %v4683_v16  ;;  %v472_v54 = vrot.slane %v61_v27, 1 }
  0x42   :  { %6871 = vst [vmem:[#allocation20_spill] sm:$0xff] %v4757_v24  ;;  %v265_v30 = vsel %vm217_vm0, %v263_v8, %v264_v11  ;;  %v3738_v39 = vpack.i.bf16 %v4757_v24, %v4754_v22  ;;  %v3758_v25 = vpack.i.bf16 %v60_v14, %v58_v42  ;;  %v3773_v58 = vpack.i.bf16 %v58_v42, %v4724_v18 }
  0x43   :  { %v663_v49 = vpack.c.bf16 %v265_v30, %v262_v55  ;;  %v3763_v41 = vpack.i.bf16 %v265_v30, %v262_v55  ;;  %vm561_vm3 = vcmask 523264   ;;  %vm578_vm4 = vcmask 785408  }
  0x44   :  { %3689 = vrot.lane.b32.xlu0 %v3688_v19, %s4263_s14  ;;  %v366_v19 = vrot.slane %v59_v9, 2  ;;  %vm2218_vm5 = vcmask 1040384   ;;  %vm4267_vm6 = vmmov 0   ;;  %vm2994_vm7 = vcmask 1041409  }
  0x45   :  { %3704 = vrot.lane.b32.xlu1 %v3703_v28, %s4262_s30  ;;  %3478 = vmatprep.mubr.msk.bf16.mxu1 %vm544_vm2, %v663_v49  ;;  %vm3074_vm8 = vcmask 1041408   ;;  %vm3070_vm9 = vcmask 15360  }
  0x46   :  { %v367_v28 = vsel %vm217_vm0, %v365_v17, %v366_v19 }
  0x47   :  { %v3748_v53 = vpack.i.bf16 %v367_v28, %v265_v30 }
  0x48   :  { %3699 = vrot.lane.b32.xlu0 %v3698_v31, %s4262_s30  ;;  %v666_v31 = vpack.c.bf16 %v527_v21, %v367_v28 }
  0x49   :  { %3714 = vrot.lane.b32.xlu1 %v3713_v50, %s4264_s15  ;;  %v141_v50 = vrot.slane %v59_v9, 1 }
  0x4a   :  { %3479 = vmatmul.mubr.msk.bf16.gmra.mrb[12].mxu1 %vm544_vm2, %v666_v31 }
  0x4b   :  { %v4774_v44 = vsel %vm94_vm1, %v140_v48, %v141_v50 }
  0x4c   :  { %3709 = vrot.lane.b32.xlu0 %v3708_v51, %s4264_s15  ;;  %6872 = vst [vmem:[#allocation21_spill] sm:$0xff] %v4774_v44 }
  0x4d   :  { %3724 = vrot.lane.b32.xlu1 %v3708_v51, %s4263_s14  ;;  %v471_v51 = vrot.slane %v60_v14, 1 }
  0x50   :  { %3719 = vrot.lane.b32.xlu0 %v3718_v57, %s4263_s14  ;;  %v473_v57 = vsel %vm94_vm1, %v471_v51, %v472_v54 }
  0x51   :  { %3734 = vrot.lane.b32.xlu1 %v3733_v10, %s4262_s30  ;;  %v3768_v9 = vpack.i.bf16 %v473_v57, %v4774_v44 }
  0x54   :  { %3729 = vrot.lane.b32.xlu0 %v3728_v20, %s4262_s30 }
  0x55   :  { %3744 = vrot.lane.b32.xlu1 %v3743_v13, %s4264_s15 }
  0x58   :  { %3739 = vrot.lane.b32.xlu0 %v3738_v39, %s4264_s15 }
  0x59   :  { %3754 = vrot.lane.b32.xlu1 %v3738_v39, %s4263_s14 }
  0x5c   :  { %3749 = vrot.lane.b32.xlu0 %v3748_v53, %s4263_s14 }
  0x5d   :  { %3764 = vrot.lane.b32.xlu1 %v3763_v41, %s4262_s30 }
  0x60   :  { %3759 = vrot.lane.b32.xlu0 %v3758_v25, %s4262_s30 }
  0x61   :  { %3774 = vrot.lane.b32.xlu1 %v3773_v58, %s4264_s15 }
  0x64   :  { %3769 = vrot.lane.b32.xlu0 %v3768_v9, %s4264_s15 }
  0x76   :  { %v3540_v55 = vpop.permute.xlu1 %3539 }
  0x77   :  { %v3542_v42 = vunpack.i.h.bf16 %v3540_v55  ;;  %v3541_v19 = vunpack.i.l.bf16 %v3540_v55 }
  0x7a   :  { %v3545_v27 = vpop.permute.xlu0 %3544 }
  0x7b   :  { %v3547_v14 = vunpack.i.h.bf16 %v3545_v27  ;;  %v3546_v62 = vunpack.i.l.bf16 %v3545_v27  ;;  %v3555_v3 = vpop.permute.xlu1 %3554 }
  0x7c   :  { %v3557_v5 = vunpack.i.h.bf16 %v3555_v3  ;;  %v3556_v6 = vunpack.i.l.bf16 %v3555_v3 }
  0x7d   :  { %v595_v11 = vsel %vm544_vm2, %v4348_v23, %v3546_v62  ;;  %v596_v20 = vsel %vm544_vm2, %v4365_v33, %v3547_v14 }
  0x7e   :  { %v3550_v7 = vpop.permute.xlu0 %3549  ;;  %v611_v51 = vsel %vm561_vm3, %v595_v11, %v3541_v19  ;;  %v612_v54 = vsel %vm561_vm3, %v596_v20, %v3542_v42 }
  0x7f   :  { %v3552_v10 = vunpack.i.h.bf16 %v3550_v7  ;;  %v3551_v17 = vunpack.i.l.bf16 %v3550_v7  ;;  %v3565_v8 = vpop.permute.xlu1 %3564 }
  0x80   :  { %v3567_v28 = vunpack.i.h.bf16 %v3565_v8  ;;  %v3566_v30 = vunpack.i.l.bf16 %v3565_v8 }
  0x81   :  { %v546_v21 = vsel %vm544_vm2, %v4315_v2, %v3552_v10  ;;  %v545_v13 = vsel %vm544_vm2, %v4330_v12, %v3551_v17 }
  0x82   :  { %v3560_v31 = vpop.permute.xlu0 %3559  ;;  %v562_v39 = vsel %vm561_vm3, %v545_v13, %v3556_v6  ;;  %v563_v49 = vsel %vm561_vm3, %v546_v21, %v3557_v5 }
  0x83   :  { %v3562_v53 = vunpack.i.h.bf16 %v3560_v31  ;;  %v3561_v48 = vunpack.i.l.bf16 %v3560_v31  ;;  %v3575_v50 = vpop.permute.xlu1 %3574  ;;  %v579_v41 = vsel %vm578_vm4, %v562_v39, %v3566_v30  ;;  %v580_v2 = vsel %vm578_vm4, %v563_v49, %v3567_v28 }
  0x84   :  { %v643_v9 = vpack.c.bf16 %v580_v2, %v579_v41  ;;  %v3577_v55 = vunpack.i.h.bf16 %v3575_v50  ;;  %v3576_v27 = vunpack.i.l.bf16 %v3575_v50 }
  0x85   :  { %v627_v12 = vsel %vm578_vm4, %v611_v51, %v3561_v48  ;;  %v628_v25 = vsel %vm578_vm4, %v612_v54, %v3562_v53 }
  0x86   :  { %v3570_v57 = vpop.permute.xlu0 %3569  ;;  %v644_v58 = vpack.c.bf16 %v628_v25, %v627_v12  ;;  %v548_v10 = vsel %vm544_vm2, %v4310_v1, %v3577_v55  ;;  %v547_v17 = vsel %vm544_vm2, %v4305_v0, %v3576_v27 }
  0x87   :  { %v3585_v14 = vpop.permute.xlu1 %3584  ;;  %v3572_v62 = vunpack.i.h.bf16 %v3570_v57  ;;  %v3571_v3 = vunpack.i.l.bf16 %v3570_v57 }
  0x88   :  { %867 = vmatprep.mubr.bf16.mxu0 %v644_v58  ;;  %v3587_v6 = vunpack.i.h.bf16 %v3585_v14  ;;  %v3586_v7 = vunpack.i.l.bf16 %v3585_v14 }
  0x89   :  { %868 = vmatmul.mubr.bf16.vlgmr.msra.gmra.mrb[0].mxu0 %v643_v9  ;;  %v598_v21 = vsel %vm544_vm2, %v4424_v60, %v3572_v62  ;;  %v597_v13 = vsel %vm544_vm2, %v4369_v35, %v3571_v3 }
  0x8a   :  { %v3580_v5 = vpop.permute.xlu0 %3579  ;;  %v564_v39 = vsel %vm561_vm3, %v547_v17, %v3586_v7  ;;  %v565_v1 = vsel %vm561_vm3, %v548_v10, %v3587_v6 }
  0x8b   :  { %v3582_v42 = vunpack.i.h.bf16 %v3580_v5  ;;  %v3581_v19 = vunpack.i.l.bf16 %v3580_v5  ;;  %v3595_v8 = vpop.permute.xlu1 %3594 }
  0x8c   :  { %v3597_v11 = vunpack.i.h.bf16 %v3595_v8  ;;  %v3596_v20 = vunpack.i.l.bf16 %v3595_v8 }
  0x8d   :  { %v613_v0 = vsel %vm561_vm3, %v597_v13, %v3581_v19  ;;  %v614_v53 = vsel %vm561_vm3, %v598_v21, %v3582_v42 }
  0x8e   :  { %v3590_v28 = vpop.permute.xlu0 %3589  ;;  %v581_v48 = vsel %vm578_vm4, %v564_v39, %v3596_v20  ;;  %v582_v50 = vsel %vm578_vm4, %v565_v1, %v3597_v11 }
  0x8f   :  { %v3592_v30 = vunpack.i.h.bf16 %v3590_v28  ;;  %v3591_v31 = vunpack.i.l.bf16 %v3590_v28  ;;  %v3605_v49 = vpop.permute.xlu1 %3604  ;;  %v646_v12 = vpack.c.bf16 %v582_v50, %v581_v48 }
  0x90   :  { %v3607_v25 = vunpack.i.h.bf16 %v3605_v49  ;;  %v3606_v57 = vunpack.i.l.bf16 %v3605_v49 }
  0x91   :  { %v629_v51 = vsel %vm578_vm4, %v613_v0, %v3591_v31  ;;  %v630_v54 = vsel %vm578_vm4, %v614_v53, %v3592_v30 }
  0x92   :  { %v3600_v41 = vpop.permute.xlu0 %3599  ;;  %v647_v2 = vpack.c.bf16 %v630_v54, %v629_v51  ;;  %v550_v3 = vsel %vm544_vm2, %v4388_v43, %v3607_v25  ;;  %v549_v5 = vsel %vm544_vm2, %v4355_v26, %v3606_v57 }
  0x93   :  { %v3615_v58 = vpop.permute.xlu1 %3614  ;;  %v3602_v9 = vunpack.i.h.bf16 %v3600_v41  ;;  %v3601_v55 = vunpack.i.l.bf16 %v3600_v41 }
  0x94   :  { %875 = vmatprep.mubr.bf16.mxu0 %v647_v2  ;;  %v3617_v14 = vunpack.i.h.bf16 %v3615_v58  ;;  %v3616_v62 = vunpack.i.l.bf16 %v3615_v58 }
  0x95   :  { %876 = vmatmul.mubr.bf16.gmra.mrb[4].mxu0 %v646_v12  ;;  %v600_v19 = vsel %vm544_vm2, %v4507_v34, %v3602_v9  ;;  %v599_v8 = vsel %vm544_vm2, %v4427_v61, %v3601_v55 }
  0x96   :  { %v3610_v27 = vpop.permute.xlu0 %3609  ;;  %v566_v13 = vsel %vm561_vm3, %v549_v5, %v3616_v62  ;;  %v567_v43 = vsel %vm561_vm3, %v550_v3, %v3617_v14 }
  0x97   :  { %v3612_v6 = vunpack.i.h.bf16 %v3610_v27  ;;  %v3611_v7 = vunpack.i.l.bf16 %v3610_v27  ;;  %v3625_v10 = vpop.permute.xlu1 %3624 }
  0x98   :  { %v3627_v17 = vunpack.i.h.bf16 %v3625_v10  ;;  %v3626_v42 = vunpack.i.l.bf16 %v3625_v10 }
  0x99   :  { %v615_v26 = vsel %vm561_vm3, %v599_v8, %v3611_v7  ;;  %v616_v30 = vsel %vm561_vm3, %v600_v19, %v3612_v6 }
  0x9a   :  { %v3620_v11 = vpop.permute.xlu0 %3619  ;;  %v583_v31 = vsel %vm578_vm4, %v566_v13, %v3626_v42  ;;  %v584_v39 = vsel %vm578_vm4, %v567_v43, %v3627_v17 }
  0x9b   :  { %v3622_v20 = vunpack.i.h.bf16 %v3620_v11  ;;  %v3621_v21 = vunpack.i.l.bf16 %v3620_v11  ;;  %v3635_v28 = vpop.permute.xlu1 %3634  ;;  %v649_v48 = vpack.c.bf16 %v584_v39, %v583_v31 }
  0x9c   :  { %v3637_v50 = vunpack.i.h.bf16 %v3635_v28  ;;  %v3636_v51 = vunpack.i.l.bf16 %v3635_v28 }
  0x9d   :  { %v631_v1 = vsel %vm578_vm4, %v615_v26, %v3621_v21  ;;  %v632_v49 = vsel %vm578_vm4, %v616_v30, %v3622_v20 }
  0x9e   :  { %v3630_v0 = vpop.permute.xlu0 %3629  ;;  %v650_v53 = vpack.c.bf16 %v632_v49, %v631_v1  ;;  %v552_v58 = vsel %vm544_vm2, %v4438_v4, %v3637_v50  ;;  %v551_v9 = vsel %vm544_vm2, %v4399_v46, %v3636_v51 }
  0x9f   :  { %v3645_v54 = vpop.permute.xlu1 %3644  ;;  %v3632_v41 = vunpack.i.h.bf16 %v3630_v0  ;;  %v3631_v2 = vunpack.i.l.bf16 %v3630_v0 }
  0xa0   :  { %883 = vmatprep.mubr.bf16.mxu0 %v650_v53  ;;  %v3647_v25 = vunpack.i.h.bf16 %v3645_v54  ;;  %v3646_v57 = vunpack.i.l.bf16 %v3645_v54 }
  0xa1   :  { %884 = vmatmul.mubr.bf16.gmra.mrb[8].mxu0 %v649_v48  ;;  %v602_v5 = vsel %vm544_vm2, %v4609_v38, %v3632_v41  ;;  %v601_v6 = vsel %vm544_vm2, %v4510_v36, %v3631_v2 }
  0xa2   :  { %v3640_v12 = vpop.permute.xlu0 %3639  ;;  %v568_v42 = vsel %vm561_vm3, %v551_v9, %v3646_v57  ;;  %v569_v4 = vsel %vm561_vm3, %v552_v58, %v3647_v25 }
  0xa3   :  { %v3642_v55 = vunpack.i.h.bf16 %v3640_v12  ;;  %v3641_v27 = vunpack.i.l.bf16 %v3640_v12  ;;  %v3655_v14 = vpop.permute.xlu1 %3654 }
  0xa4   :  { %v3657_v62 = vunpack.i.h.bf16 %v3655_v14  ;;  %v3656_v3 = vunpack.i.l.bf16 %v3655_v14 }
  0xa5   :  { %v617_v46 = vsel %vm561_vm3, %v601_v6, %v3641_v27  ;;  %v618_v8 = vsel %vm561_vm3, %v602_v5, %v3642_v55 }
  0xa6   :  { %v3650_v7 = vpop.permute.xlu0 %3649  ;;  %v585_v11 = vsel %vm578_vm4, %v568_v42, %v3656_v3  ;;  %v586_v20 = vsel %vm578_vm4, %v569_v4, %v3657_v62 }
  0xa7   :  { %v3652_v10 = vunpack.i.h.bf16 %v3650_v7  ;;  %v3651_v17 = vunpack.i.l.bf16 %v3650_v7  ;;  %v3665_v19 = vpop.permute.xlu1 %3664  ;;  %v652_v1 = vpack.c.bf16 %v586_v20, %v585_v11 }
  0xa8   :  { %v3667_v21 = vunpack.i.h.bf16 %v3665_v19  ;;  %v3666_v13 = vunpack.i.l.bf16 %v3665_v19 }
  0xa9   :  { %v633_v43 = vsel %vm578_vm4, %v617_v46, %v3651_v17  ;;  %v634_v28 = vsel %vm578_vm4, %v618_v8, %v3652_v10 }
  0xaa   :  { %v3660_v26 = vpop.permute.xlu0 %3659  ;;  %v653_v30 = vpack.c.bf16 %v634_v28, %v633_v43  ;;  %v554_v0 = vsel %vm544_vm2, %v4504_v32, %v3667_v21  ;;  %v553_v53 = vsel %vm544_vm2, %v4544_v52, %v3666_v13 }
  0xab   :  { %v3662_v31 = vunpack.i.h.bf16 %v3660_v26  ;;  %v3661_v39 = vunpack.i.l.bf16 %v3660_v26  ;;  %v3675_v49 = vpop.permute.xlu1 %3674 }
  0xac   :  { %891 = vmatprep.mubr.bf16.mxu0 %v653_v30  ;;  %v3677_v48 = vunpack.i.h.bf16 %v3675_v49  ;;  %v3676_v50 = vunpack.i.l.bf16 %v3675_v49 }
  0xad   :  { %892 = vmatmul.mubr.bf16.gmra.mrb[12].mxu0 %v652_v1  ;;  %v604_v54 = vsel %vm544_vm2, %v4662_v59, %v3662_v31  ;;  %v603_v41 = vsel %vm544_vm2, %v4626_v56, %v3661_v39 }
  0xae   :  { %v3670_v51 = vpop.permute.xlu0 %3669  ;;  %v570_v57 = vsel %vm561_vm3, %v553_v53, %v3676_v50  ;;  %v571_v32 = vsel %vm561_vm3, %v554_v0, %v3677_v48 }
  0xaf   :  { %v3672_v2 = vunpack.i.h.bf16 %v3670_v51  ;;  %v3671_v12 = vunpack.i.l.bf16 %v3670_v51  ;;  %v3685_v25 = vpop.permute.xlu1 %3684 }
  0xb0   :  { %v3687_v58 = vunpack.i.h.bf16 %v3685_v25  ;;  %v3686_v9 = vunpack.i.l.bf16 %v3685_v25 }
  0xb1   :  { %v619_v55 = vsel %vm561_vm3, %v603_v41, %v3671_v12  ;;  %v620_v27 = vsel %vm561_vm3, %v604_v54, %v3672_v2 }
  0xb2   :  { %v3680_v52 = vpop.permute.xlu0 %3679  ;;  %v587_v3 = vsel %vm578_vm4, %v570_v57, %v3686_v9  ;;  %v588_v5 = vsel %vm578_vm4, %v571_v32, %v3687_v58 }
  0xb3   :  { %v3682_v14 = vunpack.i.h.bf16 %v3680_v52  ;;  %v3681_v62 = vunpack.i.l.bf16 %v3680_v52  ;;  %v3695_v6 = vpop.permute.xlu1 %3694  ;;  %v655_v7 = vpack.c.bf16 %v588_v5, %v587_v3 }
  0xb4   :  { %v3697_v10 = vunpack.i.h.bf16 %v3695_v6  ;;  %v3696_v17 = vunpack.i.l.bf16 %v3695_v6 }
  0xb5   :  { %v635_v42 = vsel %vm578_vm4, %v619_v55, %v3681_v62  ;;  %v636_v4 = vsel %vm578_vm4, %v620_v27, %v3682_v14 }
  0xb6   :  { %v3690_v19 = vpop.permute.xlu0 %3689  ;;  %v656_v46 = vpack.c.bf16 %v636_v4, %v635_v42  ;;  %v556_v21 = vsel %vm544_vm2, %v4582_v15, %v3697_v10  ;;  %v555_v13 = vsel %vm544_vm2, %v4529_v47, %v3696_v17 }
  0xb7   :  { %v3692_v8 = vunpack.i.h.bf16 %v3690_v19  ;;  %v3691_v11 = vunpack.i.l.bf16 %v3690_v19  ;;  %v3705_v20 = vpop.permute.xlu1 %3704 }
  0xb8   :  { %899 = vmatprep.mubr.bf16.mxu0 %v656_v46  ;;  %v3707_v43 = vunpack.i.h.bf16 %v3705_v20  ;;  %v3706_v28 = vunpack.i.l.bf16 %v3705_v20 }
  0xb9   :  { %900 = vmatmul.mubr.bf16.gmra.mrb[16].mxu0 %v655_v7  ;;  %v606_v30 = vsel %vm544_vm2, %v4705_v37, %v3692_v8  ;;  %v605_v31 = vsel %vm544_vm2, %v4667_v63, %v3691_v11 }
  0xba   :  { %v3700_v26 = vpop.permute.xlu0 %3699  ;;  %v572_v49 = vsel %vm561_vm3, %v555_v13, %v3706_v28  ;;  %v573_v0 = vsel %vm561_vm3, %v556_v21, %v3707_v43 }
  0xbb   :  { %v3702_v39 = vunpack.i.h.bf16 %v3700_v26  ;;  %v3701_v1 = vunpack.i.l.bf16 %v3700_v26  ;;  %v3715_v15 = vpop.permute.xlu1 %3714 }
  0xbc   :  { %v3717_v53 = vunpack.i.h.bf16 %v3715_v15  ;;  %v3716_v48 = vunpack.i.l.bf16 %v3715_v15 }
  0xbd   :  { %v621_v47 = vsel %vm561_vm3, %v605_v31, %v3701_v1  ;;  %v622_v50 = vsel %vm561_vm3, %v606_v30, %v3702_v39 }
  0xbe   :  { %v3710_v51 = vpop.permute.xlu0 %3709  ;;  %v589_v2 = vsel %vm578_vm4, %v572_v49, %v3716_v48  ;;  %v590_v12 = vsel %vm578_vm4, %v573_v0, %v3717_v53 }
  0xbf   :  { %v3712_v54 = vunpack.i.h.bf16 %v3710_v51  ;;  %v3711_v41 = vunpack.i.l.bf16 %v3710_v51  ;;  %v3725_v25 = vpop.permute.xlu1 %3724  ;;  %v658_v57 = vpack.c.bf16 %v590_v12, %v589_v2 }
  0xc0   :  { %v3727_v32 = vunpack.i.h.bf16 %v3725_v25  ;;  %v3726_v58 = vunpack.i.l.bf16 %v3725_v25 }
  0xc1   :  { %v637_v9 = vsel %vm578_vm4, %v621_v47, %v3711_v41  ;;  %v638_v52 = vsel %vm578_vm4, %v622_v50, %v3712_v54 }
  0xc2   :  { %v3720_v55 = vpop.permute.xlu0 %3719  ;;  %v659_v27 = vpack.c.bf16 %v638_v52, %v637_v9  ;;  %v558_v5 = vsel %vm544_vm2, %v4683_v16, %v3727_v32  ;;  %v557_v6 = vsel %vm544_vm2, %v4653_v45, %v3726_v58 }
  0xc3   :  { %v3722_v14 = vunpack.i.h.bf16 %v3720_v55  ;;  %v3721_v62 = vunpack.i.l.bf16 %v3720_v55  ;;  %v3735_v3 = vpop.permute.xlu1 %3734 }
  0xc4   :  { %907 = vmatprep.mubr.bf16.mxu0 %v659_v27  ;;  %v3737_v7 = vunpack.i.h.bf16 %v3735_v3  ;;  %v3736_v10 = vunpack.i.l.bf16 %v3735_v3 }
  0xc5   :  { %908 = vmatmul.mubr.bf16.gmra.mrb[20].mxu0 %v658_v57  ;;  %v608_v42 = vsel %vm544_vm2, %v4754_v22, %v3722_v14  ;;  %v607_v4 = vsel %vm544_vm2, %v4709_v40, %v3721_v62 }
  0xc6   :  { %v3730_v17 = vpop.permute.xlu0 %3729  ;;  %v574_v8 = vsel %vm561_vm3, %v557_v6, %v3736_v10  ;;  %v575_v11 = vsel %vm561_vm3, %v558_v5, %v3737_v7 }
  0xc7   :  { %v3732_v19 = vunpack.i.h.bf16 %v3730_v17  ;;  %v3731_v46 = vunpack.i.l.bf16 %v3730_v17  ;;  %v3745_v16 = vpop.permute.xlu1 %3744 }
  0xc8   :  { %v3747_v20 = vunpack.i.h.bf16 %v3745_v16  ;;  %v3746_v21 = vunpack.i.l.bf16 %v3745_v16 }
  0xc9   :  { %v623_v45 = vsel %vm561_vm3, %v607_v4, %v3731_v46  ;;  %v624_v13 = vsel %vm561_vm3, %v608_v42, %v3732_v19 }
  0xca   :  { %v3740_v43 = vpop.permute.xlu0 %3739  ;;  %v591_v30 = vsel %vm578_vm4, %v574_v8, %v3746_v21  ;;  %v592_v31 = vsel %vm578_vm4, %v575_v11, %v3747_v20 }
  0xcb   :  { %v3742_v28 = vunpack.i.h.bf16 %v3740_v43  ;;  %v3741_v26 = vunpack.i.l.bf16 %v3740_v43  ;;  %v3755_v39 = vpop.permute.xlu1 %3754  ;;  %v661_v1 = vpack.c.bf16 %v592_v31, %v591_v30 }
  0xcc   :  { %v3757_v49 = vunpack.i.h.bf16 %v3755_v39  ;;  %v3756_v0 = vunpack.i.l.bf16 %v3755_v39  ;;  %v6811_v39 = vmov 0.0  }
  0xcd   :  { %v639_v15 = vsel %vm578_vm4, %v623_v45, %v3741_v26  ;;  %v640_v53 = vsel %vm578_vm4, %v624_v13, %v3742_v28  ;;  %1204 = vst.msk [vmem:[#allocation2 + $0x68] sm:$0xff] %vm544_vm2, %v6811_v39  ;;  %1207 = vst.msk [vmem:[#allocation2 + $0x80] sm:$0xff] %vm544_vm2, %v6811_v39 }
  0xce   :  { %v3750_v48 = vpop.permute.xlu0 %3749  ;;  %v662_v47 = vpack.c.bf16 %v640_v53, %v639_v15  ;;  %v560_v41 = vsel %vm544_vm2, %v4724_v18, %v3757_v49  ;;  %v559_v2 = vsel %vm544_vm2, %v4696_v29, %v3756_v0  ;;  %1216 = vst.msk [vmem:[#allocation2 + $0xc8] sm:$0xff] %vm544_vm2, %v6811_v39  ;;  %1191 = vst.msk [vmem:[#allocation2] sm:$0xff] %vm544_vm2, %v6811_v39 }
  0xcf   :  { %v3752_v50 = vunpack.i.h.bf16 %v3750_v48  ;;  %v3751_v51 = vunpack.i.l.bf16 %v3750_v48  ;;  %v3765_v54 = vpop.permute.xlu1 %3764  ;;  %1192 = vst.msk [vmem:[#allocation2 + $0x8] sm:$0xff] %vm544_vm2, %v6811_v39  ;;  %1193 = vst.msk [vmem:[#allocation2 + $0x10] sm:$0xff] %vm544_vm2, %v6811_v39 }
  0xd0   :  { %915 = vmatprep.mubr.bf16.mxu0 %v662_v47  ;;  %v3767_v12 = vunpack.i.h.bf16 %v3765_v54  ;;  %v3766_v25 = vunpack.i.l.bf16 %v3765_v54  ;;  %1194 = vst.msk [vmem:[#allocation2 + $0x18] sm:$0xff] %vm544_vm2, %v6811_v39  ;;  %1195 = vst.msk [vmem:[#allocation2 + $0x20] sm:$0xff] %vm544_vm2, %v6811_v39 }
  0xd1   :  { %916 = vmatmul.mubr.bf16.gmra.mrb[24].mxu0 %v661_v1  ;;  %v610_v32 = vsel %vm544_vm2, %v4774_v44, %v3752_v50  ;;  %v609_v58 = vsel %vm544_vm2, %v4757_v24, %v3751_v51  ;;  %1196 = vst.msk [vmem:[#allocation2 + $0x28] sm:$0xff] %vm544_vm2, %v6811_v39  ;;  %1197 = vst.msk [vmem:[#allocation2 + $0x30] sm:$0xff] %vm544_vm2, %v6811_v39 }
  0xd2   :  { %v3760_v57 = vpop.permute.xlu0 %3759  ;;  %v576_v55 = vsel %vm561_vm3, %v559_v2, %v3766_v25  ;;  %v577_v27 = vsel %vm561_vm3, %v560_v41, %v3767_v12  ;;  %1198 = vst.msk [vmem:[#allocation2 + $0x38] sm:$0xff] %vm544_vm2, %v6811_v39  ;;  %1199 = vst.msk [vmem:[#allocation2 + $0x40] sm:$0xff] %vm544_vm2, %v6811_v39 }
  0xd3   :  { %v3762_v9 = vunpack.i.h.bf16 %v3760_v57  ;;  %v3761_v52 = vunpack.i.l.bf16 %v3760_v57  ;;  %v3775_v18 = vpop.permute.xlu1 %3774  ;;  %1200 = vst.msk [vmem:[#allocation2 + $0x48] sm:$0xff] %vm544_vm2, %v6811_v39  ;;  %1201 = vst.msk [vmem:[#allocation2 + $0x50] sm:$0xff] %vm544_vm2, %v6811_v39 }
  0xd4   :  { %v3777_v14 = vunpack.i.h.bf16 %v3775_v18  ;;  %v3776_v62 = vunpack.i.l.bf16 %v3775_v18  ;;  %1202 = vst.msk [vmem:[#allocation2 + $0x58] sm:$0xff] %vm544_vm2, %v6811_v39  ;;  %1203 = vst.msk [vmem:[#allocation2 + $0x60] sm:$0xff] %vm544_vm2, %v6811_v39 }
  0xd5   :  { %v625_v29 = vsel %vm561_vm3, %v609_v58, %v3761_v52  ;;  %v626_v3 = vsel %vm561_vm3, %v610_v32, %v3762_v9  ;;  %1205 = vst.msk [vmem:[#allocation2 + $0x70] sm:$0xff] %vm544_vm2, %v6811_v39  ;;  %1206 = vst.msk [vmem:[#allocation2 + $0x78] sm:$0xff] %vm544_vm2, %v6811_v39 }
  0xd6   :  { %v3770_v5 = vpop.permute.xlu0 %3769  ;;  %v593_v10 = vsel %vm578_vm4, %v576_v55, %v3776_v62  ;;  %v594_v17 = vsel %vm578_vm4, %v577_v27, %v3777_v14  ;;  %1208 = vst.msk [vmem:[#allocation2 + $0x88] sm:$0xff] %vm544_vm2, %v6811_v39  ;;  %1209 = vst.msk [vmem:[#allocation2 + $0x90] sm:$0xff] %vm544_vm2, %v6811_v39  ;;  %v5063_v53 = vld [vmem:[#allocation2 + $0x8] sm:$0xff]  ;;  %v1270_v48 = vld [vmem:[#allocation2 + $0x10] sm:$0xff] }
  0xd7   :  { %v3772_v6 = vunpack.i.h.bf16 %v3770_v5  ;;  %v3771_v7 = vunpack.i.l.bf16 %v3770_v5  ;;  %v664_v19 = vpack.c.bf16 %v594_v17, %v593_v10  ;;  %1210 = vst.msk [vmem:[#allocation2 + $0x98] sm:$0xff] %vm544_vm2, %v6811_v39  ;;  %1211 = vst.msk [vmem:[#allocation2 + $0xa0] sm:$0xff] %vm544_vm2, %v6811_v39  ;;  %v1424_v47 = vrot.slane %v5063_v53, 2  ;;  %v5081_v14 = vld [vmem:[%s6807_s2 + $0x80] sm:$0xff]   ;;  %v4197_v62 = vld [vmem:[%s6807_s2 + $0x88] sm:$0xff]  }
  0xd8   :  { %1212 = vst.msk [vmem:[#allocation2 + $0xa8] sm:$0xff] %vm544_vm2, %v6811_v39  ;;  %1213 = vst.msk [vmem:[#allocation2 + $0xb0] sm:$0xff] %vm544_vm2, %v6811_v39  ;;  %v1425_v50 = vrot.slane %v1270_v48, 2  ;;  %3482 = vmatprep.subr.bf16.mxu0 %v5081_v14 }
  0xd9   :  { %v641_v42 = vsel %vm578_vm4, %v625_v29, %v3771_v7  ;;  %v642_v4 = vsel %vm578_vm4, %v626_v3, %v3772_v6  ;;  %1214 = vst.msk [vmem:[#allocation2 + $0xb8] sm:$0xff] %vm544_vm2, %v6811_v39  ;;  %1215 = vst.msk [vmem:[#allocation2 + $0xc0] sm:$0xff] %vm544_vm2, %v6811_v39  ;;  %3483 = vmatpush3.bf16.msra.mxu0 %v5081_v14 }
  0xda   :  { %v665_v46 = vpack.c.bf16 %v642_v4, %v641_v42  ;;  %1217 = vst.msk [vmem:[#allocation2 + $0xd0] sm:$0xff] %vm544_vm2, %v6811_v39  ;;  %1218 = vst.msk [vmem:[#allocation2 + $0xd8] sm:$0xff] %vm544_vm2, %v6811_v39  ;;  %v1426_v51 = vsel %vm217_vm0, %v1424_v47, %v1425_v50  ;;  %3484 = vmatprep.subr.bf16.mxu0 %v4197_v62 }
  0xdb   :  { %1219 = vst.msk [vmem:[#allocation2 + $0xe0] sm:$0xff] %vm544_vm2, %v6811_v39  ;;  %1220 = vst.msk [vmem:[#allocation2 + $0xe8] sm:$0xff] %vm544_vm2, %v6811_v39  ;;  %v3778_v2 = vpack.i.bf16 %v1426_v51, %v1424_v47  ;;  %v5343_v38 = vld [vmem:[#allocation2 + $0x60] sm:$0xff] }
  0xdc   :  { %923 = vmatprep.mubr.bf16.mxu0 %v665_v46  ;;  %1221 = vst.msk [vmem:[#allocation2 + $0xf0] sm:$0xff] %vm544_vm2, %v6811_v39  ;;  %1222 = vst.msk [vmem:[#allocation2 + $0xf8] sm:$0xff] %vm544_vm2, %v6811_v39  ;;  %v5345_v36 = vld [vmem:[#allocation2 + $0x78] sm:$0xff] }
  0xdd   :  { %924 = vmatmul.mubr.bf16.gmra.mrb[28].mxu0 %v664_v19  ;;  %1223 = vst.msk [vmem:[#allocation2 + $0x100] sm:$0xff] %vm544_vm2, %v6811_v39  ;;  %1224 = vst.msk [vmem:[#allocation2 + $0x108] sm:$0xff] %vm544_vm2, %v6811_v39  ;;  %3779 = vrot.lane.b32.xlu1 %v3778_v2, %s4262_s30 }
  0xde   :  { %1225 = vst.msk [vmem:[#allocation2 + $0x110] sm:$0xff] %vm544_vm2, %v6811_v39  ;;  %1226 = vst.msk [vmem:[#allocation2 + $0x118] sm:$0xff] %vm544_vm2, %v6811_v39  ;;  %3485 = vmatpush3.bf16.msra.mxu0 %v4197_v62 }
  0xdf   :  { %1227 = vst.msk [vmem:[#allocation2 + $0x120] sm:$0xff] %vm544_vm2, %v6811_v39  ;;  %1228 = vst.msk [vmem:[#allocation2 + $0x128] sm:$0xff] %vm544_vm2, %v6811_v39 }
  0xe0   :  { %1229 = vst.msk [vmem:[#allocation2 + $0x130] sm:$0xff] %vm544_vm2, %v6811_v39  ;;  %1230 = vst.msk [vmem:[#allocation2 + $0x138] sm:$0xff] %vm544_vm2, %v6811_v39 }
  0xe1   :  { %1231 = vst.msk [vmem:[#allocation2 + $0x140] sm:$0xff] %vm544_vm2, %v6811_v39  ;;  %1232 = vst.msk [vmem:[#allocation2 + $0x148] sm:$0xff] %vm544_vm2, %v6811_v39  ;;  %v1295_v54 = vld [vmem:[#allocation2 + $0xd8] sm:$0xff] }
  0xe2   :  { %1233 = vst.msk [vmem:[#allocation2 + $0x150] sm:$0xff] %vm544_vm2, %v6811_v39  ;;  %1234 = vst.msk [vmem:[#allocation2 + $0x158] sm:$0xff] %vm544_vm2, %v6811_v39  ;;  %v5067_v41 = vld [vmem:[#allocation2 + $0xe0] sm:$0xff] }
  0xe3   :  { %1235 = vst.msk [vmem:[#allocation2 + $0x160] sm:$0xff] %vm544_vm2, %v6811_v39  ;;  %1236 = vst.msk [vmem:[#allocation2 + $0x168] sm:$0xff] %vm544_vm2, %v6811_v39  ;;  %v3783_v12 = vpack.i.bf16 %v5067_v41, %v1295_v54  ;;  %v1299_v25 = vld [vmem:[#allocation2 + $0xf8] sm:$0xff] }
  0xe4   :  { %1237 = vst.msk [vmem:[#allocation2 + $0x170] sm:$0xff] %vm544_vm2, %v6811_v39  ;;  %1238 = vst.msk [vmem:[#allocation2 + $0x178] sm:$0xff] %vm544_vm2, %v6811_v39  ;;  %v1300_v57 = vld [vmem:[#allocation2 + $0x100] sm:$0xff]  ;;  %v1448_v32 = vrot.slane %v1299_v25, 2 }
  0xe5   :  { %1239 = vst.msk [vmem:[#allocation2 + $0x180] sm:$0xff] %vm544_vm2, %v6811_v39  ;;  %1240 = vst.msk [vmem:[#allocation2 + $0x188] sm:$0xff] %vm544_vm2, %v6811_v39  ;;  %v1449_v58 = vrot.slane %v1300_v57, 2  ;;  %3784 = vrot.lane.b32.xlu0 %v3783_v12, %s4262_s30 }
  0xe6   :  { %1241 = vst.msk [vmem:[#allocation2 + $0x190] sm:$0xff] %vm544_vm2, %v6811_v39  ;;  %1242 = vst.msk [vmem:[#allocation2 + $0x198] sm:$0xff] %vm544_vm2, %v6811_v39 }
  0xe7   :  { %1243 = vst.msk [vmem:[#allocation2 + $0x1a0] sm:$0xff] %vm544_vm2, %v6811_v39  ;;  %1244 = vst.msk [vmem:[#allocation2 + $0x1a8] sm:$0xff] %vm544_vm2, %v6811_v39  ;;  %v1450_v9 = vsel %vm217_vm0, %v1448_v32, %v1449_v58 }
  0xe8   :  { %1245 = vst.msk [vmem:[#allocation2 + $0x1b0] sm:$0xff] %vm544_vm2, %v6811_v39  ;;  %1246 = vst.msk [vmem:[#allocation2 + $0x1b8] sm:$0xff] %vm544_vm2, %v6811_v39  ;;  %v3788_v27 = vpack.i.bf16 %v1450_v9, %v1448_v32 }
  0xe9   :  { %1247 = vst.msk [vmem:[#allocation2 + $0x1c0] sm:$0xff] %vm544_vm2, %v6811_v39  ;;  %1248 = vst.msk [vmem:[#allocation2 + $0x1c8] sm:$0xff] %vm544_vm2, %v6811_v39 }
  0xea   :  { %1249 = vst.msk [vmem:[#allocation2 + $0x1d0] sm:$0xff] %vm544_vm2, %v6811_v39  ;;  %1250 = vst.msk [vmem:[#allocation2 + $0x1d8] sm:$0xff] %vm544_vm2, %v6811_v39  ;;  %3789 = vrot.lane.b32.xlu1 %v3788_v27, %s4262_s30 }
  0xf0   :  { %v1325_v52 = vld [vmem:[#allocation2 + $0x1c8] sm:$0xff] }
  0xf1   :  { %v5073_v55 = vld [vmem:[#allocation2 + $0x1d0] sm:$0xff] }
  0xf2   :  { %v4911_v8 = vpop.f32.mrb[0].mxu1  ;;  %v3793_v18 = vpack.i.bf16 %v5073_v55, %v1325_v52 }
  0xf3   :  { %v4913_v11 = vpop.f32.mrb[1].mxu1 }
  0xf4   :  { %v4915_v16 = vpop.f32.mrb[2].mxu1  ;;  %3794 = vrot.lane.b32.xlu0 %v3793_v18, %s4262_s30 }
  0xf5   :  { %v4917_v20 = vpop.f32.mrb[3].mxu1 }
 0x109   :  { %v4919_v21 = vpop.f32.mrb[4].mxu1 }
 0x10a   :  { %v4921_v45 = vpop.f32.mrb[5].mxu1 }
 0x10b   :  { %v4923_v13 = vpop.f32.mrb[6].mxu1 }
 0x10c   :  { %v4925_v43 = vpop.f32.mrb[7].mxu1 }
 0x113   :  { %v4927_v28 = vpop.f32.mrb[8].mxu1 }
 0x114   :  { %v4929_v26 = vpop.f32.mrb[9].mxu1 }
 0x115   :  { %v4931_v30 = vpop.f32.mrb[10].mxu1 }
 0x116   :  { %v4933_v31 = vpop.f32.mrb[11].mxu1 }
 0x11d   :  { %v5055_v1 = vpop.f32.mrb[12].mxu1 }
 0x11e   :  { %v5057_v49 = vpop.f32.mrb[13].mxu1 }
 0x11f   :  { %v5059_v0 = vpop.f32.mrb[14].mxu1 }
 0x120   :  { %v5061_v15 = vpop.f32.mrb[15].mxu1 }
 0x15c   :  { %v3323_v29 = vpop.f32.mrb[0].mxu0 }
 0x15d   :  { %v3324_v3 = vpop.f32.mrb[1].mxu0 }
 0x15e   :  { %v3325_v5 = vadd.f32 %v3324_v3, %v3323_v29  ;;  %v3326_v6 = vpop.f32.mrb[2].mxu0 }
 0x15f   :  { %v3327_v7 = vpop.f32.mrb[3].mxu0 }
 0x160   :  { %v3328_v10 = vadd.f32 %v3327_v7, %v3326_v6  ;;  %v5089_v17 = vadd.f32 %v3325_v5, %v4913_v11 }
 0x162   :  { %v1073_v42 = vmul.f32 %v5089_v17, %v5089_v17  ;;  %v5094_v4 = vadd.f32 %v3328_v10, %v4917_v20  ;;  %v1029_v19 = vsel %vm544_vm2, %v5089_v17, 0.0 }
 0x164   :  { %v1030_v46 = vsel %vm544_vm2, %v5094_v4, 0.0  ;;  %v1074_v48 = vmul.f32 %v5094_v4, %v5094_v4  ;;  %v1089_v50 = vsel %vm544_vm2, %v1073_v42, 0.0 }
 0x165   :  { %v1031_v47 = vadd.f32 %v1030_v46, %v1029_v19 }
 0x166   :  { %v1090_v11 = vsel %vm544_vm2, %v1074_v48, 0.0 }
 0x167   :  { %v1091_v51 = vadd.f32 %v1090_v11, %v1089_v50 }
 0x168   :  { %v3329_v54 = vpop.f32.mrb[4].mxu0 }
 0x169   :  { %v3330_v2 = vpop.f32.mrb[5].mxu0 }
 0x16a   :  { %v3331_v12 = vadd.f32 %v3330_v2, %v3329_v54  ;;  %v3332_v20 = vpop.f32.mrb[6].mxu0 }
 0x16b   :  { %v3333_v25 = vpop.f32.mrb[7].mxu0 }
 0x16c   :  { %v5105_v57 = vadd.f32 %v4911_v8, %v3331_v12  ;;  %v3334_v32 = vadd.f32 %v3333_v25, %v3332_v20 }
 0x16e   :  { %v1032_v58 = vsel %vm544_vm2, %v5105_v57, 0.0  ;;  %v1075_v9 = vmul.f32 %v5105_v57, %v5105_v57  ;;  %v5112_v52 = vadd.f32 %v4915_v16, %v3334_v32 }
 0x16f   :  { %v1033_v27 = vadd.f32 %v1032_v58, %v1031_v47 }
 0x170   :  { %v1092_v18 = vsel %vm544_vm2, %v1075_v9, 0.0  ;;  %v1034_v62 = vsel %vm544_vm2, %v5112_v52, 0.0  ;;  %v1076_v8 = vmul.f32 %v5112_v52, %v5112_v52 }
 0x171   :  { %v1093_v29 = vadd.f32 %v1092_v18, %v1091_v51  ;;  %v1035_v3 = vadd.f32 %v1034_v62, %v1033_v27 }
 0x172   :  { %v1094_v5 = vsel %vm544_vm2, %v1076_v8, 0.0 }
 0x173   :  { %v1095_v6 = vadd.f32 %v1094_v5, %v1093_v29 }
 0x174   :  { %v3335_v7 = vpop.f32.mrb[8].mxu0 }
 0x175   :  { %v3336_v10 = vpop.f32.mrb[9].mxu0 }
 0x176   :  { %v3337_v42 = vadd.f32 %v3336_v10, %v3335_v7  ;;  %v3338_v19 = vpop.f32.mrb[10].mxu0 }
 0x177   :  { %v3339_v16 = vpop.f32.mrb[11].mxu0 }
 0x178   :  { %v3340_v46 = vadd.f32 %v3339_v16, %v3338_v19  ;;  %v5121_v48 = vadd.f32 %v3337_v42, %v4921_v45 }
 0x17a   :  { %v1036_v47 = vsel %vm544_vm2, %v5121_v48, 0.0  ;;  %v1077_v50 = vmul.f32 %v5121_v48, %v5121_v48  ;;  %v5128_v11 = vadd.f32 %v3340_v46, %v4925_v43 }
 0x17b   :  { %v1037_v51 = vadd.f32 %v1036_v47, %v1035_v3 }
 0x17c   :  { %v1096_v54 = vsel %vm544_vm2, %v1077_v50, 0.0  ;;  %v1038_v2 = vsel %vm544_vm2, %v5128_v11, 0.0  ;;  %v1078_v12 = vmul.f32 %v5128_v11, %v5128_v11 }
 0x17d   :  { %v1097_v45 = vadd.f32 %v1096_v54, %v1095_v6  ;;  %v1039_v20 = vadd.f32 %v1038_v2, %v1037_v51 }
 0x17e   :  { %v1098_v25 = vsel %vm544_vm2, %v1078_v12, 0.0 }
 0x17f   :  { %v1099_v32 = vadd.f32 %v1098_v25, %v1097_v45 }
 0x180   :  { %v3341_v58 = vpop.f32.mrb[12].mxu0 }
 0x181   :  { %v3342_v9 = vpop.f32.mrb[13].mxu0 }
 0x182   :  { %v3343_v27 = vadd.f32 %v3342_v9, %v3341_v58  ;;  %v3344_v18 = vpop.f32.mrb[14].mxu0 }
 0x183   :  { %v3345_v43 = vpop.f32.mrb[15].mxu0 }
 0x184   :  { %v5137_v62 = vadd.f32 %v4919_v21, %v3343_v27  ;;  %v3346_v8 = vadd.f32 %v3345_v43, %v3344_v18 }
 0x186   :  { %v1040_v29 = vsel %vm544_vm2, %v5137_v62, 0.0  ;;  %v1079_v3 = vmul.f32 %v5137_v62, %v5137_v62  ;;  %v5144_v5 = vadd.f32 %v4923_v13, %v3346_v8 }
 0x187   :  { %v1041_v6 = vadd.f32 %v1040_v29, %v1039_v20 }
 0x188   :  { %v1100_v7 = vsel %vm544_vm2, %v1079_v3, 0.0  ;;  %v1042_v10 = vsel %vm544_vm2, %v5144_v5, 0.0  ;;  %v1080_v21 = vmul.f32 %v5144_v5, %v5144_v5 }
 0x189   :  { %v1101_v42 = vadd.f32 %v1100_v7, %v1099_v32  ;;  %v1043_v19 = vadd.f32 %v1042_v10, %v1041_v6 }
 0x18a   :  { %v1102_v16 = vsel %vm544_vm2, %v1080_v21, 0.0 }
 0x18b   :  { %v1044_v46 = vrot.slane %v1043_v19, 4  ;;  %v1103_v47 = vadd.f32 %v1102_v16, %v1101_v42 }
 0x18c   :  { %v3347_v50 = vpop.f32.mrb[16].mxu0 }
 0x18d   :  { %v1045_v51 = vadd.f32 %v1044_v46, %v1043_v19  ;;  %v1104_v54 = vrot.slane %v1103_v47, 4  ;;  %v3348_v13 = vpop.f32.mrb[17].mxu0 }
 0x18e   :  { %v3349_v2 = vadd.f32 %v3348_v13, %v3347_v50  ;;  %v3350_v12 = vpop.f32.mrb[18].mxu0 }
 0x18f   :  { %v1046_v45 = vrot.slane %v1045_v51, 2  ;;  %v1105_v20 = vadd.f32 %v1104_v54, %v1103_v47  ;;  %v3351_v25 = vpop.f32.mrb[19].mxu0 }
 0x190   :  { %v3352_v58 = vadd.f32 %v3351_v25, %v3350_v12  ;;  %v5153_v9 = vadd.f32 %v3349_v2, %v4929_v26 }
 0x191   :  { %v1047_v27 = vadd.f32 %v1046_v45, %v1045_v51  ;;  %v1106_v32 = vrot.slane %v1105_v20, 2 }
 0x192   :  { %v1050_v18 = vsel %vm544_vm2, %v5153_v9, 0.0  ;;  %v1081_v43 = vmul.f32 %v5153_v9, %v5153_v9  ;;  %v5160_v8 = vadd.f32 %v3352_v58, %v4933_v31 }
 0x193   :  { %v1048_v29 = vrot.slane %v1047_v27, 1  ;;  %v1107_v3 = vadd.f32 %v1106_v32, %v1105_v20 }
 0x194   :  { %v1110_v6 = vsel %vm544_vm2, %v1081_v43, 0.0  ;;  %v1051_v7 = vsel %vm544_vm2, %v5160_v8, 0.0  ;;  %v1082_v26 = vmul.f32 %v5160_v8, %v5160_v8 }
 0x195   :  { %v1049_v10 = vadd.f32 %v1048_v29, %v1047_v27  ;;  %v1108_v21 = vrot.slane %v1107_v3, 1  ;;  %v1052_v42 = vadd.f32 %v1051_v7, %v1050_v18 }
 0x196   :  { %v1111_v19 = vsel %vm544_vm2, %v1082_v26, 0.0 }
 0x197   :  { %v5168_v16 = vmul.f32 0.015625, %v1049_v10  ;;  %v1109_v46 = vadd.f32 %v1108_v21, %v1107_v3  ;;  %v1112_v31 = vadd.f32 %v1111_v19, %v1110_v6 }
 0x198   :  { %v3353_v47 = vpop.f32.mrb[20].mxu0 }
 0x199   :  { %v1131_v50 = vmul.f32 0.015625, %v1109_v46  ;;  %v1133_v51 = vmul.f32 %v5168_v16, %v5168_v16  ;;  %v1142_v54 = vsub.f32 %v5112_v52, %v5168_v16  ;;  %v1143_v13 = vsub.f32 %v5121_v48, %v5168_v16  ;;  %v3354_v2 = vpop.f32.mrb[21].mxu0 }
 0x19a   :  { %v1144_v12 = vsub.f32 %v5128_v11, %v5168_v16  ;;  %v1145_v45 = vsub.f32 %v5137_v62, %v5168_v16  ;;  %v1146_v20 = vsub.f32 %v5144_v5, %v5168_v16  ;;  %v3355_v25 = vadd.f32 %v3354_v2, %v3353_v47  ;;  %v3356_v58 = vpop.f32.mrb[22].mxu0 }
 0x19b   :  { %v1135_v27 = vsub.f32 %v1131_v50, %v1133_v51  ;;  %v3357_v32 = vpop.f32.mrb[23].mxu0  ;;  %v1141_v52 = vsub.f32 %v5105_v57, %v5168_v16  ;;  %v1140_v48 = vsub.f32 %v5094_v4, %v5168_v16  ;;  %v1139_v18 = vsub.f32 %v5089_v17, %v5168_v16 }
 0x19c   :  { %v5189_v11 = vadd.f32 %v4927_v28, %v3355_v25  ;;  %v3358_v62 = vadd.f32 %v3357_v32, %v3356_v58 }
 0x19d   :  { %v1137_v43 = vmax.f32 %v1135_v27, 0.0  ;;  %v1956_v27 = vrot.slane %v5067_v41, 2 }
 0x19e   :  { %v1053_v5 = vsel %vm544_vm2, %v5189_v11, 0.0  ;;  %v1083_v29 = vmul.f32 %v5189_v11, %v5189_v11  ;;  %v5196_v3 = vadd.f32 %v4931_v30, %v3358_v62 }
 0x19f   :  { %v1155_v57 = vadd.f32 1e-05, %v1137_v43  ;;  %v1054_v6 = vadd.f32 %v1053_v5, %v1052_v42 }
 0x1a0   :  { %v1113_v4 = vsel %vm544_vm2, %v1083_v29, 0.0  ;;  %v1055_v17 = vsel %vm544_vm2, %v5196_v3, 0.0  ;;  %v1084_v28 = vmul.f32 %v5196_v3, %v5196_v3 }
 0x1a1   :  { %4214 = vrsqrt.f32 %v1155_v57  ;;  %v1114_v7 = vadd.f32 %v1113_v4, %v1112_v31  ;;  %v1056_v26 = vadd.f32 %v1055_v17, %v1054_v6  ;;  %v1297_v4 = vld [vmem:[#allocation2 + $0xe8] sm:$0xff] }
 0x1a2   :  { %v1115_v10 = vsel %vm544_vm2, %v1084_v28, 0.0 }
 0x1a3   :  { %v1116_v21 = vadd.f32 %v1115_v10, %v1114_v7 }
 0x1a4   :  { %v3359_v19 = vpop.f32.mrb[24].mxu0 }
 0x1a5   :  { %v3360_v16 = vpop.f32.mrb[25].mxu0 }
 0x1a6   :  { %v3361_v30 = vadd.f32 %v3360_v16, %v3359_v19  ;;  %v3362_v46 = vpop.f32.mrb[26].mxu0 }
 0x1a7   :  { %v3363_v47 = vpop.f32.mrb[27].mxu0 }
 0x1a8   :  { %v3364_v42 = vadd.f32 %v3363_v47, %v3362_v46  ;;  %v5205_v50 = vadd.f32 %v3361_v30, %v5057_v49  ;;  %v5226_v46 = vld [vmem:[#allocation2 + $0x40] sm:$0xff] }
 0x1aa   :  { %v1057_v51 = vsel %vm544_vm2, %v5205_v50, 0.0  ;;  %v1085_v2 = vmul.f32 %v5205_v50, %v5205_v50  ;;  %v5212_v31 = vadd.f32 %v3364_v42, %v5061_v15 }
 0x1ab   :  { %v4215_v25 = vpop.eup %4214  ;;  %v1058_v58 = vadd.f32 %v1057_v51, %v1056_v26 }
 0x1ac   :  { %v1162_v32 = vmul.f32 %v4215_v25, %v1142_v54  ;;  %v1163_v62 = vmul.f32 %v4215_v25, %v1143_v13  ;;  %v1164_v43 = vmul.f32 %v4215_v25, %v1144_v12  ;;  %v1165_v5 = vmul.f32 %v4215_v25, %v1145_v45 }
 0x1ad   :  { %v1166_v29 = vmul.f32 %v4215_v25, %v1146_v20  ;;  %v1117_v49 = vsel %vm544_vm2, %v1085_v2, 0.0  ;;  %v1059_v57 = vsel %vm544_vm2, %v5212_v31, 0.0  ;;  %v1086_v6 = vmul.f32 %v5212_v31, %v5212_v31 }
 0x1ae   :  { %v1178_v15 = vmax.f32 %v1162_v32, 0.0  ;;  %v1179_v17 = vmax.f32 %v1163_v62, 0.0  ;;  %v1180_v28 = vmax.f32 %v1164_v43, 0.0  ;;  %v1181_v7 = vmax.f32 %v1165_v5, 0.0  ;;  %v5228_v32 = vld [vmem:[#allocation2 + $0x58] sm:$0xff]  ;;  %v1282_v62 = vld [vmem:[#allocation2 + $0x70] sm:$0xff] }
 0x1af   :  { %v1182_v26 = vmax.f32 %v1166_v29, 0.0  ;;  %v1118_v10 = vadd.f32 %v1117_v49, %v1116_v21  ;;  %v1060_v54 = vadd.f32 %v1059_v57, %v1058_v58  ;;  %v1119_v13 = vsel %vm544_vm2, %v1086_v6, 0.0  ;;  %v1285_v5 = vld [vmem:[#allocation2 + $0x88] sm:$0xff]  ;;  %v5241_v29 = vld [vmem:[#allocation2 + $0xa0] sm:$0xff]  ;;  %v5243_v49 = vld [vmem:[#allocation2 + $0xb8] sm:$0xff] }
 0x1b0   :  { %1255 = vst.msk [vmem:[#allocation2 + $0x68] sm:$0xff] %vm544_vm2, %v1178_v15  ;;  %1256 = vst.msk [vmem:[#allocation2 + $0x80] sm:$0xff] %vm544_vm2, %v1179_v17  ;;  %v3365_v12 = vpop.f32.mrb[28].mxu0  ;;  %v1957_v45 = vrot.slane %v1297_v4, 2  ;;  %v1161_v20 = vmul.f32 %v4215_v25, %v1141_v52  ;;  %v1160_v19 = vmul.f32 %v4215_v25, %v1140_v48  ;;  %v1159_v16 = vmul.f32 %v4215_v25, %v1139_v18  ;;  %v5245_v57 = vld [vmem:[#allocation2 + $0xd0] sm:$0xff] }
 0x1b1   :  { %1257 = vst.msk [vmem:[#allocation2 + $0x98] sm:$0xff] %vm544_vm2, %v1180_v28  ;;  %1258 = vst.msk [vmem:[#allocation2 + $0xb0] sm:$0xff] %vm544_vm2, %v1181_v7  ;;  %v1120_v30 = vadd.f32 %v1119_v13, %v1118_v10  ;;  %v3366_v21 = vpop.f32.mrb[29].mxu0  ;;  %v5233_v48 = vrot.slane %v1956_v27, 7  ;;  %v1434_v6 = vrot.slane %v5228_v32, 2  ;;  %v1440_v28 = vrot.slane %v1285_v5, 2 }
 0x1b2   :  { %1259 = vst.msk [vmem:[#allocation2 + $0xc8] sm:$0xff] %vm544_vm2, %v1182_v26  ;;  %v3367_v47 = vadd.f32 %v3366_v21, %v3365_v12  ;;  %v3368_v42 = vpop.f32.mrb[30].mxu0  ;;  %v1177_v51 = vmax.f32 %v1161_v20, 0.0  ;;  %v1176_v2 = vmax.f32 %v1160_v19, 0.0  ;;  %v1175_v58 = vmax.f32 %v1159_v16, 0.0  ;;  %v5282_v32 = vld [vmem:[#allocation2 + $0x18] sm:$0xff] }
 0x1b3   :  { %v3369_v43 = vpop.f32.mrb[31].mxu0  ;;  %v5236_v18 = vsel %vm217_vm0, %v1956_v27, %v1957_v45  ;;  %v1437_v27 = vrot.slane %v1282_v62, 2  ;;  %v1443_v12 = vrot.slane %v5241_v29, 2 }
 0x1b4   :  { %v5231_v52 = vadd.f32 %v5055_v1, %v3367_v47  ;;  %v3370_v25 = vadd.f32 %v3369_v43, %v3368_v42  ;;  %1254 = vst.msk [vmem:[#allocation2 + $0x50] sm:$0xff] %vm544_vm2, %v1177_v51  ;;  %1253 = vst.msk [vmem:[#allocation2 + $0x38] sm:$0xff] %vm544_vm2, %v1176_v2  ;;  %v1431_v1 = vrot.slane %v5226_v46, 2  ;;  %v5273_v47 = vld [vmem:[#allocation2 + $0x48] sm:$0xff]  ;;  %v5275_v42 = vld [vmem:[#allocation2 + $0x30] sm:$0xff] }
 0x1b5   :  { %1252 = vst.msk [vmem:[#allocation2 + $0x20] sm:$0xff] %vm544_vm2, %v1175_v58 }
 0x1b6   :  { %v1061_v4 = vsel %vm544_vm2, %v5231_v52, 0.0  ;;  %v1087_v15 = vmul.f32 %v5231_v52, %v5231_v52  ;;  %v5254_v17 = vadd.f32 %v5059_v0, %v3370_v25 }
 0x1b7   :  { %v1062_v7 = vadd.f32 %v1061_v4, %v1060_v54  ;;  %v5256_v26 = vld [vmem:[#allocation2 + $0x68] sm:$0xff]  ;;  %v5258_v10 = vld [vmem:[#allocation2 + $0x80] sm:$0xff] }
 0x1b8   :  { %v5260_v13 = vld [vmem:[#allocation2 + $0x98] sm:$0xff]  ;;  %v1121_v19 = vsel %vm544_vm2, %v1087_v15, 0.0  ;;  %v1063_v0 = vsel %vm544_vm2, %v5254_v17, 0.0  ;;  %v1088_v54 = vmul.f32 %v5254_v17, %v5254_v17  ;;  %v5271_v16 = vrot.slane %v5256_v26, 2  ;;  %v5332_v40 = vld [vmem:[#allocation2 + $0xb0] sm:$0xff] }
 0x1b9   :  { %v1122_v21 = vadd.f32 %v1121_v19, %v1120_v30  ;;  %v1064_v46 = vadd.f32 %v1063_v0, %v1062_v7  ;;  %v5278_v51 = vrot.slane %v5258_v10, 2  ;;  %v5290_v43 = vrot.slane %v5260_v13, 2 }
 0x1ba   :  { %v1123_v58 = vsel %vm544_vm2, %v1088_v54, 0.0  ;;  %v5286_v62 = vsel %vm217_vm0, %v5271_v16, %v1437_v27  ;;  %v2243_v30 = vrot.slane %v5271_v16, 7 }
 0x1bb   :  { %v1065_v5 = vrot.slane %v1064_v46, 4  ;;  %v1124_v25 = vadd.f32 %v1123_v58, %v1122_v21  ;;  %v5292_v29 = vld [vmem:[#allocation2 + $0x50] sm:$0xff]  ;;  %v5294_v4 = vld [vmem:[#allocation2 + $0x38] sm:$0xff]  ;;  %v5300_v7 = vsel %vm217_vm0, %v5278_v51, %v1440_v28  ;;  %v2244_v27 = vrot.slane %v5286_v62, 7 }
 0x1bc   :  { %v5296_v15 = vld [vmem:[#allocation2 + $0x20] sm:$0xff]  ;;  %v5305_v19 = vpack.i.bf16 %v5292_v29, %v5273_v47  ;;  %v5308_v0 = vrot.slane %v5292_v29, 2  ;;  %v3798_v54 = vpack.i.bf16 %v5294_v4, %v5275_v42  ;;  %v5313_v21 = vrot.slane %v5294_v4, 2 }
 0x1bd   :  { %v1066_v58 = vadd.f32 %v1065_v5, %v1064_v46  ;;  %v1125_v39 = vrot.slane %v1124_v25, 4  ;;  %v3808_v28 = vpack.i.bf16 %v5296_v15, %v5282_v32  ;;  %v2245_v37 = vsel %vm2218_vm5, %v2243_v30, %v2244_v27 }
 0x1be   :  { %3804 = vrot.lane.b32.xlu0 %v5305_v19, %s4262_s30  ;;  %3799 = vrot.lane.b32.xlu1 %v3798_v54, %s4262_s30  ;;  %v5322_v20 = vsel %vm217_vm0, %v5313_v21, %v1431_v1  ;;  %v5326_v2 = vsel %vm217_vm0, %v5308_v0, %v1434_v6  ;;  %v2225_v45 = vrot.slane %v5313_v21, 7  ;;  %v2234_v46 = vrot.slane %v5308_v0, 7 }
 0x1bf   :  { %v1067_v5 = vrot.slane %v1066_v58, 2  ;;  %v1126_v44 = vadd.f32 %v1125_v39, %v1124_v25  ;;  %v2226_v24 = vrot.slane %v5322_v20, 7  ;;  %v2235_v22 = vrot.slane %v5326_v2, 7 }
 0x1c0   :  { %v2252_v1 = vrot.slane %v5278_v51, 7  ;;  %v2253_v63 = vrot.slane %v5300_v7, 7  ;;  %v5339_v6 = vsel %vm217_vm0, %v5290_v43, %v1443_v12  ;;  %v1445_v12 = vrot.slane %v5332_v40, 2 }
 0x1c1   :  { %v1068_v59 = vadd.f32 %v1067_v5, %v1066_v58  ;;  %v1127_v56 = vrot.slane %v1126_v44, 2  ;;  %v2227_v39 = vsel %vm2218_vm5, %v2225_v45, %v2226_v24  ;;  %v2236_v25 = vsel %vm2218_vm5, %v2234_v46, %v2235_v22  ;;  %v5353_v45 = vld [vmem:[#allocation2 + $0xc8] sm:$0xff] }
 0x1c2   :  { %3814 = vrot.lane.b32.xlu1 %v3798_v54, %s4264_s15  ;;  %3809 = vrot.lane.b32.xlu0 %v3808_v28, %s4264_s15  ;;  %v2413_v30 = vpack.c.bf16 %v2236_v25, %v2227_v39  ;;  %v2254_v27 = vsel %vm2218_vm5, %v2252_v1, %v2253_v63  ;;  %v2261_v58 = vrot.slane %v5290_v43, 7  ;;  %v2262_v22 = vrot.slane %v5339_v6, 7 }
 0x1c3   :  { %v1069_v5 = vrot.slane %v1068_v59, 1  ;;  %v1128_v34 = vadd.f32 %v1127_v56, %v1126_v44  ;;  %v2416_v24 = vpack.c.bf16 %v2254_v27, %v2245_v37  ;;  %v3818_v54 = vpack.i.bf16 %v5256_v26, %v5343_v38 }
 0x1c4   :  { %3486 = vmatprep.mubr.msk.bf16.mxu0 %vm544_vm2, %v2413_v30  ;;  %v6873_v28 = vrot.slane %v5243_v49, 2  ;;  %v2270_v46 = vrot.slane %v1445_v12, 7  ;;  %v3823_v1 = vpack.i.bf16 %v5258_v10, %v5345_v36  ;;  %v2263_v37 = vsel %vm2218_vm5, %v2261_v58, %v2262_v22 }
 0x1c5   :  { %v1070_v39 = vadd.f32 %v1069_v5, %v1068_v59  ;;  %v1129_v56 = vrot.slane %v1128_v34, 1  ;;  %3487 = vmatmul.mubr.msk.bf16.vlgmr.msra.gmra.mrb[32].mxu0 %vm544_vm2, %v2416_v24  ;;  %v5368_v25 = vrot.slane %v5353_v45, 2  ;;  %v6874_v49 = vrot.slane %v5236_v18, 7 }
 0x1c6   :  { %v1447_v63 = vsel %vm217_vm0, %v1445_v12, %v6873_v28  ;;  %3819 = vrot.lane.b32.xlu1 %v3818_v54, %s4262_s30  ;;  %3824 = vrot.lane.b32.xlu0 %v3823_v1, %s4262_s30  ;;  %v6875_v58 = vrot.slane %v5245_v57, 2 }
 0x1c7   :  { %v2271_v44 = vrot.slane %v1447_v63, 7  ;;  %v2290_v30 = vsel %vm2218_vm5, %v5233_v48, %v6874_v49  ;;  %v5374_v27 = vmul.f32 0.015625, %v1070_v39  ;;  %v1130_v59 = vadd.f32 %v1129_v56, %v1128_v34 }
 0x1c8   :  { %v5381_v22 = vsel %vm217_vm0, %v5368_v25, %v6875_v58  ;;  %v2279_v28 = vrot.slane %v5368_v25, 7  ;;  %v5427_v58 = vrot.slane %v5296_v15, 1 }
 0x1c9   :  { %v2272_v5 = vsel %vm2218_vm5, %v2270_v46, %v2271_v44  ;;  %v1132_v61 = vmul.f32 0.015625, %v1130_v59  ;;  %v1134_v18 = vmul.f32 %v5374_v27, %v5374_v27  ;;  %v1148_v48 = vsub.f32 %v5160_v8, %v5374_v27  ;;  %v5390_v46 = vld [vmem:[#allocation2 + $0x90] sm:$0xff]  ;;  %v4200_v59 = vld [vmem:[%s6807_s2 + $0x48] sm:$0xff]  }
 0x1ca   :  { %v2419_v24 = vpack.c.bf16 %v2272_v5, %v2263_v37  ;;  %v1149_v34 = vsub.f32 %v5189_v11, %v5374_v27  ;;  %v1150_v57 = vsub.f32 %v5196_v3, %v5374_v27  ;;  %v1151_v39 = vsub.f32 %v5205_v50, %v5374_v27  ;;  %3834 = vrot.lane.b32.xlu1 %v3818_v54, %s4264_s15  ;;  %v5401_v37 = vld [vmem:[#allocation2 + $0xa8] sm:$0xff]  ;;  %v4198_v3 = vld [vmem:[%s6807_s2 + $0x40] sm:$0xff]  }
 0x1cb   :  { %v1154_v56 = vsub.f32 %v5254_v17, %v5374_v27  ;;  %v2280_v8 = vrot.slane %v5381_v22, 7  ;;  %v1136_v11 = vsub.f32 %v1132_v61, %v1134_v18  ;;  %3829 = vrot.lane.b32.xlu0 %v5305_v19, %s4264_s15  ;;  %v3838_v17 = vpack.i.bf16 %v5260_v13, %v5390_v46  ;;  %3381 = vmatprep.subr.bf16.mxu1 %v4198_v3  ;;  %v1292_v19 = vld [vmem:[#allocation2 + $0xc0] sm:$0xff] }
 0x1cc   :  { %3490 = vmatprep.mubr.msk.bf16.mxu0 %vm544_vm2, %v2419_v24  ;;  %v3843_v54 = vpack.i.bf16 %v5332_v40, %v5401_v37  ;;  %v3858_v5 = vpack.i.bf16 %v5353_v45, %v1292_v19  ;;  %v1344_v24 = vrot.slane %v5063_v53, 1  ;;  %v1152_v18 = vsub.f32 %v5212_v31, %v5374_v27 }
 0x1cd   :  { %v2281_v50 = vsel %vm2218_vm5, %v2279_v28, %v2280_v8  ;;  %v1138_v44 = vmax.f32 %v1136_v11, 0.0  ;;  %v5429_v28 = vpack.i.bf16 %v1447_v63, %v1445_v12  ;;  %v4201_v8 = vld [vmem:[%s6807_s2 + $0x8] sm:$0xff]   ;;  %v1153_v53 = vsub.f32 %v5231_v52, %v5374_v27  ;;  %v4202_v12 = vld [vmem:[%s6807_s2 + $0x50] sm:$0xff]  }
 0x1ce   :  { %v2422_v49 = vpack.c.bf16 %v2290_v30, %v2281_v50  ;;  %3839 = vrot.lane.b32.xlu1 %v3838_v17, %s4262_s30  ;;  %v4199_v30 = vld [vmem:[%s6807_s2] sm:$0xff]   ;;  %v5449_v31 = vrot.slane %v5292_v29, 1  ;;  %v3873_v63 = vpack.i.bf16 %v5427_v58, %v1344_v24  ;;  %v4203_v52 = vld [vmem:[%s6807_s2 + $0x10] sm:$0xff]   ;;  %v5463_v50 = vrot.slane %v5256_v26, 1  ;;  %v4205_v24 = vld [vmem:[%s6807_s2 + $0x18] sm:$0xff]  }
 0x1cf   :  { %v1156_v61 = vadd.f32 1e-05, %v1138_v44  ;;  %3844 = vrot.lane.b32.xlu0 %v3843_v54, %s4262_s30  ;;  %3382 = vmatpush3.bf16.msra.mxu1 %v4199_v30 }
 0x1d0   :  { %3491 = vmatmul.mubr.msk.bf16.gmra.mrb[36].mxu0 %vm544_vm2, %v2422_v49  ;;  %3383 = vmatprep.subr.bf16.mxu1 %v4200_v59 }
 0x1d1   :  { %4216 = vrsqrt.f32 %v1156_v61 }
 0x1d2   :  { %3854 = vrot.lane.b32.xlu1 %v3838_v17, %s4264_s15  ;;  %v5466_v17 = vrot.slane %v5258_v10, 1 }
 0x1d3   :  { %3849 = vrot.lane.b32.xlu0 %v3823_v1, %s4264_s15  ;;  %v1147_v1 = vsub.f32 %v5153_v9, %v5374_v27  ;;  %v5446_v9 = vrot.slane %v5294_v4, 1  ;;  %3384 = vmatpush3.bf16.msra.mxu1 %v4201_v8  ;;  %v4204_v27 = vld [vmem:[%s6807_s2 + $0x58] sm:$0xff]  }
 0x1d4   :  { %3385 = vmatprep.subr.bf16.mxu1 %v4202_v12  ;;  %6876 = vst [vmem:[#allocation22_spill] sm:$0xff] %v5466_v17 }
 0x1d5   :  { %v3878_v3 = vpack.i.bf16 %v5449_v31, %v5446_v9 }
 0x1d6   :  { %3859 = vrot.lane.b32.xlu1 %v3858_v5, %s4262_s30 }
 0x1d7   :  { %3864 = vrot.lane.b32.xlu0 %v3843_v54, %s4264_s15  ;;  %3386 = vmatpush3.bf16.msra.mxu1 %v4203_v52  ;;  %v5486_v52 = vrot.slane %v5332_v40, 1 }
 0x1d8   :  { %3387 = vmatprep.subr.bf16.mxu1 %v4204_v27 }
 0x1d9   :  { %6877 = vst [vmem:[#allocation23_spill] sm:$0xff] %v5486_v52 }
 0x1da   :  { %3869 = vrot.lane.b32.xlu1 %v3858_v5, %s4264_s15 }
 0x1db   :  { %v4217_v11 = vpop.eup %4216  ;;  %3874 = vrot.lane.b32.xlu0 %v3873_v63, %s4263_s14  ;;  %3388 = vmatpush3.bf16.msra.mxu1 %v4205_v24 }
 0x1dc   :  { %v1168_v44 = vmul.f32 %v4217_v11, %v1148_v48  ;;  %v1169_v49 = vmul.f32 %v4217_v11, %v1149_v34  ;;  %v1170_v54 = vmul.f32 %v4217_v11, %v1150_v57  ;;  %v1171_v61 = vmul.f32 %v4217_v11, %v1151_v39  ;;  %v4206_v48 = vld [vmem:[%s6807_s2 + $0x60] sm:$0xff]   ;;  %v1273_v57 = vld [vmem:[#allocation2 + $0x28] sm:$0xff] }
 0x1dd   :  { %v1174_v19 = vmul.f32 %v4217_v11, %v1154_v56  ;;  %v1167_v30 = vmul.f32 %v4217_v11, %v1147_v1  ;;  %v1172_v59 = vmul.f32 %v4217_v11, %v1152_v18  ;;  %v1173_v5 = vmul.f32 %v4217_v11, %v1153_v53  ;;  %3389 = vmatprep.subr.bf16.mxu1 %v4206_v48  ;;  %v4208_v11 = vld [vmem:[%s6807_s2 + $0x68] sm:$0xff]  }
 0x1de   :  { %v1184_v8 = vmax.f32 %v1168_v44, 0.0  ;;  %v1185_v12 = vmax.f32 %v1169_v49, 0.0  ;;  %v1186_v63 = vmax.f32 %v1170_v54, 0.0  ;;  %v1187_v60 = vmax.f32 %v1171_v61, 0.0  ;;  %3879 = vrot.lane.b32.xlu1 %v3878_v3, %s4264_s15  ;;  %v1309_v44 = vld [vmem:[#allocation2 + $0x148] sm:$0xff] }
 0x1df   :  { %v1190_v34 = vmax.f32 %v1174_v19, 0.0  ;;  %3884 = vrot.lane.b32.xlu0 %v3878_v3, %s4263_s14  ;;  %v1183_v39 = vmax.f32 %v1167_v30, 0.0  ;;  %v1188_v56 = vmax.f32 %v1172_v59, 0.0  ;;  %v1189_v1 = vmax.f32 %v1173_v5, 0.0  ;;  %v1306_v3 = vld [vmem:[#allocation2 + $0x130] sm:$0xff]  ;;  %v1312_v19 = vld [vmem:[#allocation2 + $0x160] sm:$0xff] }
 0x1e0   :  { %1261 = vst.msk [vmem:[#allocation2 + $0x128] sm:$0xff] %vm544_vm2, %v1184_v8  ;;  %1262 = vst.msk [vmem:[#allocation2 + $0x140] sm:$0xff] %vm544_vm2, %v1185_v12  ;;  %v3888_v18 = vpack.i.bf16 %v5466_v17, %v5463_v50  ;;  %v5483_v53 = vrot.slane %v5260_v13, 1  ;;  %v1427_v13 = vrot.slane %v5296_v15, 2  ;;  %v1428_v27 = vrot.slane %v1273_v57, 2  ;;  %v1315_v30 = vld [vmem:[#allocation2 + $0x178] sm:$0xff] }
 0x1e1   :  { %1263 = vst.msk [vmem:[#allocation2 + $0x158] sm:$0xff] %vm544_vm2, %v1186_v63  ;;  %1264 = vst.msk [vmem:[#allocation2 + $0x170] sm:$0xff] %vm544_vm2, %v1187_v60  ;;  %v4207_v60 = vld [vmem:[%s6807_s2 + $0x20] sm:$0xff]   ;;  %v5504_v54 = vrot.slane %v5353_v45, 1  ;;  %v1904_v61 = vrot.slane %v5067_v41, 1  ;;  %v1455_v5 = vrot.slane %v1306_v3, 2 }
 0x1e2   :  { %1267 = vst.msk [vmem:[#allocation2 + $0x1b8] sm:$0xff] %vm544_vm2, %v1190_v34  ;;  %1260 = vst.msk [vmem:[#allocation2 + $0x110] sm:$0xff] %vm544_vm2, %v1183_v39  ;;  %3889 = vrot.lane.b32.xlu1 %v3888_v18, %s4264_s15  ;;  %v3898_v49 = vpack.i.bf16 %v5486_v52, %v5483_v53  ;;  %3390 = vmatpush3.bf16.msra.mxu1 %v4207_v60  ;;  %v1429_v59 = vsel %vm217_vm0, %v1427_v13, %v1428_v27  ;;  %v1458_v24 = vrot.slane %v1309_v44, 2  ;;  %v4209_v8 = vld [vmem:[%s6807_s2 + $0x28] sm:$0xff]   ;;  %v4210_v45 = vld [vmem:[%s6807_s2 + $0x70] sm:$0xff]  }
 0x1e3   :  { %1265 = vst.msk [vmem:[#allocation2 + $0x188] sm:$0xff] %vm544_vm2, %v1188_v56  ;;  %1266 = vst.msk [vmem:[#allocation2 + $0x1a0] sm:$0xff] %vm544_vm2, %v1189_v1  ;;  %3894 = vrot.lane.b32.xlu0 %v3888_v18, %s4263_s14  ;;  %3391 = vmatprep.subr.bf16.mxu1 %v4208_v11  ;;  %v1461_v48 = vrot.slane %v1312_v19, 2  ;;  %v1464_v34 = vrot.slane %v1315_v30, 2  ;;  %v3908_v57 = vpack.i.bf16 %v1904_v61, %v5504_v54  ;;  %v4211_v3 = vld [vmem:[%s6807_s2 + $0x30] sm:$0xff]   ;;  %v4213_v52 = vld [vmem:[%s6807_s2 + $0x38] sm:$0xff]  }
 0x1e4   :  { %6878 = vst [vmem:[#allocation24_spill] sm:$0xff] %v5504_v54  ;;  %v3913_v60 = vpack.i.bf16 %v1429_v59, %v1427_v13  ;;  %v3918_v27 = vpack.i.bf16 %v5322_v20, %v5313_v21  ;;  %v1327_v59 = vld [vmem:[#allocation2 + $0x1d8] sm:$0xff]  ;;  %v1959_v54 = vrot.slane %v5073_v55, 2 }
 0x1e5   :  { %v1960_v17 = vrot.slane %v1327_v59, 2 }
 0x1e6   :  { %3899 = vrot.lane.b32.xlu1 %v3898_v49, %s4264_s15  ;;  %3392 = vmatpush3.bf16.msra.mxu1 %v4209_v8 }
 0x1e7   :  { %3904 = vrot.lane.b32.xlu0 %v3898_v49, %s4263_s14  ;;  %v5516_v41 = vld [vmem:[#allocation2 + $0x128] sm:$0xff]  ;;  %v5518_v12 = vld [vmem:[#allocation2 + $0x140] sm:$0xff]  ;;  %3393 = vmatprep.subr.bf16.mxu1 %v4210_v45  ;;  %v1961_v55 = vsel %vm217_vm0, %v1959_v54, %v1960_v17 }
 0x1e8   :  { %v5520_v63 = vld [vmem:[#allocation2 + $0x158] sm:$0xff]  ;;  %v1454_v39 = vrot.slane %v5516_v41, 2  ;;  %v1457_v56 = vrot.slane %v5518_v12, 2  ;;  %v5525_v1 = vld [vmem:[#allocation2 + $0x170] sm:$0xff] }
 0x1e9   :  { %v1460_v18 = vrot.slane %v5520_v63, 2  ;;  %v1463_v11 = vrot.slane %v5525_v1, 2 }
 0x1ea   :  { %3909 = vrot.lane.b32.xlu1 %v3908_v57, %s4264_s15  ;;  %v1456_v44 = vsel %vm217_vm0, %v1454_v39, %v1455_v5  ;;  %v1459_v49 = vsel %vm217_vm0, %v1457_v56, %v1458_v24  ;;  %v2297_v61 = vrot.slane %v1454_v39, 7  ;;  %v2306_v19 = vrot.slane %v1457_v56, 7  ;;  %v4212_v5 = vld [vmem:[%s6807_s2 + $0x78] sm:$0xff]   ;;  %3394 = vmatpush3.bf16.msra.mxu1 %v4211_v3 }
 0x1eb   :  { %3914 = vrot.lane.b32.xlu0 %v3913_v60, %s4263_s14  ;;  %v2298_v13 = vrot.slane %v1456_v44, 7  ;;  %v2307_v20 = vrot.slane %v1459_v49, 7  ;;  %v1462_v21 = vsel %vm217_vm0, %v1460_v18, %v1461_v48  ;;  %v1465_v30 = vsel %vm217_vm0, %v1463_v11, %v1464_v34  ;;  %3395 = vmatprep.subr.bf16.mxu1 %v4212_v5 }
 0x1ec   :  { %v2315_v8 = vrot.slane %v1460_v18, 7  ;;  %v2316_v35 = vrot.slane %v1462_v21, 7  ;;  %v2324_v33 = vrot.slane %v1463_v11, 7  ;;  %v2325_v57 = vrot.slane %v1465_v30, 7 }
 0x1ed   :  { %v2299_v24 = vsel %vm2218_vm5, %v2297_v61, %v2298_v13  ;;  %v2308_v45 = vsel %vm2218_vm5, %v2306_v19, %v2307_v20  ;;  %v3933_v3 = vpack.i.bf16 %v5286_v62, %v5271_v16  ;;  %v1324_v19 = vld [vmem:[#allocation2 + $0x1c0] sm:$0xff]  ;;  %v5563_v16 = vld [vmem:[#allocation2 + $0x188] sm:$0xff]  ;;  %v5573_v20 = vpack.i.bf16 %v1459_v49, %v1457_v56 }
 0x1ee   :  { %3919 = vrot.lane.b32.xlu1 %v3918_v27, %s4263_s14  ;;  %v2425_v23 = vpack.c.bf16 %v2308_v45, %v2299_v24  ;;  %v2317_v48 = vsel %vm2218_vm5, %v2315_v8, %v2316_v35  ;;  %v2326_v34 = vsel %vm2218_vm5, %v2324_v33, %v2325_v57  ;;  %v3928_v35 = vpack.i.bf16 %v5326_v2, %v5308_v0  ;;  %v1318_v33 = vld [vmem:[#allocation2 + $0x190] sm:$0xff]  ;;  %v5565_v13 = vld [vmem:[#allocation2 + $0x1a0] sm:$0xff]  ;;  %v5567_v2 = vld [vmem:[#allocation2 + $0x1b8] sm:$0xff] }
 0x1ef   :  { %3924 = vrot.lane.b32.xlu0 %v3913_v60, %s4262_s30  ;;  %v2428_v61 = vpack.c.bf16 %v2326_v34, %v2317_v48  ;;  %3396 = vmatpush3.bf16.msra.mxu1 %v4213_v52  ;;  %v1467_v62 = vrot.slane %v1318_v33, 2  ;;  %v1706_v60 = vrot.slane %v1324_v19, 2  ;;  %v5569_v0 = vpack.i.bf16 %v1456_v44, %v1454_v39  ;;  %v5649_v19 = vld [vmem:[#allocation2 + $0x110] sm:$0xff] }
 0x1f0   :  { %3494 = vmatprep.mubr.msk.bf16.mxu0 %vm544_vm2, %v2425_v23  ;;  %3524 = vmatprep.subr.bf16.mxu1 %v5081_v14  ;;  %v1321_v23 = vld [vmem:[#allocation2 + $0x1a8] sm:$0xff]  ;;  %v5571_v52 = vpack.i.bf16 %v1462_v21, %v1460_v18  ;;  %v5577_v14 = vrot.slane %v5563_v16, 2  ;;  %v5579_v17 = vpack.i.bf16 %v1465_v30, %v1463_v11  ;;  %v2360_v8 = vrot.slane %v1959_v54, 7 }
 0x1f1   :  { %3495 = vmatmul.mubr.msk.bf16.gmra.mrb[40].mxu0 %vm544_vm2, %v2428_v61  ;;  %v1470_v59 = vrot.slane %v1321_v23, 2  ;;  %v2361_v57 = vrot.slane %v1961_v55, 7  ;;  %v3953_v39 = vpack.i.bf16 %v5339_v6, %v5290_v43  ;;  %v5589_v56 = vrot.slane %v5567_v2, 2  ;;  %v5654_v23 = vld [vmem:[#allocation2 + $0x150] sm:$0xff] }
 0x1f2   :  { %3934 = vrot.lane.b32.xlu1 %v3933_v3, %s4263_s14  ;;  %v5586_v18 = vsel %vm217_vm0, %v5577_v14, %v1467_v62  ;;  %v3948_v11 = vpack.i.bf16 %v5300_v7, %v5278_v51  ;;  %v2333_v49 = vrot.slane %v5577_v14, 7  ;;  %v3973_v61 = vpack.i.bf16 %v5381_v22, %v5368_v25  ;;  %v5647_v22 = vld [vmem:[#allocation2 + $0x108] sm:$0xff] }
 0x1f3   :  { %3929 = vrot.lane.b32.xlu0 %v3928_v35, %s4263_s14  ;;  %v2334_v54 = vrot.slane %v5586_v18, 7  ;;  %v5600_v43 = vsel %vm217_vm0, %v5589_v56, %v1706_v60  ;;  %v2351_v6 = vrot.slane %v5589_v56, 7  ;;  %v5609_v21 = vsel %vm2218_vm5, %v2360_v8, %v2361_v57  ;;  %v5669_v8 = vld [vmem:[#allocation2 + $0x198] sm:$0xff] }
 0x1f4   :  { %6879 = vst [vmem:[#allocation25_spill] sm:$0xff] %v5609_v21  ;;  %v2352_v51 = vrot.slane %v5600_v43, 7  ;;  %v3998_v55 = vpack.i.bf16 %v5649_v19, %v5647_v22  ;;  %v4008_v62 = vpack.i.bf16 %v5520_v63, %v5654_v23  ;;  %6884 = vst [vmem:[#allocation30_spill] sm:$0xff] %v5669_v8  ;;  %v5734_v34 = vrot.slane %v5567_v2, 1 }
 0x1f5   :  { %v5615_v30 = vsel %vm2218_vm5, %v2333_v49, %v2334_v54  ;;  %v5681_v54 = vld [vmem:[#allocation2 + $0xf8] sm:$0xff]  ;;  %v5685_v49 = vrot.slane %v5649_v19, 1 }
 0x1f6   :  { %3939 = vrot.lane.b32.xlu1 %v3918_v27, %s4262_s30  ;;  %v5592_v27 = vrot.slane %v5565_v13, 2  ;;  %6880 = vst [vmem:[#allocation26_spill] sm:$0xff] %v5615_v30  ;;  %v5619_v24 = vsel %vm2218_vm5, %v2351_v6, %v2352_v51  ;;  %v1352_v6 = vrot.slane %v5681_v54, 1  ;;  %6892 = vst [vmem:[#allocation38_spill] sm:$0xff] %v5734_v34 }
 0x1f7   :  { %3944 = vrot.lane.b32.xlu0 %v3928_v35, %s4262_s30  ;;  %6881 = vst [vmem:[#allocation27_spill] sm:$0xff] %v5619_v24  ;;  %v5638_v35 = vld [vmem:[#allocation2 + $0x138] sm:$0xff]  ;;  %6885 = vst [vmem:[#allocation31_spill] sm:$0xff] %v5685_v49 }
 0x1f8   :  { %v5605_v44 = vsel %vm217_vm0, %v5592_v27, %v1470_v59  ;;  %v2342_v5 = vrot.slane %v5592_v27, 7  ;;  %v3993_v25 = vpack.i.bf16 %v5518_v12, %v5638_v35  ;;  %v5666_v59 = vld [vmem:[#allocation2 + $0x180] sm:$0xff] }
 0x1f9   :  { %v2343_v7 = vrot.slane %v5605_v44, 7  ;;  %6883 = vst [vmem:[#allocation29_spill] sm:$0xff] %v5666_v59  ;;  %v4028_v57 = vpack.i.bf16 %v5563_v16, %v5666_v59 }
 0x1fa   :  { %3954 = vrot.lane.b32.xlu1 %v3953_v39, %s4263_s14 }
 0x1fb   :  { %3949 = vrot.lane.b32.xlu0 %v3948_v11, %s4263_s14  ;;  %v5625_v48 = vsel %vm2218_vm5, %v2342_v5, %v2343_v7  ;;  %v5693_v7 = vrot.slane %v5516_v41, 1  ;;  %v5696_v5 = vrot.slane %v5518_v12, 1  ;;  %v5712_v12 = vrot.slane %v5525_v1, 1 }
 0x1fc   :  { %6882 = vst [vmem:[#allocation28_spill] sm:$0xff] %v5625_v48 }
 0x1fd   :  { %6886 = vst [vmem:[#allocation32_spill] sm:$0xff] %v5693_v7  ;;  %6887 = vst [vmem:[#allocation33_spill] sm:$0xff] %v5696_v5 }
 0x1fe   :  { %3959 = vrot.lane.b32.xlu1 %v3933_v3, %s4262_s30  ;;  %v5635_v3 = vld [vmem:[#allocation2 + $0x120] sm:$0xff]  ;;  %6889 = vst [vmem:[#allocation35_spill] sm:$0xff] %v5712_v12 }
 0x1ff   :  { %3964 = vrot.lane.b32.xlu0 %v3948_v11, %s4262_s30  ;;  %v3988_v33 = vpack.i.bf16 %v5516_v41, %v5635_v3  ;;  %v1322_v11 = vld [vmem:[#allocation2 + $0x1b0] sm:$0xff]  ;;  %v5709_v41 = vrot.slane %v5520_v63, 1 }
 0x200   :  { %v5690_v51 = vpack.i.bf16 %v5567_v2, %v1322_v11  ;;  %v5722_v11 = vrot.slane %v5565_v13, 1 }
 0x201   :  { %6888 = vst [vmem:[#allocation34_spill] sm:$0xff] %v5709_v41 }
 0x202   :  { %3974 = vrot.lane.b32.xlu1 %v3973_v61, %s4263_s14  ;;  %v4053_v61 = vpack.i.bf16 %v5685_v49, %v1352_v6  ;;  %6891 = vst [vmem:[#allocation37_spill] sm:$0xff] %v5722_v11  ;;  %v1451_v6 = vrot.slane %v5649_v19, 2 }
 0x203   :  { %3969 = vrot.lane.b32.xlu0 %v5429_v28, %s4263_s14 }
 0x206   :  { %3979 = vrot.lane.b32.xlu1 %v3953_v39, %s4262_s30  ;;  %v5676_v39 = vpack.i.bf16 %v5565_v13, %v5669_v8 }
 0x207   :  { %3984 = vrot.lane.b32.xlu0 %v5429_v28, %s4262_s30  ;;  %v5657_v28 = vld [vmem:[#allocation2 + $0x168] sm:$0xff] }
 0x208   :  { %v4013_v60 = vpack.i.bf16 %v5525_v1, %v5657_v28 }
 0x20a   :  { %3989 = vrot.lane.b32.xlu1 %v3988_v33, %s4262_s30 }
 0x20b   :  { %3994 = vrot.lane.b32.xlu0 %v3993_v25, %s4262_s30 }
 0x20e   :  { %4004 = vrot.lane.b32.xlu1 %v3988_v33, %s4264_s15  ;;  %v4058_v33 = vpack.i.bf16 %v5696_v5, %v5693_v7  ;;  %v4228_v5 = vld [vmem:[#allocation2 + $0x8] sm:$0xff] }
 0x20f   :  { %3999 = vrot.lane.b32.xlu0 %v3998_v55, %s4264_s15  ;;  %v5706_v55 = vpop.permute.xlu0 %3784 }
 0x212   :  { %4009 = vrot.lane.b32.xlu1 %v4008_v62, %s4262_s30 }
 0x213   :  { %4014 = vrot.lane.b32.xlu0 %v4013_v60, %s4262_s30  ;;  %v5727_v1 = vpop.permute.xlu0 %3794 }
 0x216   :  { %4024 = vrot.lane.b32.xlu1 %v4008_v62, %s4264_s15  ;;  %v1303_v62 = vld [vmem:[#allocation2 + $0x118] sm:$0xff] }
 0x217   :  { %4019 = vrot.lane.b32.xlu0 %v3993_v25, %s4264_s15  ;;  %v5704_v25 = vpop.permute.xlu1 %3779 }
 0x21a   :  { %4029 = vrot.lane.b32.xlu1 %v4028_v57, %s4262_s30 }
 0x21b   :  { %4034 = vrot.lane.b32.xlu0 %v5676_v39, %s4262_s30  ;;  %v5725_v63 = vpop.permute.xlu1 %3789 }
 0x21e   :  { %4044 = vrot.lane.b32.xlu1 %v4028_v57, %s4264_s15  ;;  %v5719_v57 = vrot.slane %v5563_v16, 1 }
 0x21f   :  { %4039 = vrot.lane.b32.xlu0 %v4013_v60, %s4264_s15  ;;  %v4068_v60 = vpack.i.bf16 %v5712_v12, %v5709_v41  ;;  %v3781_v12 = vunpack.i.l.bf16 %v5704_v25 }
 0x220   :  { %6890 = vst [vmem:[#allocation36_spill] sm:$0xff] %v5719_v57  ;;  %v4078_v16 = vpack.i.bf16 %v5722_v11, %v5719_v57 }
 0x222   :  { %4049 = vrot.lane.b32.xlu1 %v5690_v51, %s4262_s30 }
 0x223   :  { %4054 = vrot.lane.b32.xlu0 %v4053_v61, %s4263_s14  ;;  %v1452_v61 = vrot.slane %v1303_v62, 2 }
 0x225   :  { %v1453_v13 = vsel %vm217_vm0, %v1451_v6, %v1452_v61 }
 0x226   :  { %4059 = vrot.lane.b32.xlu1 %v4058_v33, %s4264_s15 }
 0x227   :  { %4064 = vrot.lane.b32.xlu0 %v4058_v33, %s4263_s14  ;;  %v4227_v33 = vld [vmem:[#allocation2 + $0x1d0] sm:$0xff] }
 0x228   :  { %v1905_v45 = vrot.slane %v4227_v33, 1 }
 0x22a   :  { %4069 = vrot.lane.b32.xlu1 %v4068_v60, %s4264_s15  ;;  %v4088_v62 = vpack.i.bf16 %v1905_v45, %v5734_v34 }
 0x22b   :  { %4074 = vrot.lane.b32.xlu0 %v4068_v60, %s4263_s14  ;;  %v4093_v60 = vpack.i.bf16 %v1453_v13, %v1451_v6 }
 0x22e   :  { %4079 = vrot.lane.b32.xlu1 %v4078_v16, %s4264_s15 }
 0x22f   :  { %4084 = vrot.lane.b32.xlu0 %v4078_v16, %s4263_s14 }
 0x230   :  { %v5739_v24 = vpop.permute.xlu0 %3804  ;;  %v5741_v21 = vpop.permute.xlu1 %3799 }
 0x232   :  { %4089 = vrot.lane.b32.xlu1 %v4088_v62, %s4264_s15  ;;  %v4133_v62 = vpack.i.bf16 %v5586_v18, %v5577_v14  ;;  %v4148_v18 = vpack.i.bf16 %v5605_v44, %v5592_v27 }
 0x233   :  { %4094 = vrot.lane.b32.xlu0 %v4093_v60, %s4263_s14 }
 0x234   :  { %v5746_v33 = vpop.permute.xlu1 %3814  ;;  %v5748_v2 = vpop.permute.xlu0 %3809 }
 0x235   :  { %v3812_v27 = vunpack.i.h.bf16 %v5748_v2  ;;  %v3811_v44 = vunpack.i.l.bf16 %v5748_v2  ;;  %v6897_v8 = vunpack.i.l.bf16 %v5746_v33 }
 0x236   :  { %4099 = vrot.lane.b32.xlu1 %v5569_v0, %s4263_s14 }
 0x237   :  { %4104 = vrot.lane.b32.xlu0 %v4093_v60, %s4262_s30 }
 0x238   :  { %v5753_v61 = vpop.permute.xlu1 %3819  ;;  %v5755_v16 = vpop.permute.xlu0 %3824 }
 0x23a   :  { %4114 = vrot.lane.b32.xlu1 %v5571_v52, %s4263_s14 }
 0x23b   :  { %4109 = vrot.lane.b32.xlu0 %v5573_v20, %s4263_s14 }
 0x23c   :  { %v5761_v45 = vpop.permute.xlu1 %3834 }
 0x23d   :  { %v5763_v6 = vpop.permute.xlu0 %3829 }
 0x23e   :  { %4119 = vrot.lane.b32.xlu1 %v5569_v0, %s4262_s30 }
 0x23f   :  { %4124 = vrot.lane.b32.xlu0 %v5573_v20, %s4262_s30  ;;  %v4153_v20 = vpack.i.bf16 %v5600_v43, %v5589_v56 }
 0x240   :  { %v5769_v13 = vpop.permute.xlu1 %3839 }
 0x241   :  { %v5773_v60 = vpop.permute.xlu0 %3844 }
 0x242   :  { %4134 = vrot.lane.b32.xlu1 %v4133_v62, %s4263_s14 }
 0x243   :  { %4129 = vrot.lane.b32.xlu0 %v5579_v17, %s4263_s14 }
 0x244   :  { %v5778_v30 = vpop.permute.xlu1 %3854 }
 0x245   :  { %v5780_v48 = vpop.permute.xlu0 %3849 }
 0x246   :  { %4139 = vrot.lane.b32.xlu1 %v5571_v52, %s4262_s30  ;;  %v1268_v52 = vld [vmem:[#allocation2] sm:$0xff] }
 0x247   :  { %4144 = vrot.lane.b32.xlu0 %v5579_v17, %s4262_s30  ;;  %v3782_v17 = vunpack.i.h.bf16 %v5704_v25 }
 0x248   :  { %v5786_v0 = vpop.permute.xlu1 %3859 }
 0x249   :  { %v5790_v14 = vpop.permute.xlu0 %3864 }
 0x24a   :  { %4154 = vrot.lane.b32.xlu1 %v4153_v20, %s4263_s14 }
 0x24b   :  { %4149 = vrot.lane.b32.xlu0 %v4148_v18, %s4263_s14 }
 0x24c   :  { %v5796_v11 = vpop.permute.xlu1 %3869 }
 0x24d   :  { %v3875_v34 = vpop.permute.xlu0 %3874 }
 0x24e   :  { %v3876_v57 = vunpack.i.l.bf16 %v3875_v34  ;;  %4159 = vrot.lane.b32.xlu1 %v4133_v62, %s4262_s30 }
 0x24f   :  { %4164 = vrot.lane.b32.xlu0 %v4148_v18, %s4262_s30 }
 0x250   :  { %v1962_v20 = vsel %vm544_vm2, %v1268_v52, %v3876_v57  ;;  %v1963_v41 = vsel %vm544_vm2, %v4228_v5, %v3876_v57  ;;  %v5808_v7 = vpop.permute.xlu1 %3879 }
 0x251   :  { %v3885_v18 = vpop.permute.xlu0 %3884  ;;  %v1994_v56 = vsel %vm561_vm3, %v1962_v20, %v3781_v12  ;;  %v1995_v43 = vsel %vm561_vm3, %v1963_v41, %v3782_v17  ;;  %v3877_v20 = vunpack.i.h.bf16 %v3875_v34  ;;  %v3881_v41 = vunpack.i.l.bf16 %v5808_v7 }
 0x252   :  { %4174 = vrot.lane.b32.xlu1 %v5690_v51, %s4264_s15  ;;  %v2026_v2 = vsel %vm578_vm4, %v1994_v56, %v3811_v44  ;;  %v2027_v52 = vsel %vm578_vm4, %v1995_v43, %v3812_v27  ;;  %v3887_v25 = vunpack.i.h.bf16 %v3885_v18  ;;  %v3886_v59 = vunpack.i.l.bf16 %v3885_v18 }
 0x253   :  { %4169 = vrot.lane.b32.xlu0 %v5676_v39, %s4264_s15  ;;  %v2219_v56 = vrot.slane %v2026_v2, 7  ;;  %v2220_v43 = vrot.slane %v2027_v52, 7  ;;  %v1964_v57 = vsel %vm544_vm2, %v5282_v32, %v3877_v20  ;;  %v1965_v12 = vsel %vm544_vm2, %v5296_v15, %v3877_v20 }
 0x254   :  { %v5830_v51 = vpop.permute.xlu1 %3889  ;;  %v5858_v2 = vsel %vm544_vm2, %v5273_v47, %v3887_v25  ;;  %v5862_v49 = vsel %vm544_vm2, %v5292_v29, %v3887_v25  ;;  %v5866_v62 = vsel %vm544_vm2, %v5275_v42, %v3886_v59  ;;  %v5870_v32 = vsel %vm544_vm2, %v5294_v4, %v3886_v59 }
 0x255   :  { %v3895_v17 = vpop.permute.xlu0 %3894  ;;  %v5881_v25 = vsel %vm2218_vm5, %v2219_v56, %v2220_v43 }
 0x256   :  { %v3897_v27 = vunpack.i.h.bf16 %v3895_v17  ;;  %v3896_v52 = vunpack.i.l.bf16 %v3895_v17 }
 0x258   :  { %v5845_v39 = vpop.permute.xlu1 %3899  ;;  %v5878_v17 = vsel %vm544_vm2, %v5345_v36, %v3897_v27  ;;  %v5885_v42 = vsel %vm544_vm2, %v5258_v10, %v3897_v27  ;;  %v5889_v34 = vsel %vm544_vm2, %v5343_v38, %v3896_v52  ;;  %v5893_v47 = vsel %vm544_vm2, %v5256_v26, %v3896_v52 }
 0x259   :  { %v3905_v44 = vpop.permute.xlu0 %3904 }
 0x25a   :  { %v3907_v15 = vunpack.i.h.bf16 %v3905_v44  ;;  %v3906_v4 = vunpack.i.l.bf16 %v3905_v44  ;;  %v6893_v44 = vunpack.i.h.bf16 %v5741_v21 }
 0x25c   :  { %v5872_v20 = vpop.permute.xlu1 %3909  ;;  %v5899_v43 = vsel %vm544_vm2, %v5401_v37, %v3907_v15  ;;  %v5903_v10 = vsel %vm544_vm2, %v5332_v40, %v3907_v15  ;;  %v5917_v40 = vsel %vm544_vm2, %v5390_v46, %v3906_v4  ;;  %v4229_v15 = vld [vmem:[#allocation2 + $0x98] sm:$0xff] }
 0x25d   :  { %v3915_v29 = vpop.permute.xlu0 %3914 }
 0x25e   :  { %v3917_v59 = vunpack.i.h.bf16 %v3915_v29  ;;  %v3916_v5 = vunpack.i.l.bf16 %v3915_v29  ;;  %v6894_v29 = vunpack.i.l.bf16 %v5741_v21 }
 0x260   :  { %v2059_v38 = vsel %vm544_vm2, %v5427_v58, %v3917_v59  ;;  %v2058_v27 = vsel %vm544_vm2, %v5427_v58, %v3916_v5  ;;  %v3920_v26 = vpop.permute.xlu1 %3919  ;;  %v5920_v59 = vsel %vm544_vm2, %v4229_v15, %v3906_v4 }
 0x261   :  { %v2091_v52 = vsel %vm561_vm3, %v2059_v38, %v6893_v44  ;;  %v2090_v37 = vsel %vm561_vm3, %v2058_v27, %v6894_v29  ;;  %v3922_v36 = vunpack.i.h.bf16 %v3920_v26  ;;  %v3921_v56 = vunpack.i.l.bf16 %v3920_v26  ;;  %v3925_v18 = vpop.permute.xlu0 %3924 }
 0x262   :  { %v3927_v58 = vunpack.i.h.bf16 %v3925_v18  ;;  %v3926_v5 = vunpack.i.l.bf16 %v3925_v18  ;;  %v2122_v27 = vsel %vm578_vm4, %v2090_v37, %v3881_v41  ;;  %v2123_v26 = vsel %vm578_vm4, %v2091_v52, %v3881_v41 }
 0x263   :  { %v2061_v38 = vsel %vm544_vm2, %v5446_v9, %v3922_v36  ;;  %v2060_v21 = vsel %vm544_vm2, %v5446_v9, %v3921_v56  ;;  %v6895_v44 = vunpack.i.h.bf16 %v5739_v24  ;;  %v6896_v29 = vunpack.i.l.bf16 %v5739_v24 }
 0x264   :  { %v1996_v18 = vsel %vm561_vm3, %v1964_v57, %v3926_v5  ;;  %v1997_v15 = vsel %vm561_vm3, %v1965_v12, %v3927_v58  ;;  %v3935_v36 = vpop.permute.xlu1 %3934  ;;  %v6898_v56 = vunpack.i.h.bf16 %v5746_v33  ;;  %v6899_v58 = vunpack.i.h.bf16 %v5808_v7 }
 0x265   :  { %v2093_v46 = vsel %vm561_vm3, %v2061_v38, %v6895_v44  ;;  %v2092_v4 = vsel %vm561_vm3, %v2060_v21, %v6896_v29  ;;  %v2028_v9 = vsel %vm578_vm4, %v1996_v18, %v6897_v8  ;;  %v3937_v52 = vunpack.i.h.bf16 %v3935_v36  ;;  %v3930_v38 = vpop.permute.xlu0 %3929 }
 0x266   :  { %v2029_v41 = vsel %vm578_vm4, %v1997_v15, %v6898_v56  ;;  %v3936_v37 = vunpack.i.l.bf16 %v3935_v36  ;;  %v3932_v44 = vunpack.i.h.bf16 %v3930_v38  ;;  %v3931_v57 = vunpack.i.l.bf16 %v3930_v38 }
 0x267   :  { %v2124_v8 = vsel %vm578_vm4, %v2092_v4, %v6899_v58  ;;  %v2222_v5 = vrot.slane %v2122_v27, 7  ;;  %v2223_v33 = vrot.slane %v2123_v26, 7  ;;  %v2228_v29 = vrot.slane %v2028_v9, 7 }
 0x268   :  { %v2064_v12 = vsel %vm544_vm2, %v5463_v50, %v3936_v37  ;;  %v2229_v18 = vrot.slane %v2029_v41, 7  ;;  %v2065_v15 = vsel %vm544_vm2, %v5463_v50, %v3937_v52  ;;  %v3940_v36 = vpop.permute.xlu1 %3939  ;;  %v6900_v56 = vmov %v6899_v58 }
 0x269   :  { %v2125_v24 = vsel %vm578_vm4, %v2093_v46, %v6900_v56  ;;  %v6901_v38 = vunpack.i.l.bf16 %v5755_v16  ;;  %v2063_v21 = vsel %vm544_vm2, %v5449_v31, %v3932_v44  ;;  %v3942_v4 = vunpack.i.h.bf16 %v3940_v36  ;;  %v3945_v26 = vpop.permute.xlu0 %3944 }
 0x26a   :  { %v3941_v27 = vunpack.i.l.bf16 %v3940_v36  ;;  %v2062_v9 = vsel %vm544_vm2, %v5449_v31, %v3931_v57  ;;  %v3947_v41 = vunpack.i.h.bf16 %v3945_v26  ;;  %v3946_v50 = vunpack.i.l.bf16 %v3945_v26 }
 0x26b   :  { %v2096_v37 = vsel %vm561_vm3, %v2064_v12, %v6901_v38  ;;  %v2231_v52 = vrot.slane %v2124_v8, 7  ;;  %v6902_v7 = vunpack.i.h.bf16 %v5755_v16  ;;  %v1999_v12 = vsel %vm561_vm3, %v5870_v32, %v3942_v4 }
 0x26c   :  { %v1998_v58 = vsel %vm561_vm3, %v5866_v62, %v3941_v27  ;;  %v2232_v44 = vrot.slane %v2125_v24, 7  ;;  %v6903_v36 = vunpack.i.h.bf16 %v5753_v61  ;;  %v6904_v31 = vunpack.i.l.bf16 %v5763_v6  ;;  %v3955_v62 = vpop.permute.xlu1 %3954 }
 0x26d   :  { %v2097_v46 = vsel %vm561_vm3, %v2065_v15, %v6902_v7  ;;  %v2000_v16 = vsel %vm561_vm3, %v5858_v2, %v3946_v50  ;;  %v2001_v8 = vsel %vm561_vm3, %v5862_v49, %v3947_v41  ;;  %v6905_v15 = vunpack.i.l.bf16 %v5753_v61  ;;  %v3950_v4 = vpop.permute.xlu0 %3949 }
 0x26e   :  { %v2095_v56 = vsel %vm561_vm3, %v2063_v21, %v6903_v36  ;;  %v5974_v57 = vsel %vm578_vm4, %v1998_v58, %v6904_v31  ;;  %v6906_v24 = vunpack.i.h.bf16 %v5763_v6  ;;  %v2224_v38 = vsel %vm2218_vm5, %v2222_v5, %v2223_v33 }
 0x26f   :  { %v2094_v32 = vsel %vm561_vm3, %v2062_v9, %v6905_v15  ;;  %v2230_v27 = vsel %vm2218_vm5, %v2228_v29, %v2229_v18  ;;  %v6907_v2 = vunpack.i.l.bf16 %v5761_v45  ;;  %v6908_v49 = vunpack.i.h.bf16 %v5761_v45 }
 0x270   :  { %v5986_v21 = vsel %vm578_vm4, %v1999_v12, %v6906_v24  ;;  %v2233_v6 = vsel %vm2218_vm5, %v2231_v52, %v2232_v44  ;;  %v3957_v9 = vunpack.i.h.bf16 %v3955_v62  ;;  %v2237_v41 = vrot.slane %v5974_v57, 7  ;;  %v3960_v52 = vpop.permute.xlu1 %3959 }
 0x271   :  { %v5993_v26 = vsel %vm578_vm4, %v2000_v16, %v6907_v2  ;;  %v5998_v61 = vsel %vm578_vm4, %v2001_v8, %v6908_v49  ;;  %v2412_v50 = vpack.c.bf16 %v2233_v6, %v2224_v38  ;;  %v3956_v5 = vunpack.i.l.bf16 %v3955_v62  ;;  %v3965_v8 = vpop.permute.xlu0 %3964 }
 0x272   :  { %v3952_v33 = vunpack.i.h.bf16 %v3950_v4  ;;  %v2069_v29 = vsel %vm544_vm2, %v5483_v53, %v3957_v9  ;;  %v2411_v18 = vpack.c.bf16 %v2230_v27, %v5881_v25  ;;  %v6909_v7 = vunpack.i.l.bf16 %v5830_v51 }
 0x273   :  { %v2238_v44 = vrot.slane %v5986_v21, 7  ;;  %v2246_v36 = vrot.slane %v5993_v26, 7  ;;  %v2247_v31 = vrot.slane %v5998_v61, 7  ;;  %2635 = vmatprep.mubr.bf16.mxu1 %v2412_v50  ;;  %v3951_v16 = vunpack.i.l.bf16 %v3950_v4 }
 0x274   :  { %v2126_v45 = vsel %vm578_vm4, %v2094_v32, %v6909_v7  ;;  %v6910_v58 = vmov %v6909_v7  ;;  %v2068_v25 = vsel %vm544_vm2, %v5483_v53, %v3956_v5  ;;  %v6911_v62 = vunpack.i.h.bf16 %v5773_v60  ;;  %v6912_v32 = vld [vmem:[#allocation22_spill] sm:$0xff]  ;;  %2636 = vmatmul.mubr.bf16.vlgmr.msra.gmra.mrb[16].mxu1 %v2411_v18  ;;  %v3975_v50 = vpop.permute.xlu1 %3974 }
 0x275   :  { %v2127_v12 = vsel %vm578_vm4, %v2095_v56, %v6910_v58  ;;  %v2067_v56 = vsel %vm544_vm2, %v6912_v32, %v3952_v33  ;;  %v6913_v24 = vunpack.i.h.bf16 %v5830_v51  ;;  %v2240_v27 = vrot.slane %v2126_v45, 7  ;;  %v4230_v53 = vld [vmem:[%s6807_s2 + $0x80] sm:$0xff]  }
 0x276   :  { %v2101_v15 = vsel %vm561_vm3, %v2069_v29, %v6911_v62  ;;  %v2241_v2 = vrot.slane %v2127_v12, 7  ;;  %3526 = vmatpush3.bf16.msra.mxu1 %v4230_v53  ;;  %v3962_v61 = vunpack.i.h.bf16 %v3960_v52  ;;  %v3961_v6 = vunpack.i.l.bf16 %v3960_v52  ;;  %v3970_v29 = vpop.permute.xlu0 %3969 }
 0x277   :  { %v2128_v21 = vsel %vm578_vm4, %v2096_v37, %v6913_v24  ;;  %v6914_v38 = vmov %v6913_v24  ;;  %v3967_v9 = vunpack.i.h.bf16 %v3965_v8  ;;  %v4231_v37 = vld [vmem:[%s6807_s2 + $0x88] sm:$0xff]   ;;  %v2066_v51 = vsel %vm544_vm2, %v6912_v32, %v3951_v16 }
 0x278   :  { %v2129_v4 = vsel %vm578_vm4, %v2097_v46, %v6914_v38  ;;  %v2249_v26 = vrot.slane %v2128_v21, 7  ;;  %3525 = vmatprep.subr.bf16.mxu1 %v4231_v37  ;;  %v2242_v46 = vsel %vm2218_vm5, %v2240_v27, %v2241_v2  ;;  %v3966_v5 = vunpack.i.l.bf16 %v3965_v8 }
 0x279   :  { %v2250_v49 = vrot.slane %v2129_v4, 7  ;;  %v3976_v33 = vunpack.i.l.bf16 %v3975_v50  ;;  %v2002_v7 = vsel %vm561_vm3, %v5889_v34, %v3961_v6  ;;  %v2003_v45 = vsel %vm561_vm3, %v5893_v47, %v3962_v61  ;;  %v3980_v4 = vpop.permute.xlu1 %3979  ;;  %v6922_v61 = vld [vmem:[#allocation24_spill] sm:$0xff] }
 0x27a   :  { %v2005_v58 = vsel %vm561_vm3, %v5885_v42, %v3967_v9  ;;  %v6915_v52 = vunpack.i.l.bf16 %v5780_v48  ;;  %v6916_v8 = vunpack.i.h.bf16 %v5780_v48  ;;  %v2004_v34 = vsel %vm561_vm3, %v5878_v17, %v3966_v5  ;;  %3527 = vmatpush3.bf16.msra.mxu1 %v4231_v37  ;;  %v3985_v53 = vpop.permute.xlu0 %3984 }
 0x27b   :  { %v2251_v18 = vsel %vm2218_vm5, %v2249_v26, %v2250_v49  ;;  %v6917_v47 = vunpack.i.h.bf16 %v5769_v13  ;;  %v6918_v42 = vunpack.i.l.bf16 %v5769_v13  ;;  %v6919_v21 = vunpack.i.l.bf16 %v5778_v30 }
 0x27c   :  { %v2415_v12 = vpack.c.bf16 %v2251_v18, %v2242_v46  ;;  %v6046_v16 = vsel %vm578_vm4, %v2002_v7, %v6915_v52  ;;  %v6051_v62 = vsel %vm578_vm4, %v2003_v45, %v6916_v8  ;;  %v3977_v48 = vunpack.i.h.bf16 %v3975_v50 }
 0x27d   :  { %v2099_v32 = vsel %vm561_vm3, %v2067_v56, %v6917_v47  ;;  %v2098_v24 = vsel %vm561_vm3, %v2066_v51, %v6918_v42  ;;  %v2036_v38 = vsel %vm578_vm4, %v2004_v34, %v6919_v21  ;;  %v6920_v27 = vunpack.i.l.bf16 %v5773_v60 }
 0x27e   :  { %2643 = vmatprep.mubr.bf16.mxu1 %v2415_v12  ;;  %v2255_v17 = vrot.slane %v6046_v16, 7  ;;  %v2256_v26 = vrot.slane %v6051_v62, 7  ;;  %v6921_v56 = vunpack.i.h.bf16 %v5778_v30  ;;  %v2264_v49 = vrot.slane %v2036_v38, 7  ;;  %v6099_v52 = vpop.permute.xlu0 %3994 }
 0x27f   :  { %v2100_v2 = vsel %vm561_vm3, %v2068_v25, %v6920_v27  ;;  %v2072_v6 = vsel %vm544_vm2, %v6922_v61, %v3976_v33  ;;  %v3972_v9 = vunpack.i.h.bf16 %v3970_v29  ;;  %v3971_v50 = vunpack.i.l.bf16 %v3970_v29 }
 0x280   :  { %v2037_v13 = vsel %vm578_vm4, %v2005_v58, %v6921_v56  ;;  %v2239_v60 = vsel %vm2218_vm5, %v2237_v41, %v2238_v44  ;;  %v2248_v25 = vsel %vm2218_vm5, %v2246_v36, %v2247_v31  ;;  %v6923_v37 = vunpack.i.l.bf16 %v5845_v39  ;;  %v6089_v41 = vpop.permute.xlu1 %3989  ;;  %v6927_v31 = vld [vmem:[#allocation23_spill] sm:$0xff] }
 0x281   :  { %v2265_v5 = vrot.slane %v2037_v13, 7  ;;  %v2073_v33 = vsel %vm544_vm2, %v6922_v61, %v3977_v48  ;;  %v2414_v18 = vpack.c.bf16 %v2248_v25, %v2239_v60  ;;  %v6925_v29 = vunpack.i.h.bf16 %v5845_v39 }
 0x282   :  { %v2130_v51 = vsel %vm578_vm4, %v2098_v24, %v6923_v37  ;;  %v6924_v30 = vmov %v6923_v37  ;;  %v6926_v44 = vunpack.i.l.bf16 %v5706_v55  ;;  %v2071_v7 = vsel %vm544_vm2, %v6927_v31, %v3972_v9  ;;  %v6119_v61 = vpop.permute.xlu0 %3999 }
 0x283   :  { %v2131_v46 = vsel %vm578_vm4, %v2099_v32, %v6924_v30  ;;  %v2132_v57 = vsel %vm578_vm4, %v2100_v2, %v6925_v29  ;;  %v6928_v45 = vmov %v6925_v29  ;;  %v2258_v12 = vrot.slane %v2130_v51, 7  ;;  %2644 = vmatmul.mubr.bf16.gmra.mrb[20].mxu1 %v2414_v18 }
 0x284   :  { %v2104_v36 = vsel %vm561_vm3, %v2072_v6, %v6926_v44  ;;  %v2133_v58 = vsel %vm578_vm4, %v2101_v15, %v6928_v45  ;;  %v2259_v16 = vrot.slane %v2131_v46, 7  ;;  %v2267_v8 = vrot.slane %v2132_v57, 7  ;;  %v6110_v27 = vpop.permute.xlu1 %4004 }
 0x285   :  { %v2268_v62 = vrot.slane %v2133_v58, 7  ;;  %v3982_v34 = vunpack.i.h.bf16 %v3980_v4  ;;  %v2070_v47 = vsel %vm544_vm2, %v6927_v31, %v3971_v50  ;;  %v3981_v32 = vunpack.i.l.bf16 %v3980_v4 }
 0x286   :  { %v3987_v42 = vunpack.i.h.bf16 %v3985_v53  ;;  %v3986_v24 = vunpack.i.l.bf16 %v3985_v53  ;;  %v6929_v21 = vunpack.i.h.bf16 %v5786_v0  ;;  %v2260_v15 = vsel %vm2218_vm5, %v2258_v12, %v2259_v16  ;;  %v6151_v58 = vpop.permute.xlu0 %4014 }
 0x287   :  { %v2269_v38 = vsel %vm2218_vm5, %v2267_v8, %v2268_v62  ;;  %v2007_v48 = vsel %vm561_vm3, %v5920_v59, %v3982_v34  ;;  %v2006_v56 = vsel %vm561_vm3, %v5917_v40, %v3981_v32  ;;  %v6930_v4 = vunpack.i.h.bf16 %v5790_v14 }
 0x288   :  { %v2103_v39 = vsel %vm561_vm3, %v2071_v7, %v6929_v21  ;;  %v2418_v2 = vpack.c.bf16 %v2269_v38, %v2260_v15  ;;  %v2008_v53 = vsel %vm561_vm3, %v5899_v43, %v3986_v24  ;;  %v6931_v6 = vunpack.i.l.bf16 %v5786_v0  ;;  %v6140_v57 = vpop.permute.xlu1 %4009 }
 0x289   :  { %v2039_v13 = vsel %vm578_vm4, %v2007_v48, %v6930_v4  ;;  %v6932_v59 = vunpack.i.l.bf16 %v5790_v14  ;;  %v2009_v40 = vsel %vm561_vm3, %v5903_v10, %v3987_v42  ;;  %v6933_v60 = vunpack.i.l.bf16 %v5796_v11  ;;  %v1298_v48 = vld [vmem:[#allocation2 + $0xf0] sm:$0xff] }
 0x28a   :  { %v2102_v9 = vsel %vm561_vm3, %v2070_v47, %v6931_v6  ;;  %v6934_v37 = vunpack.i.h.bf16 %v5706_v55  ;;  %2651 = vmatprep.mubr.bf16.mxu1 %v2418_v2  ;;  %v2274_v0 = vrot.slane %v2039_v13, 7  ;;  %v6935_v30 = vunpack.i.h.bf16 %v5796_v11  ;;  %v6160_v47 = vpop.permute.xlu0 %4019 }
 0x28b   :  { %v2038_v50 = vsel %vm578_vm4, %v2006_v56, %v6932_v59  ;;  %v2040_v25 = vsel %vm578_vm4, %v2008_v53, %v6933_v60  ;;  %v2257_v29 = vsel %vm2218_vm5, %v2255_v17, %v2256_v26  ;;  %v2266_v10 = vsel %vm2218_vm5, %v2264_v49, %v2265_v5 }
 0x28c   :  { %v2105_v43 = vsel %vm561_vm3, %v2073_v33, %v6934_v37  ;;  %v2273_v51 = vrot.slane %v2038_v50, 7  ;;  %v2041_v14 = vsel %vm578_vm4, %v2009_v40, %v6935_v30  ;;  %v2282_v46 = vrot.slane %v2040_v25, 7  ;;  %v6157_v62 = vpop.permute.xlu1 %4024 }
 0x28d   :  { %v2283_v18 = vrot.slane %v2041_v14, 7  ;;  %v2417_v44 = vpack.c.bf16 %v2266_v10, %v2257_v29  ;;  %v6936_v55 = vunpack.i.l.bf16 %v5872_v20  ;;  %v6938_v11 = vunpack.i.h.bf16 %v5872_v20 }
 0x28e   :  { %v2275_v32 = vsel %vm2218_vm5, %v2273_v51, %v2274_v0  ;;  %v6166_v21 = vpop.permute.xlu0 %4034  ;;  %v3792_v4 = vunpack.i.h.bf16 %v5725_v63  ;;  %v3791_v13 = vunpack.i.l.bf16 %v5725_v63  ;;  %v3991_v59 = vunpack.i.l.bf16 %v6089_v41 }
 0x28f   :  { %v2134_v33 = vsel %vm578_vm4, %v2102_v9, %v6936_v55  ;;  %v6937_v31 = vmov %v6936_v55  ;;  %v2136_v45 = vsel %vm578_vm4, %v2104_v36, %v6938_v11  ;;  %v6939_v17 = vmov %v6938_v11  ;;  %2652 = vmatmul.mubr.bf16.gmra.mrb[24].mxu1 %v2417_v44  ;;  %v6943_v55 = vld [vmem:[#allocation32_spill] sm:$0xff] }
 0x290   :  { %v2135_v7 = vsel %vm578_vm4, %v2103_v39, %v6937_v31  ;;  %v2137_v26 = vsel %vm578_vm4, %v2105_v43, %v6939_v17  ;;  %v2276_v49 = vrot.slane %v2134_v33, 7  ;;  %v2285_v12 = vrot.slane %v2136_v45, 7  ;;  %v6164_v42 = vpop.permute.xlu1 %4029 }
 0x291   :  { %v2277_v5 = vrot.slane %v2135_v7, 7  ;;  %v2286_v16 = vrot.slane %v2137_v26, 7  ;;  %v2284_v20 = vsel %vm2218_vm5, %v2282_v46, %v2283_v18  ;;  %v3992_v9 = vunpack.i.h.bf16 %v6089_v41  ;;  %v6940_v7 = vld [vmem:[#allocation30_spill] sm:$0xff] }
 0x292   :  { %v2420_v24 = vpack.c.bf16 %v2284_v20, %v2275_v32  ;;  %v6170_v15 = vpop.permute.xlu0 %4039  ;;  %v3997_v37 = vunpack.i.h.bf16 %v6099_v52  ;;  %v3996_v63 = vunpack.i.l.bf16 %v6099_v52  ;;  %v4007_v43 = vunpack.i.h.bf16 %v6110_v27 }
 0x293   :  { %v2278_v8 = vsel %vm2218_vm5, %v2276_v49, %v2277_v5  ;;  %v2287_v34 = vsel %vm2218_vm5, %v2285_v12, %v2286_v16  ;;  %v4006_v51 = vunpack.i.l.bf16 %v6110_v27  ;;  %v4002_v14 = vunpack.i.h.bf16 %v6119_v61 }
 0x294   :  { %v2421_v36 = vpack.c.bf16 %v2287_v34, %v2278_v8  ;;  %v6168_v39 = vpop.permute.xlu1 %4044  ;;  %v4001_v46 = vunpack.i.l.bf16 %v6119_v61  ;;  %v4016_v33 = vunpack.i.l.bf16 %v6151_v58  ;;  %v6941_v61 = vld [vmem:[#allocation29_spill] sm:$0xff] }
 0x296   :  { %2659 = vmatprep.mubr.bf16.mxu1 %v2421_v36  ;;  %v4055_v2 = vpop.permute.xlu0 %4054 }
 0x297   :  { %2660 = vmatmul.mubr.bf16.gmra.mrb[28].mxu1 %v2420_v24  ;;  %v4056_v56 = vunpack.i.l.bf16 %v4055_v2  ;;  %v4057_v49 = vunpack.i.h.bf16 %v4055_v2  ;;  %v4233_v24 = vld [vmem:[#allocation2 + $0x128] sm:$0xff] }
 0x298   :  { %v6172_v38 = vpop.permute.xlu1 %4049  ;;  %v6183_v60 = vpop.f32.mrb[32].mxu0 }
 0x299   :  { %v1978_v50 = vsel %vm544_vm2, %v1298_v48, %v4056_v56  ;;  %v1979_v40 = vsel %vm544_vm2, %v5681_v54, %v4056_v56  ;;  %v6191_v30 = vpop.f32.mrb[33].mxu0  ;;  %v1981_v53 = vsel %vm544_vm2, %v5649_v19, %v4057_v49 }
 0x29a   :  { %v4065_v0 = vpop.permute.xlu0 %4064  ;;  %v2010_v54 = vsel %vm561_vm3, %v1978_v50, %v3791_v13  ;;  %v2011_v18 = vsel %vm561_vm3, %v1979_v40, %v3792_v4  ;;  %v6197_v29 = vpop.f32.mrb[34].mxu0 }
 0x29b   :  { %v6203_v31 = vpop.f32.mrb[35].mxu0  ;;  %v2042_v12 = vsel %vm578_vm4, %v2010_v54, %v4001_v46  ;;  %v2043_v16 = vsel %vm578_vm4, %v2011_v18, %v4002_v14  ;;  %v4067_v32 = vunpack.i.h.bf16 %v4065_v0  ;;  %v4066_v56 = vunpack.i.l.bf16 %v4065_v0 }
 0x29c   :  { %v6185_v25 = vpop.permute.xlu1 %4059  ;;  %v2291_v50 = vrot.slane %v2042_v12, 7  ;;  %v2292_v40 = vrot.slane %v2043_v16, 7  ;;  %v1980_v46 = vsel %vm544_vm2, %v5647_v22, %v4057_v49  ;;  %v4232_v16 = vld [vmem:[#allocation2 + $0x140] sm:$0xff] }
 0x29d   :  { %v4062_v0 = vunpack.i.h.bf16 %v6185_v25  ;;  %v4061_v20 = vunpack.i.l.bf16 %v6185_v25  ;;  %v6233_v4 = vsel %vm544_vm2, %v5638_v35, %v4067_v32  ;;  %v6238_v14 = vsel %vm544_vm2, %v4232_v16, %v4067_v32 }
 0x29e   :  { %v4075_v5 = vpop.permute.xlu0 %4074  ;;  %v6242_v22 = vsel %vm544_vm2, %v5635_v3, %v4066_v56  ;;  %v6247_v48 = vsel %vm544_vm2, %v4233_v24, %v4066_v56  ;;  %v6256_v16 = vsel %vm2218_vm5, %v2291_v50, %v2292_v40  ;;  %v4235_v56 = vld [vmem:[#allocation2 + $0x158] sm:$0xff] }
 0x29f   :  { %v4077_v54 = vunpack.i.h.bf16 %v4075_v5  ;;  %v4076_v18 = vunpack.i.l.bf16 %v4075_v5 }
 0x2a0   :  { %v6209_v17 = vpop.permute.xlu1 %4069 }
 0x2a1   :  { %v6260_v3 = vsel %vm544_vm2, %v5657_v28, %v4077_v54  ;;  %v6267_v24 = vsel %vm544_vm2, %v5654_v23, %v4076_v18  ;;  %v6270_v35 = vsel %vm544_vm2, %v4235_v56, %v4076_v18  ;;  %v4237_v56 = vld [vmem:[#allocation2 + $0x188] sm:$0xff] }
 0x2a2   :  { %v4085_v6 = vpop.permute.xlu0 %4084  ;;  %v6942_v28 = vld [vmem:[#allocation31_spill] sm:$0xff] }
 0x2a3   :  { %v6235_v12 = vpop.f32.mrb[36].mxu0  ;;  %v4087_v5 = vunpack.i.h.bf16 %v4085_v6  ;;  %v4086_v19 = vunpack.i.l.bf16 %v4085_v6  ;;  %v4234_v6 = vld [vmem:[#allocation2 + $0x170] sm:$0xff] }
 0x2a4   :  { %v6222_v13 = vpop.permute.xlu1 %4079  ;;  %v6244_v49 = vpop.f32.mrb[37].mxu0  ;;  %v6263_v26 = vsel %vm544_vm2, %v4234_v6, %v4077_v54  ;;  %v4236_v6 = vld [vmem:[#allocation2 + $0x1a0] sm:$0xff] }
 0x2a5   :  { %v6251_v8 = vpop.f32.mrb[38].mxu0  ;;  %v6278_v54 = vsel %vm544_vm2, %v6940_v7, %v4087_v5  ;;  %v6281_v23 = vsel %vm544_vm2, %v4236_v6, %v4087_v5  ;;  %v6285_v18 = vsel %vm544_vm2, %v6941_v61, %v4086_v19  ;;  %v6288_v11 = vsel %vm544_vm2, %v4237_v56, %v4086_v19 }
 0x2a6   :  { %v6272_v36 = vpop.f32.mrb[39].mxu0  ;;  %v4095_v50 = vpop.permute.xlu0 %4094 }
 0x2a7   :  { %v4097_v34 = vunpack.i.h.bf16 %v4095_v50  ;;  %v4096_v2 = vunpack.i.l.bf16 %v4095_v50 }
 0x2a8   :  { %v6253_v32 = vpop.permute.xlu1 %4089 }
 0x2a9   :  { %v2075_v7 = vsel %vm544_vm2, %v6942_v28, %v4097_v34  ;;  %v2074_v45 = vsel %vm544_vm2, %v6942_v28, %v4096_v2 }
 0x2aa   :  { %v2107_v61 = vsel %vm561_vm3, %v2075_v7, %v3992_v9  ;;  %v2106_v19 = vsel %vm561_vm3, %v2074_v45, %v3991_v59  ;;  %v4105_v40 = vpop.permute.xlu0 %4104 }
 0x2ab   :  { %v4107_v44 = vunpack.i.h.bf16 %v4105_v40  ;;  %v4106_v50 = vunpack.i.l.bf16 %v4105_v40  ;;  %v2138_v10 = vsel %vm578_vm4, %v2106_v19, %v4061_v20  ;;  %v2139_v34 = vsel %vm578_vm4, %v2107_v61, %v4061_v20 }
 0x2ac   :  { %v4100_v5 = vpop.permute.xlu1 %4099  ;;  %v2294_v9 = vrot.slane %v2138_v10, 7  ;;  %v2295_v7 = vrot.slane %v2139_v34, 7  ;;  %v6946_v34 = vld [vmem:[#allocation33_spill] sm:$0xff] }
 0x2ad   :  { %v4102_v6 = vunpack.i.h.bf16 %v4100_v5  ;;  %v4101_v56 = vunpack.i.l.bf16 %v4100_v5  ;;  %v2012_v45 = vsel %vm561_vm3, %v1980_v46, %v4106_v50  ;;  %v2013_v20 = vsel %vm561_vm3, %v1981_v53, %v4107_v44 }
 0x2ae   :  { %v2044_v5 = vsel %vm578_vm4, %v2012_v45, %v4006_v51  ;;  %v2045_v10 = vsel %vm578_vm4, %v2013_v20, %v4007_v43  ;;  %v6945_v44 = vunpack.i.h.bf16 %v6151_v58 }
 0x2af   :  { %v2077_v2 = vsel %vm544_vm2, %v6943_v55, %v4102_v6  ;;  %v2076_v28 = vsel %vm544_vm2, %v6943_v55, %v4101_v56  ;;  %v2300_v19 = vrot.slane %v2044_v5, 7  ;;  %v2301_v52 = vrot.slane %v2045_v10, 7  ;;  %v6944_v56 = vld [vmem:[#allocation34_spill] sm:$0xff] }
 0x2b0   :  { %v2108_v41 = vsel %vm561_vm3, %v2076_v28, %v3996_v63  ;;  %v2109_v59 = vsel %vm561_vm3, %v2077_v2, %v3997_v37  ;;  %v4115_v40 = vpop.permute.xlu1 %4114  ;;  %v4110_v63 = vpop.permute.xlu0 %4109  ;;  %v2296_v10 = vsel %vm2218_vm5, %v2294_v9, %v2295_v7 }
 0x2b1   :  { %v4117_v55 = vunpack.i.h.bf16 %v4115_v40  ;;  %v4116_v61 = vunpack.i.l.bf16 %v4115_v40  ;;  %v4112_v6 = vunpack.i.h.bf16 %v4110_v63  ;;  %v4111_v37 = vunpack.i.l.bf16 %v4110_v63 }
 0x2b2   :  { %v2140_v51 = vsel %vm578_vm4, %v2108_v41, %v4062_v0  ;;  %v2141_v27 = vsel %vm578_vm4, %v2109_v59, %v4062_v0  ;;  %v6947_v41 = vunpack.i.h.bf16 %v6140_v57  ;;  %v6948_v0 = vunpack.i.l.bf16 %v6140_v57 }
 0x2b3   :  { %v2081_v46 = vsel %vm544_vm2, %v6944_v56, %v4117_v55  ;;  %v2080_v53 = vsel %vm544_vm2, %v6944_v56, %v4116_v61  ;;  %v2079_v2 = vsel %vm544_vm2, %v6946_v34, %v4112_v6  ;;  %v2078_v28 = vsel %vm544_vm2, %v6946_v34, %v4111_v37 }
 0x2b4   :  { %v2112_v43 = vsel %vm561_vm3, %v2080_v53, %v4016_v33  ;;  %v2113_v50 = vsel %vm561_vm3, %v2081_v46, %v6945_v44  ;;  %v4120_v45 = vpop.permute.xlu1 %4119  ;;  %v2111_v25 = vsel %vm561_vm3, %v2079_v2, %v6947_v41  ;;  %v2110_v59 = vsel %vm561_vm3, %v2078_v28, %v6948_v0  ;;  %v4125_v58 = vpop.permute.xlu0 %4124 }
 0x2b5   :  { %v4122_v33 = vunpack.i.h.bf16 %v4120_v45  ;;  %v4121_v20 = vunpack.i.l.bf16 %v4120_v45  ;;  %v4127_v40 = vunpack.i.h.bf16 %v4125_v58  ;;  %v4126_v5 = vunpack.i.l.bf16 %v4125_v58 }
 0x2b6   :  { %v2303_v55 = vrot.slane %v2140_v51, 7  ;;  %v2304_v6 = vrot.slane %v2141_v27, 7  ;;  %v2302_v37 = vsel %vm2218_vm5, %v2300_v19, %v2301_v52  ;;  %v6949_v57 = vunpack.i.l.bf16 %v6160_v47 }
 0x2b7   :  { %v2014_v61 = vsel %vm561_vm3, %v6242_v22, %v4121_v20  ;;  %v2015_v63 = vsel %vm561_vm3, %v6247_v48, %v4122_v33  ;;  %v6950_v46 = vunpack.i.h.bf16 %v6160_v47  ;;  %v2016_v9 = vsel %vm561_vm3, %v6233_v4, %v4126_v5  ;;  %v6953_v33 = vld [vmem:[#allocation36_spill] sm:$0xff] }
 0x2b8   :  { %v6357_v56 = vsel %vm578_vm4, %v2014_v61, %v6949_v57  ;;  %v2017_v22 = vsel %vm561_vm3, %v6238_v14, %v4127_v40  ;;  %v4135_v48 = vpop.permute.xlu1 %4134  ;;  %v6951_v52 = vunpack.i.l.bf16 %v6157_v62  ;;  %v6952_v47 = vunpack.i.h.bf16 %v6157_v62  ;;  %v4130_v44 = vpop.permute.xlu0 %4129  ;;  %v6957_v57 = vld [vmem:[#allocation35_spill] sm:$0xff] }
 0x2b9   :  { %v6362_v53 = vsel %vm578_vm4, %v2015_v63, %v6950_v46  ;;  %v2309_v7 = vrot.slane %v6357_v56, 7  ;;  %v2305_v34 = vsel %vm2218_vm5, %v2303_v55, %v2304_v6  ;;  %v4137_v2 = vunpack.i.h.bf16 %v4135_v48 }
 0x2ba   :  { %v2310_v19 = vrot.slane %v6362_v53, 7  ;;  %v6373_v51 = vsel %vm578_vm4, %v2016_v9, %v6951_v52  ;;  %v6378_v27 = vsel %vm578_vm4, %v2017_v22, %v6952_v47  ;;  %v2424_v28 = vpack.c.bf16 %v2305_v34, %v2296_v10 }
 0x2bb   :  { %v2318_v4 = vrot.slane %v6373_v51, 7  ;;  %v2319_v14 = vrot.slane %v6378_v27, 7  ;;  %v4136_v45 = vunpack.i.l.bf16 %v4135_v48  ;;  %v4132_v41 = vunpack.i.h.bf16 %v4130_v44 }
 0x2bc   :  { %v4131_v0 = vunpack.i.l.bf16 %v4130_v44  ;;  %v2085_v20 = vsel %vm544_vm2, %v6953_v33, %v4137_v2  ;;  %v2423_v62 = vpack.c.bf16 %v2302_v37, %v6256_v16  ;;  %v6954_v58 = vunpack.i.l.bf16 %v6209_v17  ;;  %v4140_v63 = vpop.permute.xlu1 %4139  ;;  %2667 = vmatprep.mubr.bf16.mxu1 %v2424_v28 }
 0x2bd   :  { %v2084_v10 = vsel %vm544_vm2, %v6953_v33, %v4136_v45  ;;  %v6956_v55 = vunpack.i.h.bf16 %v6166_v21  ;;  %v2083_v16 = vsel %vm544_vm2, %v6957_v57, %v4132_v41  ;;  %v6958_v46 = vunpack.i.l.bf16 %v6166_v21 }
 0x2be   :  { %v2142_v40 = vsel %vm578_vm4, %v2110_v59, %v6954_v58  ;;  %v6955_v5 = vmov %v6954_v58  ;;  %v2082_v37 = vsel %vm544_vm2, %v6957_v57, %v4131_v0  ;;  %v4145_v59 = vpop.permute.xlu0 %4144  ;;  %v6959_v9 = vunpack.i.h.bf16 %v6164_v42  ;;  %2668 = vmatmul.mubr.bf16.gmra.mrb[32].mxu1 %v2423_v62 }
 0x2bf   :  { %v2143_v61 = vsel %vm578_vm4, %v2111_v25, %v6955_v5  ;;  %v2117_v6 = vsel %vm561_vm3, %v2085_v20, %v6956_v55  ;;  %v2116_v25 = vsel %vm561_vm3, %v2084_v10, %v6958_v46  ;;  %v6960_v48 = vunpack.i.l.bf16 %v6164_v42 }
 0x2c0   :  { %v2115_v22 = vsel %vm561_vm3, %v2083_v16, %v6959_v9  ;;  %v6961_v47 = vunpack.i.h.bf16 %v6209_v17  ;;  %v2312_v21 = vrot.slane %v2142_v40, 7  ;;  %v2313_v2 = vrot.slane %v2143_v61, 7  ;;  %v4155_v20 = vpop.permute.xlu1 %4154 }
 0x2c1   :  { %v2114_v52 = vsel %vm561_vm3, %v2082_v37, %v6960_v48  ;;  %v4142_v41 = vunpack.i.h.bf16 %v4140_v63  ;;  %v4141_v0 = vunpack.i.l.bf16 %v4140_v63  ;;  %v4147_v33 = vunpack.i.h.bf16 %v4145_v59 }
 0x2c2   :  { %v2144_v27 = vsel %vm578_vm4, %v2112_v43, %v6961_v47  ;;  %v6962_v44 = vmov %v6961_v47  ;;  %v2314_v42 = vsel %vm2218_vm5, %v2312_v21, %v2313_v2  ;;  %v4146_v58 = vunpack.i.l.bf16 %v4145_v59  ;;  %v4150_v10 = vpop.permute.xlu0 %4149 }
 0x2c3   :  { %v2145_v34 = vsel %vm578_vm4, %v2113_v50, %v6962_v44  ;;  %v2321_v28 = vrot.slane %v2144_v27, 7  ;;  %v4157_v62 = vunpack.i.h.bf16 %v4155_v20  ;;  %v4156_v5 = vunpack.i.l.bf16 %v4155_v20 }
 0x2c4   :  { %v2322_v45 = vrot.slane %v2145_v34, 7  ;;  %v2018_v17 = vsel %vm561_vm3, %v6267_v24, %v4141_v0  ;;  %v2019_v50 = vsel %vm561_vm3, %v6270_v35, %v4142_v41  ;;  %v2021_v40 = vsel %vm561_vm3, %v6263_v26, %v4147_v33  ;;  %v4160_v48 = vpop.permute.xlu1 %4159 }
 0x2c5   :  { %v6963_v63 = vunpack.i.l.bf16 %v6170_v15  ;;  %v6964_v57 = vunpack.i.h.bf16 %v6170_v15  ;;  %v2020_v37 = vsel %vm561_vm3, %v6260_v3, %v4146_v58  ;;  %v6965_v46 = vunpack.i.l.bf16 %v6168_v39  ;;  %v6967_v15 = vld [vmem:[#allocation38_spill] sm:$0xff] }
 0x2c6   :  { %v2323_v43 = vsel %vm2218_vm5, %v2321_v28, %v2322_v45  ;;  %v6966_v26 = vunpack.i.h.bf16 %v6168_v39  ;;  %v2089_v44 = vsel %vm544_vm2, %v6967_v15, %v4157_v62  ;;  %v2088_v3 = vsel %vm544_vm2, %v6967_v15, %v4156_v5  ;;  %v4165_v34 = vpop.permute.xlu0 %4164  ;;  %v6972_v62 = vld [vmem:[#allocation37_spill] sm:$0xff] }
 0x2c7   :  { %v2427_v61 = vpack.c.bf16 %v2323_v43, %v2314_v42  ;;  %v2050_v55 = vsel %vm578_vm4, %v2018_v17, %v6963_v63  ;;  %v2051_v16 = vsel %vm578_vm4, %v2019_v50, %v6964_v57  ;;  %v2052_v35 = vsel %vm578_vm4, %v2020_v37, %v6965_v46 }
 0x2c8   :  { %v2327_v59 = vrot.slane %v2050_v55, 7  ;;  %v2328_v24 = vrot.slane %v2051_v16, 7  ;;  %v2053_v9 = vsel %vm578_vm4, %v2021_v40, %v6966_v26  ;;  %v2336_v47 = vrot.slane %v2052_v35, 7  ;;  %v4175_v51 = vpop.permute.xlu1 %4174 }
 0x2c9   :  { %2675 = vmatprep.mubr.bf16.mxu1 %v2427_v61  ;;  %v2337_v27 = vrot.slane %v2053_v9, 7  ;;  %v6968_v21 = vunpack.i.h.bf16 %v5727_v1  ;;  %v6969_v28 = vunpack.i.l.bf16 %v5727_v1  ;;  %v4152_v45 = vunpack.i.h.bf16 %v4150_v10 }
 0x2ca   :  { %v4151_v41 = vunpack.i.l.bf16 %v4150_v10  ;;  %v2311_v0 = vsel %vm2218_vm5, %v2309_v7, %v2310_v19  ;;  %v2320_v33 = vsel %vm2218_vm5, %v2318_v4, %v2319_v14  ;;  %v6970_v20 = vunpack.i.l.bf16 %v6222_v13  ;;  %v6469_v4 = vpop.f32.mrb[40].mxu0  ;;  %v4170_v35 = vpop.permute.xlu0 %4169 }
 0x2cb   :  { %v2121_v2 = vsel %vm561_vm3, %v2089_v44, %v6968_v21  ;;  %v2120_v39 = vsel %vm561_vm3, %v2088_v3, %v6969_v28  ;;  %v2087_v5 = vsel %vm544_vm2, %v6972_v62, %v4152_v45  ;;  %v2426_v53 = vpack.c.bf16 %v2320_v33, %v2311_v0  ;;  %v6480_v40 = vpop.f32.mrb[41].mxu0 }
 0x2cc   :  { %v2146_v42 = vsel %vm578_vm4, %v2114_v52, %v6970_v20  ;;  %v6971_v1 = vmov %v6970_v20  ;;  %v2086_v56 = vsel %vm544_vm2, %v6972_v62, %v4151_v41  ;;  %v6973_v7 = vunpack.i.h.bf16 %v6222_v13  ;;  %v6482_v57 = vpop.f32.mrb[42].mxu0 }
 0x2cd   :  { %v2147_v58 = vsel %vm578_vm4, %v2115_v22, %v6971_v1  ;;  %v6974_v14 = vunpack.i.h.bf16 %v6172_v38  ;;  %v6975_v22 = vunpack.i.l.bf16 %v6172_v38  ;;  %v2330_v50 = vrot.slane %v2146_v42, 7  ;;  %2676 = vmatmul.mubr.bf16.gmra.mrb[36].mxu1 %v2426_v53  ;;  %v6484_v26 = vpop.f32.mrb[43].mxu0 }
 0x2ce   :  { %v2148_v19 = vsel %vm578_vm4, %v2116_v25, %v6973_v7  ;;  %v6976_v43 = vmov %v6973_v7  ;;  %v2331_v25 = vrot.slane %v2147_v58, 7  ;;  %v4162_v55 = vunpack.i.h.bf16 %v4160_v48 }
 0x2cf   :  { %v2119_v52 = vsel %vm561_vm3, %v2087_v5, %v6974_v14  ;;  %v2118_v10 = vsel %vm561_vm3, %v2086_v56, %v6975_v22  ;;  %v2149_v17 = vsel %vm578_vm4, %v2117_v6, %v6976_v43  ;;  %v2339_v61 = vrot.slane %v2148_v19, 7 }
 0x2d0   :  { %v2340_v63 = vrot.slane %v2149_v17, 7  ;;  %v4161_v16 = vunpack.i.l.bf16 %v4160_v48  ;;  %v4167_v37 = vunpack.i.h.bf16 %v4165_v34  ;;  %v4166_v46 = vunpack.i.l.bf16 %v4165_v34 }
 0x2d1   :  { %v4177_v38 = vunpack.i.h.bf16 %v4175_v51  ;;  %v2332_v13 = vsel %vm2218_vm5, %v2330_v50, %v2331_v25  ;;  %v2023_v9 = vsel %vm561_vm3, %v6288_v11, %v4162_v55  ;;  %v4176_v15 = vunpack.i.l.bf16 %v4175_v51  ;;  %v6985_v25 = vld [vmem:[#allocation27_spill] sm:$0xff] }
 0x2d2   :  { %v2341_v6 = vsel %vm2218_vm5, %v2339_v61, %v2340_v63  ;;  %v2022_v3 = vsel %vm561_vm3, %v6285_v18, %v4161_v16  ;;  %v2024_v48 = vsel %vm561_vm3, %v6278_v54, %v4166_v46  ;;  %v2025_v34 = vsel %vm561_vm3, %v6281_v23, %v4167_v37 }
 0x2d3   :  { %v2430_v44 = vpack.c.bf16 %v2341_v6, %v2332_v13  ;;  %v2056_v21 = vsel %vm578_vm4, %v2024_v48, %v4176_v15  ;;  %v2057_v28 = vsel %vm578_vm4, %v2025_v34, %v4177_v38  ;;  %v4172_v45 = vunpack.i.h.bf16 %v4170_v35 }
 0x2d4   :  { %v4171_v41 = vunpack.i.l.bf16 %v4170_v35  ;;  %v2354_v0 = vrot.slane %v2056_v21, 7  ;;  %v2355_v11 = vrot.slane %v2057_v28, 7  ;;  %v2329_v33 = vsel %vm2218_vm5, %v2327_v59, %v2328_v24 }
 0x2d5   :  { %2683 = vmatprep.mubr.bf16.mxu1 %v2430_v44  ;;  %v2338_v20 = vsel %vm2218_vm5, %v2336_v47, %v2337_v27  ;;  %v2055_v54 = vsel %vm578_vm4, %v2023_v9, %v4172_v45  ;;  %v6977_v23 = vunpack.i.l.bf16 %v6253_v32  ;;  %v6979_v53 = vunpack.i.h.bf16 %v6253_v32  ;;  %v6982_v32 = vld [vmem:[#allocation26_spill] sm:$0xff] }
 0x2d6   :  { %v2054_v18 = vsel %vm578_vm4, %v2022_v3, %v4171_v41  ;;  %v2429_v42 = vpack.c.bf16 %v2338_v20, %v2329_v33  ;;  %v2346_v62 = vrot.slane %v2055_v54, 7  ;;  %v2356_v22 = vsel %vm2218_vm5, %v2354_v0, %v2355_v11 }
 0x2d7   :  { %v2150_v1 = vsel %vm578_vm4, %v2118_v10, %v6977_v23  ;;  %v2345_v58 = vrot.slane %v2054_v18, 7  ;;  %v6978_v5 = vmov %v6977_v23  ;;  %v2152_v59 = vsel %vm578_vm4, %v2120_v39, %v6979_v53  ;;  %v6981_v39 = vld [vmem:[#allocation28_spill] sm:$0xff] }
 0x2d8   :  { %v2151_v56 = vsel %vm578_vm4, %v2119_v52, %v6978_v5  ;;  %2684 = vmatmul.mubr.bf16.gmra.mrb[40].mxu1 %v2429_v42  ;;  %v6980_v24 = vmov %v6979_v53  ;;  %v2348_v27 = vrot.slane %v2150_v1, 7  ;;  %v2357_v19 = vrot.slane %v2152_v59, 7 }
 0x2d9   :  { %v2153_v47 = vsel %vm578_vm4, %v2121_v2, %v6980_v24  ;;  %v2349_v7 = vrot.slane %v2151_v56, 7  ;;  %v2347_v14 = vsel %vm2218_vm5, %v2345_v58, %v2346_v62  ;;  %v6983_v50 = vpack.c.bf16 %v6981_v39, %v6982_v32  ;;  %v6984_v2 = vld [vmem:[#allocation25_spill] sm:$0xff] }
 0x2da   :  { %v2358_v51 = vrot.slane %v2153_v47, 7  ;;  %v2432_v17 = vpack.c.bf16 %v2356_v22, %v2347_v14  ;;  %v6986_v61 = vpack.c.bf16 %v6984_v2, %v6985_v25 }
 0x2db   :  { %v2350_v10 = vsel %vm2218_vm5, %v2348_v27, %v2349_v7 }
 0x2dc   :  { %v2359_v52 = vsel %vm2218_vm5, %v2357_v19, %v2358_v51 }
 0x2dd   :  { %v2433_v43 = vpack.c.bf16 %v2359_v52, %v2350_v10 }
 0x2df   :  { %2691 = vmatprep.mubr.bf16.mxu1 %v2433_v43 }
 0x2e0   :  { %2692 = vmatmul.mubr.bf16.gmra.mrb[44].mxu1 %v2432_v17 }
 0x2e1   :  { %3498 = vmatprep.mubr.msk.bf16.mxu1 %vm544_vm2, %v6983_v50 }
 0x2e8   :  { %3499 = vmatmul.mubr.msk.bf16.vlgmr.msra.gmra.mrb[48].mxu1 %vm544_vm2, %v6986_v61 }
 0x347   :  { %v3397_v63 = vpop.f32.mrb[16].mxu1 }
 0x348   :  { %v3398_v55 = vpop.f32.mrb[17].mxu1 }
 0x349   :  { %v3399_v16 = vadd.f32 %v3398_v55, %v3397_v63  ;;  %v3400_v37 = vpop.f32.mrb[18].mxu1 }
 0x34a   :  { %v3401_v46 = vpop.f32.mrb[19].mxu1 }
 0x34b   :  { %v6527_v38 = vadd.f32 %v3399_v16, %v6191_v30  ;;  %v3402_v35 = vadd.f32 %v3401_v46, %v3400_v37 }
 0x34d   :  { %v2841_v13 = vmul.f32 %v6527_v38, %v6527_v38  ;;  %v6532_v6 = vadd.f32 %v3402_v35, %v6203_v31  ;;  %v2797_v9 = vsel %vm544_vm2, %v6527_v38, 0.0 }
 0x34f   :  { %v2798_v15 = vsel %vm544_vm2, %v6532_v6, 0.0  ;;  %v2842_v44 = vmul.f32 %v6532_v6, %v6532_v6  ;;  %v2857_v30 = vsel %vm544_vm2, %v2841_v13, 0.0 }
 0x350   :  { %v2799_v3 = vadd.f32 %v2798_v15, %v2797_v9 }
 0x351   :  { %v2858_v48 = vsel %vm544_vm2, %v2842_v44, 0.0 }
 0x352   :  { %v2859_v34 = vadd.f32 %v2858_v48, %v2857_v30 }
 0x356   :  { %v3403_v21 = vpop.f32.mrb[20].mxu1 }
 0x357   :  { %v3404_v28 = vpop.f32.mrb[21].mxu1 }
 0x358   :  { %v3405_v45 = vadd.f32 %v3404_v28, %v3403_v21  ;;  %v3406_v31 = vpop.f32.mrb[22].mxu1  ;;  %v2988_v21 = vld [vmem:[%s6808_s3] sm:$0xff]  ;;  %v2990_v28 = vld [vmem:[%s6808_s3 + $0x10] sm:$0xff] }
 0x359   :  { %v3407_v41 = vpop.f32.mrb[23].mxu1 }
 0x35a   :  { %v6543_v0 = vadd.f32 %v6183_v60, %v3405_v45  ;;  %v3408_v11 = vadd.f32 %v3407_v41, %v3406_v31  ;;  %v4266_v41 = vmov 0.0|0.0  }
 0x35b   :  { %3518 = vmatprep.subr.bf16.mxu1 %v4266_v41 }
 0x35c   :  { %v2800_v33 = vsel %vm544_vm2, %v6543_v0, 0.0  ;;  %v2843_v20 = vmul.f32 %v6543_v0, %v6543_v0  ;;  %v6550_v18 = vadd.f32 %v6197_v29, %v3408_v11 }
 0x35d   :  { %v2801_v54 = vadd.f32 %v2800_v33, %v2799_v3  ;;  %v2991_v33 = vld [vmem:[%s6808_s3 + $0x18] sm:$0xff] }
 0x35e   :  { %v2860_v42 = vsel %vm544_vm2, %v2843_v20, 0.0  ;;  %v2802_v23 = vsel %vm544_vm2, %v6550_v18, 0.0  ;;  %v2844_v60 = vmul.f32 %v6550_v18, %v6550_v18  ;;  %v6987_v20 = vmov 0.0  }
 0x35f   :  { %v2861_v1 = vadd.f32 %v2860_v42, %v2859_v34  ;;  %v2803_v58 = vadd.f32 %v2802_v23, %v2801_v54  ;;  %3510 = vmatprep.mubr.msk.f32.mxu1 %vm4267_vm6, %v6987_v20  ;;  %v3522_v23 = vpack.c.bf16 %v2991_v33, %v2990_v28 }
 0x360   :  { %v2862_v5 = vsel %vm544_vm2, %v2844_v60, 0.0 }
 0x361   :  { %v2863_v53 = vadd.f32 %v2862_v5, %v2861_v1 }
 0x362   :  { %v3409_v62 = vpop.f32.mrb[24].mxu1 }
 0x363   :  { %v3410_v56 = vpop.f32.mrb[25].mxu1 }
 0x364   :  { %v3411_v59 = vadd.f32 %v3410_v56, %v3409_v62  ;;  %v3412_v24 = vpop.f32.mrb[26].mxu1 }
 0x365   :  { %v3413_v29 = vpop.f32.mrb[27].mxu1 }
 0x366   :  { %v6559_v47 = vadd.f32 %v3411_v59, %v6244_v49  ;;  %v3414_v27 = vadd.f32 %v3413_v29, %v3412_v24 }
 0x368   :  { %v2804_v7 = vsel %vm544_vm2, %v6559_v47, 0.0  ;;  %v2845_v19 = vmul.f32 %v6559_v47, %v6559_v47  ;;  %v6566_v51 = vadd.f32 %v3414_v27, %v6272_v36 }
 0x369   :  { %v2805_v14 = vadd.f32 %v2804_v7, %v2803_v58 }
 0x36a   :  { %v2864_v22 = vsel %vm544_vm2, %v2845_v19, 0.0  ;;  %v2806_v10 = vsel %vm544_vm2, %v6566_v51, 0.0  ;;  %v2846_v49 = vmul.f32 %v6566_v51, %v6566_v51  ;;  %v3415_v52 = vpop.f32.mrb[28].mxu1 }
 0x36b   :  { %v2865_v43 = vadd.f32 %v2864_v22, %v2863_v53  ;;  %v2807_v17 = vadd.f32 %v2806_v10, %v2805_v14  ;;  %v3416_v39 = vpop.f32.mrb[29].mxu1 }
 0x36c   :  { %v2866_v32 = vsel %vm544_vm2, %v2846_v49, 0.0  ;;  %v3417_v50 = vadd.f32 %v3416_v39, %v3415_v52  ;;  %v3418_v2 = vpop.f32.mrb[30].mxu1 }
 0x36d   :  { %v2867_v25 = vadd.f32 %v2866_v32, %v2865_v43  ;;  %v3419_v36 = vpop.f32.mrb[31].mxu1 }
 0x36e   :  { %v6575_v61 = vadd.f32 %v6235_v12, %v3417_v50  ;;  %v3420_v63 = vadd.f32 %v3419_v36, %v3418_v2 }
 0x370   :  { %v2808_v55 = vsel %vm544_vm2, %v6575_v61, 0.0  ;;  %v2847_v16 = vmul.f32 %v6575_v61, %v6575_v61  ;;  %v2762_v37 = vadd.f32 %v6251_v8, %v3420_v63  ;;  %v2989_v8 = vld [vmem:[%s6808_s3 + $0x8] sm:$0xff] }
 0x371   :  { %v2809_v46 = vadd.f32 %v2808_v55, %v2807_v17  ;;  %v3519_v11 = vpack.c.bf16 %v2989_v8, %v2988_v21 }
 0x372   :  { %v2868_v35 = vsel %vm544_vm2, %v2847_v16, 0.0  ;;  %v2810_v13 = vsel %vm544_vm2, %v2762_v37, 0.0  ;;  %v2848_v9 = vmul.f32 %v2762_v37, %v2762_v37 }
 0x373   :  { %v2869_v15 = vadd.f32 %v2868_v35, %v2867_v25  ;;  %v2811_v44 = vadd.f32 %v2810_v13, %v2809_v46  ;;  %3520 = vmatpush3.bf16.msra.mxu1 %v3519_v11 }
 0x374   :  { %v2870_v12 = vsel %vm544_vm2, %v2848_v9, 0.0  ;;  %3521 = vmatprep.subr.bf16.mxu1 %v4266_v41 }
 0x375   :  { %v2812_v3 = vrot.slane %v2811_v44, 4  ;;  %v2871_v30 = vadd.f32 %v2870_v12, %v2869_v15 }
 0x377   :  { %v2813_v48 = vadd.f32 %v2812_v3, %v2811_v44  ;;  %v2872_v34 = vrot.slane %v2871_v30, 4  ;;  %3523 = vmatpush3.bf16.msra.mxu1 %v3522_v23 }
 0x378   :  { %3513 = vmatprep.subr.mxu1 %v6987_v20 }
 0x379   :  { %v2814_v45 = vrot.slane %v2813_v48, 2  ;;  %v2873_v31 = vadd.f32 %v2872_v34, %v2871_v30 }
 0x37b   :  { %v2815_v54 = vadd.f32 %v2814_v45, %v2813_v48  ;;  %v2874_v42 = vrot.slane %v2873_v31, 2 }
 0x37d   :  { %v2816_v60 = vrot.slane %v2815_v54, 1  ;;  %v2875_v1 = vadd.f32 %v2874_v42, %v2873_v31 }
 0x37f   :  { %v2817_v58 = vadd.f32 %v2816_v60, %v2815_v54  ;;  %v2876_v62 = vrot.slane %v2875_v1, 1 }
 0x381   :  { %v2839_v5 = vmul.f32 0.015625, %v2817_v58  ;;  %v2877_v56 = vadd.f32 %v2876_v62, %v2875_v1 }
 0x383   :  { %v2899_v53 = vmul.f32 0.015625, %v2877_v56  ;;  %v2901_v59 = vmul.f32 %v2839_v5, %v2839_v5  ;;  %v2907_v24 = vsub.f32 %v6527_v38, %v2839_v5  ;;  %v2908_v29 = vsub.f32 %v6532_v6, %v2839_v5 }
 0x384   :  { %v2909_v27 = vsub.f32 %v6543_v0, %v2839_v5  ;;  %v2910_v7 = vsub.f32 %v6550_v18, %v2839_v5  ;;  %v2911_v19 = vsub.f32 %v6559_v47, %v2839_v5  ;;  %v2912_v14 = vsub.f32 %v6566_v51, %v2839_v5 }
 0x385   :  { %v2903_v22 = vsub.f32 %v2899_v53, %v2901_v59  ;;  %v2913_v10 = vsub.f32 %v6575_v61, %v2839_v5  ;;  %v2914_v49 = vsub.f32 %v2762_v37, %v2839_v5 }
 0x387   :  { %v2905_v52 = vmax.f32 %v2903_v22, 0.0 }
 0x389   :  { %v2923_v43 = vadd.f32 1e-05, %v2905_v52 }
 0x38b   :  { %4218 = vrsqrt.f32 %v2923_v43 }
 0x391   :  { %v3421_v39 = vpop.f32.mrb[32].mxu1 }
 0x392   :  { %v3422_v47 = vpop.f32.mrb[33].mxu1 }
 0x393   :  { %v3424_v25 = vpop.f32.mrb[34].mxu1  ;;  %v3423_v61 = vadd.f32 %v3422_v47, %v3421_v39 }
 0x394   :  { %v3425_v36 = vpop.f32.mrb[35].mxu1 }
 0x395   :  { %v4219_v17 = vpop.eup %4218  ;;  %v3426_v63 = vadd.f32 %v3425_v36, %v3424_v25  ;;  %v6624_v55 = vadd.f32 %v3423_v61, %v6480_v40 }
 0x396   :  { %v6607_v38 = vmul.f32 %v4219_v17, %v2907_v24  ;;  %v6609_v6 = vmul.f32 %v4219_v17, %v2908_v29  ;;  %v6611_v0 = vmul.f32 %v4219_v17, %v2909_v27  ;;  %v6613_v18 = vmul.f32 %v4219_v17, %v2910_v7 }
 0x397   :  { %v6615_v32 = vmul.f32 %v4219_v17, %v2911_v19  ;;  %v6617_v51 = vmul.f32 %v4219_v17, %v2912_v14  ;;  %v6619_v50 = vmul.f32 %v4219_v17, %v2913_v10  ;;  %v6621_v2 = vmul.f32 %v4219_v17, %v2914_v49 }
 0x398   :  { %v6627_v16 = vadd.f32 %v3426_v63, %v6484_v26  ;;  %v2818_v37 = vsel %vm544_vm2, %v6624_v55, 0.0  ;;  %v2849_v46 = vmul.f32 %v6624_v55, %v6624_v55 }
 0x39a   :  { %v2819_v35 = vsel %vm544_vm2, %v6627_v16, 0.0  ;;  %v2850_v13 = vmul.f32 %v6627_v16, %v6627_v16  ;;  %v2878_v15 = vsel %vm544_vm2, %v2849_v46, 0.0 }
 0x39b   :  { %v2820_v9 = vadd.f32 %v2819_v35, %v2818_v37 }
 0x39c   :  { %v2879_v40 = vsel %vm544_vm2, %v2850_v13, 0.0 }
 0x39d   :  { %v2880_v44 = vadd.f32 %v2879_v40, %v2878_v15 }
 0x3a0   :  { %v3427_v26 = vpop.f32.mrb[36].mxu1 }
 0x3a1   :  { %v3428_v12 = vpop.f32.mrb[37].mxu1 }
 0x3a2   :  { %v3429_v3 = vadd.f32 %v3428_v12, %v3427_v26  ;;  %v3430_v30 = vpop.f32.mrb[38].mxu1 }
 0x3a3   :  { %v3431_v48 = vpop.f32.mrb[39].mxu1 }
 0x3a4   :  { %v6640_v34 = vadd.f32 %v6469_v4, %v3429_v3  ;;  %v3432_v21 = vadd.f32 %v3431_v48, %v3430_v30 }
 0x3a6   :  { %v2821_v8 = vsel %vm544_vm2, %v6640_v34, 0.0  ;;  %v2851_v28 = vmul.f32 %v6640_v34, %v6640_v34  ;;  %v6647_v45 = vadd.f32 %v6482_v57, %v3432_v21 }
 0x3a7   :  { %v2822_v31 = vadd.f32 %v2821_v8, %v2820_v9 }
 0x3a8   :  { %v2881_v41 = vsel %vm544_vm2, %v2851_v28, 0.0  ;;  %v2823_v11 = vsel %vm544_vm2, %v6647_v45, 0.0  ;;  %v2852_v4 = vmul.f32 %v6647_v45, %v6647_v45 }
 0x3a9   :  { %v2882_v54 = vadd.f32 %v2881_v41, %v2880_v44  ;;  %v2824_v23 = vadd.f32 %v2823_v11, %v2822_v31  ;;  %v2943_v11 = vsel %vm544_vm2, %v6607_v38, 0.0 }
 0x3aa   :  { %v2883_v60 = vsel %vm544_vm2, %v2852_v4, 0.0  ;;  %v2944_v4 = vsel %vm544_vm2, %v6609_v6, 0.0 }
 0x3ab   :  { %v3433_v33 = vpop.f32.mrb[40].mxu1  ;;  %v2884_v57 = vadd.f32 %v2883_v60, %v2882_v54 }
 0x3ac   :  { %v3434_v42 = vpop.f32.mrb[41].mxu1 }
 0x3ad   :  { %v3435_v1 = vadd.f32 %v3434_v42, %v3433_v33  ;;  %v3436_v58 = vpop.f32.mrb[42].mxu1  ;;  %v2945_v42 = vadd.f32 %v2944_v4, %v2943_v11 }
 0x3ae   :  { %v3437_v62 = vpop.f32.mrb[43].mxu1 }
 0x3af   :  { %v3438_v5 = vadd.f32 %v3437_v62, %v3436_v58  ;;  %v2946_v62 = vsel %vm544_vm2, %v6611_v0, 0.0 }
 0x3b3   :  { %v3439_v56 = vpop.f32.mrb[44].mxu1 }
 0x3b4   :  { %v3440_v53 = vpop.f32.mrb[45].mxu1 }
 0x3b5   :  { %v3441_v59 = vadd.f32 %v3440_v53, %v3439_v56  ;;  %v3442_v24 = vpop.f32.mrb[46].mxu1  ;;  %v2948_v53 = vsel %vm544_vm2, %v6613_v18, 0.0 }
 0x3b6   :  { %v3443_v29 = vpop.f32.mrb[47].mxu1 }
 0x3b7   :  { %v3444_v27 = vadd.f32 %v3443_v29, %v3442_v24 }
 0x3bb   :  { %v3500_v7 = vpop.f32.mrb[48].mxu1 }
 0x3bc   :  { %v6655_v19 = vadd.f32 %v3500_v7, %v3441_v59  ;;  %v2782_v14 = vpop.f32.mrb[49].mxu1 }
 0x3bd   :  { %v6657_v22 = vadd.f32 %v3435_v1, %v2782_v14  ;;  %v3501_v10 = vpop.f32.mrb[50].mxu1 }
 0x3be   :  { %v6659_v49 = vadd.f32 %v3501_v10, %v3444_v27  ;;  %v2785_v52 = vpop.f32.mrb[51].mxu1  ;;  %v2855_v25 = vmul.f32 %v6655_v19, %v6655_v19  ;;  %v2829_v35 = vsel %vm544_vm2, %v6655_v19, 0.0 }
 0x3bf   :  { %v2825_v43 = vsel %vm544_vm2, %v6657_v22, 0.0  ;;  %v2853_v17 = vmul.f32 %v6657_v22, %v6657_v22  ;;  %v6665_v39 = vadd.f32 %v3438_v5, %v2785_v52 }
 0x3c0   :  { %v2826_v47 = vadd.f32 %v2825_v43, %v2824_v23  ;;  %v2856_v13 = vmul.f32 %v6659_v49, %v6659_v49  ;;  %v2889_v44 = vsel %vm544_vm2, %v2855_v25, 0.0  ;;  %v2831_v26 = vsel %vm544_vm2, %v6659_v49, 0.0 }
 0x3c1   :  { %v2885_v36 = vsel %vm544_vm2, %v2853_v17, 0.0  ;;  %v2827_v61 = vsel %vm544_vm2, %v6665_v39, 0.0  ;;  %v2854_v63 = vmul.f32 %v6665_v39, %v6665_v39 }
 0x3c2   :  { %v2886_v37 = vadd.f32 %v2885_v36, %v2884_v57  ;;  %v2828_v46 = vadd.f32 %v2827_v61, %v2826_v47  ;;  %v2891_v30 = vsel %vm544_vm2, %v2856_v13, 0.0  ;;  %v2947_v57 = vadd.f32 %v2946_v62, %v2945_v42 }
 0x3c3   :  { %v2887_v9 = vsel %vm544_vm2, %v2854_v63, 0.0 }
 0x3c4   :  { %v2830_v15 = vadd.f32 %v2829_v35, %v2828_v46  ;;  %v2888_v40 = vadd.f32 %v2887_v9, %v2886_v37  ;;  %v2949_v43 = vadd.f32 %v2948_v53, %v2947_v57 }
 0x3c6   :  { %v2832_v12 = vadd.f32 %v2831_v26, %v2830_v15  ;;  %v2890_v3 = vadd.f32 %v2889_v44, %v2888_v40 }
 0x3c8   :  { %v2833_v48 = vrot.slane %v2832_v12, 4  ;;  %v2892_v21 = vadd.f32 %v2891_v30, %v2890_v3 }
 0x3ca   :  { %v2834_v8 = vadd.f32 %v2833_v48, %v2832_v12  ;;  %v2893_v28 = vrot.slane %v2892_v21, 4 }
 0x3cc   :  { %v2835_v31 = vrot.slane %v2834_v8, 2  ;;  %v2894_v41 = vadd.f32 %v2893_v28, %v2892_v21 }
 0x3ce   :  { %v2836_v33 = vadd.f32 %v2835_v31, %v2834_v8  ;;  %v2895_v54 = vrot.slane %v2894_v41, 2 }
 0x3d0   :  { %v2837_v23 = vrot.slane %v2836_v33, 1  ;;  %v2896_v60 = vadd.f32 %v2895_v54, %v2894_v41 }
 0x3d2   :  { %v2838_v1 = vadd.f32 %v2837_v23, %v2836_v33  ;;  %v2897_v58 = vrot.slane %v2896_v60, 1 }
 0x3d4   :  { %v2840_v5 = vmul.f32 0.015625, %v2838_v1  ;;  %v2898_v56 = vadd.f32 %v2897_v58, %v2896_v60 }
 0x3d6   :  { %v2900_v59 = vmul.f32 0.015625, %v2898_v56  ;;  %v2902_v24 = vmul.f32 %v2840_v5, %v2840_v5  ;;  %v2915_v29 = vsub.f32 %v6624_v55, %v2840_v5  ;;  %v2916_v27 = vsub.f32 %v6627_v16, %v2840_v5 }
 0x3d7   :  { %v2917_v7 = vsub.f32 %v6640_v34, %v2840_v5  ;;  %v2918_v14 = vsub.f32 %v6647_v45, %v2840_v5  ;;  %v2919_v10 = vsub.f32 %v6657_v22, %v2840_v5  ;;  %v2920_v52 = vsub.f32 %v6665_v39, %v2840_v5 }
 0x3d8   :  { %v2904_v17 = vsub.f32 %v2900_v59, %v2902_v24  ;;  %v2921_v47 = vsub.f32 %v6655_v19, %v2840_v5  ;;  %v2922_v25 = vsub.f32 %v6659_v49, %v2840_v5  ;;  %v2950_v55 = vsel %vm544_vm2, %v6615_v32, 0.0 }
 0x3d9   :  { %v2951_v61 = vadd.f32 %v2950_v55, %v2949_v43  ;;  %v2952_v34 = vsel %vm544_vm2, %v6617_v51, 0.0  ;;  %v2954_v22 = vsel %vm544_vm2, %v6619_v50, 0.0  ;;  %v2956_v19 = vsel %vm544_vm2, %v6621_v2, 0.0 }
 0x3da   :  { %v2906_v36 = vmax.f32 %v2904_v17, 0.0 }
 0x3db   :  { %v2953_v45 = vadd.f32 %v2952_v34, %v2951_v61 }
 0x3dc   :  { %v2924_v16 = vadd.f32 1e-05, %v2906_v36 }
 0x3dd   :  { %v2955_v39 = vadd.f32 %v2954_v22, %v2953_v45  ;;  %v3158_v45 = vlaneseq }
 0x3de   :  { %4220 = vrsqrt.f32 %v2924_v16  ;;  %v4268_v16 = vmov 1966171168  }
 0x3df   :  { %v2957_v49 = vadd.f32 %v2956_v19, %v2955_v39  ;;  %v3156_v34 = vunpack.c.l.s4 %v4268_v16  ;;  %v3159_v39 = vshrl.u32 %v3158_v45, 7 }
 0x3e1   :  { %v2958_v48 = vrot.slane %v2957_v49, 4  ;;  %v3157_v22 = vunpack.c.0.s8 %v3156_v34 }
 0x3e3   :  { %v2959_v41 = vadd.f32 %v2958_v48, %v2957_v49  ;;  %v3160_v19 = vsub.s32 %v3157_v22, %v3159_v39  ;;  %v3179_v49 = vsub.s32 0, %v3159_v39 }
 0x3e5   :  { %v2960_v23 = vrot.slane %v2959_v41, 2 }
 0x3e7   :  { %v2961_v62 = vadd.f32 %v2960_v23, %v2959_v41  ;;  %v6988_v23 = vld [vmem:[#allocation6_spill] sm:$0xff] }
 0x3e8   :  { %v4221_v63 = vpop.eup %4220 }
 0x3e9   :  { %v6707_v37 = vmul.f32 %v4221_v63, %v2915_v29  ;;  %v6709_v46 = vmul.f32 %v4221_v63, %v2916_v27  ;;  %v6711_v35 = vmul.f32 %v4221_v63, %v2917_v7  ;;  %v6713_v13 = vmul.f32 %v4221_v63, %v2918_v14  ;;  %v3069_v14 = vld [vmem:[%s6809_s4] sm:$0x3]  ;;  %s4269_s4 = smov [#allocation3]  }
 0x3ea   :  { %v6715_v9 = vmul.f32 %v4221_v63, %v2919_v10  ;;  %v6717_v15 = vmul.f32 %v4221_v63, %v2920_v52  ;;  %v6719_v40 = vmul.f32 %v4221_v63, %v2921_v47  ;;  %v6721_v44 = vmul.f32 %v4221_v63, %v2922_v25  ;;  %s3240_s20 = sshll.u32 %s4269_s4, 4  ;;  %s3241_s20 = int_to_ptr.vmem [resolvable:$true] %s3240_s20 }
 0x3eb   :  { %v2964_v26 = vsel %vm544_vm2, %v6707_v37, 0.0  ;;  %v2965_v12 = vsel %vm544_vm2, %v6709_v46, 0.0  ;;  %v2967_v30 = vsel %vm544_vm2, %v6711_v35, 0.0  ;;  %v2969_v8 = vsel %vm544_vm2, %v6713_v13, 0.0  ;;  %s4238_s21 = scalar_lea.vmem %s3241_s20, 2048  ;;  %p4243_p1 = scmp.lt.s32.totalorder %s3241_s20, %s3241_s20 }
 0x3ec   :  { %v2966_v3 = vadd.f32 %v2965_v12, %v2964_v26  ;;  %v2971_v31 = vsel %vm544_vm2, %v6715_v9, 0.0  ;;  %v2973_v4 = vsel %vm544_vm2, %v6717_v15, 0.0  ;;  %v2975_v54 = vsel %vm544_vm2, %v6719_v40, 0.0  ;;  %p4239_p0 = scmp.ne.s32.totalorder %s3241_s20, %s4238_s21  ;;  %p4244_p2 = scmp.lt.s32.totalorder %s4238_s21, %s4238_s21 }
 0x3ed   :  { %v2977_v60 = vsel %vm544_vm2, %v6721_v44, 0.0  ;;  %v2962_v5 = vrot.slane %v2961_v62, 1 }
 0x3ee   :  { %v2968_v21 = vadd.f32 %v2967_v30, %v2966_v3  ;;  %p4245_p3 = por %p4244_p2, %p4243_p1 }
 0x3ef   :  { %v2963_v59 = vadd.f32 %v2962_v5, %v2961_v62  ;;  %v6992_v62 = vld [vmem:[#allocation10_spill] sm:$0xff]  ;;  %v6994_v5 = vld [vmem:[#allocation12_spill] sm:$0xff] }
 0x3f0   :  { %v2970_v28 = vadd.f32 %v2969_v8, %v2968_v21  ;;  %p4246_p4 = pnand %p4245_p3, %p4239_p0 }
 0x3f1   :  { %v2986_v27 = vmul.f32 0.015625, %v2963_v59 }
 0x3f2   :  { %v2972_v11 = vadd.f32 %v2971_v31, %v2970_v28 }
 0x3f4   :  { %v2974_v33 = vadd.f32 %v2973_v4, %v2972_v11 }
 0x3f6   :  { %v2976_v42 = vadd.f32 %v2975_v54, %v2974_v33 }
 0x3f8   :  { %v2978_v1 = vadd.f32 %v2977_v60, %v2976_v42  ;;  %v6989_v60 = vld [vmem:[#allocation7_spill] sm:$0xff] }
 0x3fa   :  { %v2979_v58 = vrot.slane %v2978_v1, 4 }
 0x3fc   :  { %v2980_v57 = vadd.f32 %v2979_v58, %v2978_v1  ;;  %v6990_v1 = vld [vmem:[#allocation8_spill] sm:$0xff]  ;;  %v6991_v58 = vld [vmem:[#allocation9_spill] sm:$0xff] }
 0x3fe   :  { %v2981_v56 = vrot.slane %v2980_v57, 2 }
 0x400   :  { %v2982_v53 = vadd.f32 %v2981_v56, %v2980_v57  ;;  %v6993_v57 = vld [vmem:[#allocation11_spill] sm:$0xff]  ;;  %v6996_v56 = vld [vmem:[#allocation14_spill] sm:$0xff] }
 0x402   :  { %v2983_v24 = vrot.slane %v2982_v53, 1 }
 0x404   :  { %v2984_v29 = vadd.f32 %v2983_v24, %v2982_v53  ;;  %v6997_v53 = vld [vmem:[#allocation15_spill] sm:$0xff]  ;;  %v6998_v24 = vld [vmem:[#allocation16_spill] sm:$0xff] }
 0x406   :  { %v2987_v7 = vmul.f32 0.015625, %v2984_v29 }
 0x408   :  { %v2995_v10 = vsel %vm2994_vm7, %v2987_v7, %v2986_v27  ;;  %v6999_v27 = vld [vmem:[#allocation17_spill] sm:$0xff] }
 0x409   :  { %3511 = vmatmul.mubr.msk.f32.vlgmr.msra.gmra.mrb[52].mxu1 %vm544_vm2, %v2995_v10 }
 0x40a   :  { %3514 = vmatpush3.msk.msra.mxu1 %vm3074_vm8, %v3069_v14  ;;  %3515 = vmatprep.mubr.msk.f32.mxu1 %vm4267_vm6, %v6987_v20  ;;  %v7000_v14 = vld [vmem:[#allocation18_spill] sm:$0xff] }
 0x4dc   :  { %v3064_v52 = vpop.f32.mrb[52].mxu1 }
 0x4dd   :  { %v3068_v43 = vmax.f32 %v3064_v52, 0.0  ;;  %v3512_v17 = vpop.f32.mrb[53].mxu1  ;;  %v7001_v52 = vld [vmem:[#allocation19_spill] sm:$0xff] }
 0x4de   :  { %v7002_v17 = vld [vmem:[#allocation20_spill] sm:$0xff] }
 0x4df   :  { %3516 = vmatmul.mubr.msk.f32.vlgmr.msra.gmra.mrb[54].mxu1 %vm3070_vm9, %v3068_v43 }
 0x5b2   :  { %v3144_v47 = vpop.f32.mrb[54].mxu1 }
 0x5b3   :  { %v3306_v25 = vmul.f32 -1.442695, %v3144_v47  ;;  %v3517_v36 = vpop.f32.mrb[55].mxu1 }
 0x5b5   :  { %4222 = vpow2.f32 %v3306_v25  ;;  %v7003_v25 = vld [vmem:[#allocation21_spill] sm:$0xff] }
 0x5bf   :  { %v4223_v55 = vpop.eup %4222 }
 0x5c0   :  { %v3151_v61 = vadd.f32 1.0, %v4223_v55 }
 0x5c2   :  { %4224 = vrcp.f32 %v3151_v61 }
 0x5cc   :  { %v4225_v63 = vpop.eup %4224 }
 0x5cd   :  { %v3161_v20 = vrot.slane %v4225_v63, %v3160_v19 }
 0x5cf   :  { %v3162_v26 = vcombine.high %v3161_v20, %v3161_v20  ;;  %v3169_v12 = vrot.slane %v3161_v20, %v3160_v19 }
 0x5d1   :  { %v3176_v3 = vrot.slane %v3162_v26, %v3160_v19  ;;  %v3180_v30 = vrot.slane %v3169_v12, %v3179_v49 }
 0x5d3   :  { %v3184_v48 = vrot.slane %v3176_v3, %v3179_v49  ;;  %v3187_v21 = vmul.f32 %v3180_v30, %v6607_v38  ;;  %v3188_v8 = vmul.f32 %v3180_v30, %v6609_v6  ;;  %v3189_v28 = vmul.f32 %v3180_v30, %v6611_v0 }
 0x5d4   :  { %v3190_v31 = vmul.f32 %v3180_v30, %v6613_v18  ;;  %v3191_v41 = vmul.f32 %v3180_v30, %v6615_v32  ;;  %v3192_v11 = vmul.f32 %v3180_v30, %v6617_v51  ;;  %v3193_v4 = vmul.f32 %v3180_v30, %v6619_v50 }
 0x5d5   :  { %v3194_v33 = vmul.f32 %v3180_v30, %v6621_v2  ;;  %v3195_v54 = vmul.f32 %v3184_v48, %v6707_v37  ;;  %v3196_v42 = vmul.f32 %v3184_v48, %v6709_v46  ;;  %v3197_v38 = vmul.f32 %v3184_v48, %v6711_v35 }
 0x5d6   :  { %v3198_v6 = vmul.f32 %v3184_v48, %v6713_v13  ;;  %v3199_v0 = vmul.f32 %v3184_v48, %v6715_v9  ;;  %v3200_v18 = vmul.f32 %v3184_v48, %v6717_v15  ;;  %v3201_v32 = vmul.f32 %v3184_v48, %v6719_v40  ;;  %v6995_v15 = vld [vmem:[#allocation13_spill] sm:$0xff] }
 0x5d7   :  { %v3202_v51 = vmul.f32 %v3184_v48, %v6721_v44  ;;  %v3203_v50 = vadd.f32 %v3187_v21, %v6988_v23  ;;  %v3204_v2 = vadd.f32 %v3188_v8, %v6989_v60  ;;  %v3205_v37 = vadd.f32 %v3189_v28, %v6990_v1 }
 0x5d8   :  { %v3206_v46 = vadd.f32 %v3190_v31, %v6991_v58  ;;  %v3207_v35 = vadd.f32 %v3191_v41, %v6992_v62  ;;  %v3208_v13 = vadd.f32 %v3192_v11, %v6993_v57  ;;  %v3209_v9 = vadd.f32 %v3193_v4, %v6994_v5 }
 0x5d9   :  { %v3210_v40 = vadd.f32 %v3194_v33, %v6995_v15  ;;  %v3211_v44 = vadd.f32 %v3195_v54, %v6996_v56  ;;  %v3212_v59 = vadd.f32 %v3196_v42, %v6997_v53  ;;  %v3213_v29 = vadd.f32 %v3197_v38, %v6998_v24  ;;  %3219 = vst.msk [vmem:[#allocation3] sm:$0xff] %vm544_vm2, %v3203_v50 }
 0x5da   :  { %3220 = vst.msk [vmem:[#allocation3 + $0x8] sm:$0xff] %vm544_vm2, %v3204_v2  ;;  %3221 = vst.msk [vmem:[#allocation3 + $0x10] sm:$0xff] %vm544_vm2, %v3205_v37  ;;  %v3214_v7 = vadd.f32 %v3198_v6, %v6999_v27  ;;  %v3215_v10 = vadd.f32 %v3199_v0, %v7000_v14  ;;  %v3216_v43 = vadd.f32 %v3200_v18, %v7001_v52 }
 0x5db   :  { %v3217_v47 = vadd.f32 %v3201_v32, %v7002_v17  ;;  %3222 = vst.msk [vmem:[#allocation3 + $0x18] sm:$0xff] %vm544_vm2, %v3206_v46  ;;  %3223 = vst.msk [vmem:[#allocation3 + $0x20] sm:$0xff] %vm544_vm2, %v3207_v35  ;;  %v3218_v36 = vadd.f32 %v3202_v51, %v7003_v25 }
 0x5dc   :  { %3224 = vst.msk [vmem:[#allocation3 + $0x28] sm:$0xff] %vm544_vm2, %v3208_v13  ;;  %3225 = vst.msk [vmem:[#allocation3 + $0x30] sm:$0xff] %vm544_vm2, %v3209_v9 }
 0x5dd   :  { %3226 = vst.msk [vmem:[#allocation3 + $0x38] sm:$0xff] %vm544_vm2, %v3210_v40  ;;  %3227 = vst.msk [vmem:[#allocation3 + $0x40] sm:$0xff] %vm544_vm2, %v3211_v44 }
 0x5de   :  { %3228 = vst.msk [vmem:[#allocation3 + $0x48] sm:$0xff] %vm544_vm2, %v3212_v59  ;;  %3229 = vst.msk [vmem:[#allocation3 + $0x50] sm:$0xff] %vm544_vm2, %v3213_v29 }
 0x5df   :  { %3230 = vst.msk [vmem:[#allocation3 + $0x58] sm:$0xff] %vm544_vm2, %v3214_v7  ;;  %3231 = vst.msk [vmem:[#allocation3 + $0x60] sm:$0xff] %vm544_vm2, %v3215_v10 }
 0x5e0   :  { %3232 = vst.msk [vmem:[#allocation3 + $0x68] sm:$0xff] %vm544_vm2, %v3216_v43  ;;  %3233 = vst.msk [vmem:[#allocation3 + $0x70] sm:$0xff] %vm544_vm2, %v3217_v47 }
 0x5e1   :  { %3234 = vst.msk [vmem:[#allocation3 + $0x78] sm:$0xff] %vm544_vm2, %v3218_v36 }
 0x5e2   :  { %4249 = shalt.err (!%p4246_p4)
}
 0x5e3   :  { %s4250_s22 = scalar_lea.hbm %s6810_s5, 2048 }
 0x5e4   :  { %p4251_p5 = scmp.ne.s32.totalorder %s6810_s5, %s4250_s22  ;;  %p4254_p6 = scmp.lt.u32.totalorder %s4250_s22, %s6810_s5 }
 0x5e6   :  { %p4256_p7 = pnand %p4254_p6, %p4251_p5 }
 0x5e8   :  { %4259 = shalt.err (!%p4256_p7)
}
 0x5e9   :  { %s4270_s27 = smov 128   ;;  %s4271_s28 = smov 8  }
 0x5ea   :  { %3246 = dma.vmem_to_hbm [thread:$0]  %s3241_s20, 2048, %s6810_s5, [#allocation4], %s4270_s27, %s4270_s27, %s4271_s28  }
 0x5eb   :  { %4260 = dma.done.wait [#allocation4], 2048  }
 0x5ec   :  { %4261 = vsyncadd [#allocation4], 4294965248 }
 0x5ed   :  { %3250 = vsyncpa [#allocation4], 1 }

</bundles_post_ra>
